<compile_context>
chip_gen: v7x
topology: tpu7x:2x2x1
jax: 0.10.0
libtpu: 0.0.40
codegen_flags: <defaults>
</compile_context>

<pallas_src>
import math
import functools

import jax
import jax.numpy as jnp
from jax import lax
from jax.experimental import pallas as pl
from jax.experimental.pallas import tpu as pltpu

LN_EPS = 1e-12

_BIG_WEIGHTS = ("wq", "wk", "wv", "wo", "wi", "wo2")            # bf16 in HBM
_SMALL_PARAMS = ("bq", "bk", "bv", "bo", "ln1_g", "ln1_b",
                 "bi", "bo2", "ln2_g", "ln2_b")                 # packed f32 rows


def _layer_norm(x, gamma, beta):
    mu = jnp.mean(x, axis=-1, keepdims=True)
    var = jnp.mean((x - mu) ** 2, axis=-1, keepdims=True)
    return (x - mu) * lax.rsqrt(var + LN_EPS) * gamma + beta


def _gelu_exact(x):
    # BERT uses erf-based gelu.
    return 0.5 * x * (1.0 + lax.erf(x * 0.7071067811865476))


def _const_block_spec(shape):
    """Whole-array block with a constant block index over the grid.

    Single-buffered (pl.Buffered(1)): these operands are identical on every
    grid step, so double-buffering them is pure VMEM waste."""
    ndim = len(shape)
    index_map = lambda b, _n=ndim: (0,) * _n
    if hasattr(pl, "Buffered"):
        try:
            return pl.BlockSpec(shape, index_map, pipeline_mode=pl.Buffered(1))
        except (TypeError, ValueError):   # older jax without pipeline_mode
            pass
    return pl.BlockSpec(shape, index_map)


def table_layer_kernel(tok_ref, ent_ref, tmask_ref, emask_ref,
                       wq_ref, wk_ref, wv_ref, wo_ref, wi_ref, wo2_ref,
                       small_ref,
                       tok_out_ref, ent_out_ref,
                       *, num_heads, head_dim, hidden, inter):
    """One fused TableLayerSimple step for a tile of Bt batch elements.

    Both streams (tok self-attention, ent cross-attention over
    cat([tok_in, ent])) share one set of resident weights, one stacked QKV
    projection, and the tok K/V."""
    nh, hd, H, I = num_heads, head_dim, hidden, inter
    scale = 1.0 / math.sqrt(hd)

    Bt, Lt = tok_ref.shape[0], tok_ref.shape[1]
    Le = ent_ref.shape[1]
    Mt, Me = Bt * Lt, Bt * Le

    # Packed small parameters (biases + LayerNorm), one DMA block, f32.
    small = small_ref[...]
    bq, bk, bv = small[0:1, :H], small[1:2, :H], small[2:3, :H]
    bo, g1, b1 = small[3:4, :H], small[4:5, :H], small[5:6, :H]
    bi = small[6:7, :I]
    bo2, g2, b2 = small[7:8, :H], small[8:9, :H], small[9:10, :H]

    t = tok_ref[...]                                   # (Bt, Lt, H)
    e = ent_ref[...]                                   # (Bt, Le, H)
    tm = tmask_ref[...].astype(jnp.float32)            # (Bt, 1, Lt)
    em = emask_ref[...].astype(jnp.float32)            # (Bt, 1, Lt+Le)

    # Stack both streams so the projections run as ONE tall MXU matmul
    # (M = Bt*(Lt+Le)) instead of several short ones.
    t2 = t.reshape(Mt, H).astype(jnp.bfloat16)
    e2 = e.reshape(Me, H).astype(jnp.bfloat16)
    x2 = jnp.concatenate([t2, e2], axis=0)             # (Mt+Me, H) bf16

    def dense(x_b, w_ref, b):
        # bf16 MXU matmul, f32 accumulation, f32 bias add.
        return jnp.dot(x_b, w_ref[...], preferred_element_type=jnp.float32) + b

    q = dense(x2, wq_ref, bq) * scale                  # 1/sqrt(hd) folded into q
    k = dense(x2, wk_ref, bk)
    v = dense(x2, wv_ref, bv)

    def heads(x2d, L):
        # (Bt*L, H) f32 -> (Bt*nh, L, hd) bf16: cast ONCE, explicit head-major
        # relayout so the attention einsums become clean batched matmuls.
        x4 = x2d.reshape(Bt, L, nh, hd).astype(jnp.bfloat16)
        return x4.transpose(0, 2, 1, 3).reshape(Bt * nh, L, hd)

    q_t, q_e = heads(q[:Mt], Lt), heads(q[Mt:], Le)
    k_t, k_e = heads(k[:Mt], Lt), heads(k[Mt:], Le)
    v_t, v_e = heads(v[:Mt], Lt), heads(v[Mt:], Le)

    # ent K/V source = per-batch cat([tok_in, ent], dim=1); concatenated once,
    # in bf16, inside VMEM only (no HBM concat, no duplicate casts).
    k_cat = jnp.concatenate([k_t, k_e], axis=1)        # (Bt*nh, Lt+Le, hd)
    v_cat = jnp.concatenate([v_t, v_e], axis=1)

    def mha(q3, k3, v3, m):
        # q3: (Bt*nh, Lq, hd) bf16; k3/v3: (Bt*nh, Lk, hd) bf16;
        # m: (Bt, 1, Lk) additive mask (0 = attend, -1e4 = masked).
        # TODO(synk): for long sequences, tile this over Lk (flash-style) so
        # the f32 score tensor does not co-reside at full size on v7x.
        Lq, Lk = q3.shape[1], k3.shape[1]
        s = jnp.einsum("nqd,nkd->nqk", q3, k3,
                       preferred_element_type=jnp.float32)
        s = s.reshape(Bt, nh, Lq, Lk) + m[:, :, None, :]
        s = s - jnp.max(s, axis=-1, keepdims=True)     # f32 softmax
        p = jnp.exp(s)
        p = p * pl.reciprocal(jnp.sum(p, axis=-1, keepdims=True), approx=True)
        p = p.reshape(Bt * nh, Lq, Lk).astype(jnp.bfloat16)
        ctx = jnp.einsum("nqk,nkd->nqd", p, v3,
                         preferred_element_type=jnp.float32)   # (Bt*nh, Lq, hd)
        return ctx.reshape(Bt, nh, Lq, hd).transpose(0, 2, 1, 3).reshape(Bt * Lq, H)

    def output_block(ctx2, resid2):
        # BertSelfOutput + BertIntermediate + BertOutput (dropout = identity).
        attn = dense(ctx2.astype(jnp.bfloat16), wo_ref, bo)
        attn = _layer_norm(attn + resid2, g1, b1)
        ffn = _gelu_exact(dense(attn.astype(jnp.bfloat16), wi_ref, bi))
        out = dense(ffn.astype(jnp.bfloat16), wo2_ref, bo2)
        return _layer_norm(out + attn, g2, b2)

    tok_out = output_block(mha(q_t, k_t, v_t, tm),
                           t.reshape(Mt, H).astype(jnp.float32))
    ent_out = output_block(mha(q_e, k_cat, v_cat, em),
                           e.reshape(Me, H).astype(jnp.float32))

    tok_out_ref[...] = tok_out.reshape(Bt, Lt, H).astype(tok_out_ref.dtype)
    ent_out_ref[...] = ent_out.reshape(Bt, Le, H).astype(ent_out_ref.dtype)


def _pack_small_params(params, H, I):
    """Fuse the ten (1,H)/(1,I) bias / LayerNorm vectors into one f32 block."""
    P = max(H, I)

    def row(name):
        x = params[name].reshape(1, -1).astype(jnp.float32)
        return jnp.pad(x, ((0, 0), (0, P - x.shape[1])))

    return jnp.concatenate([row(n) for n in _SMALL_PARAMS], axis=0)   # (10, P)


def _choose_block_b(B, Lt, Le, block_b):
    """Batch elements per grid step.

    Stacking batch elements raises the projection matmul M toward the MXU's
    256-row sweet spot (v6e/v7x) and amortizes the ~0.35us/step grid overhead,
    while keeping >=2 grid steps when possible so both v7x TensorCores get
    work under dimension_semantics=("parallel",)."""
    if block_b is not None:
        assert B % block_b == 0, "block_b must divide the batch size"
        return block_b
    target = max(1, 256 // max(Lt + Le, 1))
    divisors = [d for d in range(1, B + 1) if B % d == 0]
    good = [d for d in divisors if d <= target and (B // d >= 2 or B == 1)]
    if not good:
        good = [d for d in divisors if d <= target] or [1]
    return max(good)


def table_layer(tok_h, tok_mask, ent_h, ent_mask, params, num_heads, *,
                block_b=None, vmem_limit_bytes=48 * 1024 * 1024):
    """One fused pallas_call per layer: grid over batch tiles, both streams and
    all 17 parameter tensors handled inside a single kernel body."""
    B, Lt, H = tok_h.shape
    Le = ent_h.shape[1]
    I = params["wi"].shape[1]
    head_dim = H // num_heads
    Bt = _choose_block_b(B, Lt, Le, block_b)

    # Big matrices stored bf16 in HBM (halves weight DMA; f32 MXU accumulation
    # inside the kernel). Biases / LayerNorm params packed into one f32 block.
    big = [params[name].astype(jnp.bfloat16) for name in _BIG_WEIGHTS]
    small = _pack_small_params(params, H, I)

    in_specs = [
        pl.BlockSpec((Bt, Lt, H), lambda b: (b, 0, 0)),        # tok hidden
        pl.BlockSpec((Bt, Le, H), lambda b: (b, 0, 0)),        # ent hidden
        pl.BlockSpec((Bt, 1, Lt), lambda b: (b, 0, 0)),        # tok additive mask
        pl.BlockSpec((Bt, 1, Lt + Le), lambda b: (b, 0, 0)),   # ent additive mask
    ]
    in_specs += [_const_block_spec(w.shape) for w in big]      # single-buffered
    in_specs.append(_const_block_spec(small.shape))

    kernel = functools.partial(table_layer_kernel, num_heads=num_heads,
                               head_dim=head_dim, hidden=H, inter=I)

    tok_out, ent_out = pl.pallas_call(
        kernel,
        out_shape=(jax.ShapeDtypeStruct((B, Lt, H), tok_h.dtype),
                   jax.ShapeDtypeStruct((B, Le, H), ent_h.dtype)),
        grid_spec=pltpu.PrefetchScalarGridSpec(
            num_scalar_prefetch=0,
            grid=(B // Bt,),
            in_specs=in_specs,
            out_specs=[pl.BlockSpec((Bt, Lt, H), lambda b: (b, 0, 0)),
                       pl.BlockSpec((Bt, Le, H), lambda b: (b, 0, 0))],
        ),
        compiler_params=pltpu.CompilerParams(
            dimension_semantics=("parallel",),   # megacore over batch tiles
            # With Buffered(1) weights this stays inside v7x's 64 MiB/TC;
            # raise toward ~100 MiB on v5e/v6e for larger batch tiles.
            vmem_limit_bytes=vmem_limit_bytes,
        ),
    )(tok_h, ent_h, tok_mask, ent_mask, *big, small)
    return tok_out, ent_out


def table_encoder_simple(tok_h, tok_mask, ent_h, ent_mask, layer_params,
                         num_heads, *, block_b=None, activation_dtype=None):
    """TableEncoderSimple.forward (output_attentions=output_hidden_states=False).

    # TODO(synk): the tok_hidden_states_cache / predict_id branch (tok stream
    # absent at inference) is not modeled; both streams are always present.
    # TODO(synk): per-layer weight re-staging could be hidden with a
    # cross-pallas_call prefetch (semaphore + VMEM-ref outputs) when B is small.
    """
    if activation_dtype is not None:     # e.g. bf16 inter-layer acts on v5e
        tok_h = tok_h.astype(activation_dtype)
        ent_h = ent_h.astype(activation_dtype)
    for params in layer_params:
        tok_h, ent_h = table_layer(tok_h, tok_mask, ent_h, ent_mask, params,
                                   num_heads, block_b=block_b)
    return (tok_h,), (ent_h,)


def init_layer_params(key, hidden_size, intermediate_size):
    std = 0.02
    keys = jax.random.split(key, 10)
    H, I = hidden_size, intermediate_size
    n = jax.random.normal
    return {
        "wq": n(keys[0], (H, H), jnp.float32) * std,
        "bq": n(keys[1], (1, H), jnp.float32) * std,
        "wk": n(keys[2], (H, H), jnp.float32) * std,
        "bk": n(keys[3], (1, H), jnp.float32) * std,
        "wv": n(keys[4], (H, H), jnp.float32) * std,
        "bv": n(keys[5], (1, H), jnp.float32) * std,
        "wo": n(keys[6], (H, H), jnp.float32) * std,
        "bo": jnp.zeros((1, H), jnp.float32),
        "ln1_g": jnp.ones((1, H), jnp.float32),
        "ln1_b": jnp.zeros((1, H), jnp.float32),
        "wi": n(keys[7], (H, I), jnp.float32) * std,
        "bi": jnp.zeros((1, I), jnp.float32),
        "wo2": n(keys[8], (I, H), jnp.float32) * std,
        "bo2": jnp.zeros((1, H), jnp.float32),
        "ln2_g": jnp.ones((1, H), jnp.float32),
        "ln2_b": jnp.zeros((1, H), jnp.float32),
    }


def _reference_encoder(tok_h, tok_mask, ent_h, ent_mask, layer_params, num_heads):
    """Pure-JAX f32 reference (mirrors HF BertAttention/Intermediate/Output)."""
    def layer(tok_h, ent_h, p):
        H = tok_h.shape[-1]
        hd = H // num_heads

        def attn(q_in, kv_in, mask):
            q = q_in @ p["wq"] + p["bq"]
            k = kv_in @ p["wk"] + p["bk"]
            v = kv_in @ p["wv"] + p["bv"]
            B, Lq, Lk = q.shape[0], q.shape[1], k.shape[1]
            q = q.reshape(B, Lq, num_heads, hd).transpose(0, 2, 1, 3)
            k = k.reshape(B, Lk, num_heads, hd).transpose(0, 2, 1, 3)
            v = v.reshape(B, Lk, num_heads, hd).transpose(0, 2, 1, 3)
            s = q @ k.transpose(0, 1, 3, 2) / math.sqrt(hd) + mask[:, :, None, :]
            pr = jax.nn.softmax(s, axis=-1)
            return (pr @ v).transpose(0, 2, 1, 3).reshape(B, Lq, H)

        def block(q_in, kv_in, mask):
            a = attn(q_in, kv_in, mask) @ p["wo"] + p["bo"]
            a = _layer_norm(a + q_in, p["ln1_g"], p["ln1_b"])
            i = _gelu_exact(a @ p["wi"] + p["bi"])
            o = i @ p["wo2"] + p["bo2"]
            return _layer_norm(o + a, p["ln2_g"], p["ln2_b"])

        tok_out = block(tok_h, tok_h, tok_mask)
        ent_out = block(ent_h, jnp.concatenate([tok_h, ent_h], axis=1), ent_mask)
        return tok_out, ent_out

    for p in layer_params:
        tok_h, ent_h = layer(tok_h, ent_h, p)
    return tok_h, ent_h


if __name__ == "__main__":
    # Small synthetic config (production shapes want H a multiple of 128 and
    # Lt/Le multiples of 8/16 for lane-dense stores; this just checks behavior).
    B = 4
    L_TOK = 8
    L_ENT = 8
    HIDDEN = 32
    NUM_HEADS = 2
    INTERMEDIATE = 64
    NUM_LAYERS = 2

    root = jax.random.PRNGKey(0)
    k_tok, k_ent, k_params = jax.random.split(root, 3)

    tok_hidden = jax.random.normal(k_tok, (B, L_TOK, HIDDEN), jnp.float32)
    ent_hidden = jax.random.normal(k_ent, (B, L_ENT, HIDDEN), jnp.float32)

    # Additive masks: 0 = attend, -1e4 = masked (HF convention).
    tok_mask = jnp.zeros((B, 1, L_TOK), jnp.float32)
    tok_mask = tok_mask.at[1, 0, -2:].set(-10000.0)
    ent_mask = jnp.zeros((B, 1, L_TOK + L_ENT), jnp.float32)
    ent_mask = ent_mask.at[0, 0, -1:].set(-10000.0)

    layer_params = [
        init_layer_params(k, HIDDEN, INTERMEDIATE)
        for k in jax.random.split(k_params, NUM_LAYERS)
    ]

    encoder = jax.jit(functools.partial(table_encoder_simple, num_heads=NUM_HEADS))
    (tok_out,), (ent_out,) = encoder(
        tok_hidden, tok_mask, ent_hidden, ent_mask, layer_params)
    tok_out = jax.block_until_ready(tok_out)
    ent_out = jax.block_until_ready(ent_out)

    assert tok_out.shape == (B, L_TOK, HIDDEN)
    assert ent_out.shape == (B, L_ENT, HIDDEN)
    assert bool(jnp.all(jnp.isfinite(tok_out))) and bool(jnp.all(jnp.isfinite(ent_out)))

    # Loose-tolerance check vs an f32 pure-JAX reference (the kernel uses bf16
    # MXU inputs + an approx softmax reciprocal, so exact equality is not
    # expected; ~1e-2-class deviations are acceptable for inference).
    ref_tok, ref_ent = jax.jit(
        functools.partial(_reference_encoder, num_heads=NUM_HEADS))(
        tok_hidden, tok_mask, ent_hidden, ent_mask, layer_params)
    tok_err = float(jnp.max(jnp.abs(tok_out - ref_tok)))
    ent_err = float(jnp.max(jnp.abs(ent_out - ref_ent)))
    assert tok_err < 0.1 and ent_err < 0.1, (tok_err, ent_err)

    print("KERNEL_OK")
</pallas_src>

<mosaic_0001>
module attributes {stable_mosaic.version = 11 : i64} {
  func.func @table_layer_kernel(%arg0: i32, %arg1: memref<2x8x32xf32, #tpu.memory_space<vmem>>, %arg2: memref<2x8x32xf32, #tpu.memory_space<vmem>>, %arg3: memref<2x1x8xf32, #tpu.memory_space<vmem>>, %arg4: memref<2x1x16xf32, #tpu.memory_space<vmem>>, %arg5: memref<32x32xbf16, #tpu.memory_space<vmem>>, %arg6: memref<32x32xbf16, #tpu.memory_space<vmem>>, %arg7: memref<32x32xbf16, #tpu.memory_space<vmem>>, %arg8: memref<32x32xbf16, #tpu.memory_space<vmem>>, %arg9: memref<32x64xbf16, #tpu.memory_space<vmem>>, %arg10: memref<64x32xbf16, #tpu.memory_space<vmem>>, %arg11: memref<10x64xf32, #tpu.memory_space<vmem>>, %arg12: memref<2x8x32xf32, #tpu.memory_space<vmem>>, %arg13: memref<2x8x32xf32, #tpu.memory_space<vmem>>) attributes {dimension_semantics = [#tpu.dimension_semantics<parallel>], iteration_bounds = array<i64: 2>, scalar_prefetch = 0 : i64, scratch_operands = 0 : i64, tpu.core_type = #tpu.core_type<tc>, window_params = [{transform_indices = @transform_0, window_bounds = array<i64: 2, 8, 32>}, {transform_indices = @transform_1, window_bounds = array<i64: 2, 8, 32>}, {transform_indices = @transform_2, window_bounds = array<i64: 2, 1, 8>}, {transform_indices = @transform_3, window_bounds = array<i64: 2, 1, 16>}, {pipeline_mode = #tpu.pipeline_mode<synchronous>, transform_indices = @transform_4, window_bounds = array<i64: 32, 32>}, {pipeline_mode = #tpu.pipeline_mode<synchronous>, transform_indices = @transform_5, window_bounds = array<i64: 32, 32>}, {pipeline_mode = #tpu.pipeline_mode<synchronous>, transform_indices = @transform_6, window_bounds = array<i64: 32, 32>}, {pipeline_mode = #tpu.pipeline_mode<synchronous>, transform_indices = @transform_7, window_bounds = array<i64: 32, 32>}, {pipeline_mode = #tpu.pipeline_mode<synchronous>, transform_indices = @transform_8, window_bounds = array<i64: 32, 64>}, {pipeline_mode = #tpu.pipeline_mode<synchronous>, transform_indices = @transform_9, window_bounds = array<i64: 64, 32>}, {pipeline_mode = #tpu.pipeline_mode<synchronous>, transform_indices = @transform_10, window_bounds = array<i64: 10, 64>}, {transform_indices = @transform_11, window_bounds = array<i64: 2, 8, 32>}, {transform_indices = @transform_12, window_bounds = array<i64: 2, 8, 32>}]} {
    %c0 = arith.constant 0 : index
    %c0_0 = arith.constant 0 : index
    %0 = vector.load %arg11[%c0, %c0_0] : memref<10x64xf32, #tpu.memory_space<vmem>>, vector<10x64xf32>
    %1 = vector.extract_strided_slice %0 {offsets = [0, 0], sizes = [1, 32], strides = [1, 1]} : vector<10x64xf32> to vector<1x32xf32>
    %2 = vector.extract_strided_slice %0 {offsets = [1, 0], sizes = [1, 32], strides = [1, 1]} : vector<10x64xf32> to vector<1x32xf32>
    %3 = vector.extract_strided_slice %0 {offsets = [2, 0], sizes = [1, 32], strides = [1, 1]} : vector<10x64xf32> to vector<1x32xf32>
    %4 = vector.extract_strided_slice %0 {offsets = [3, 0], sizes = [1, 32], strides = [1, 1]} : vector<10x64xf32> to vector<1x32xf32>
    %5 = vector.extract_strided_slice %0 {offsets = [4, 0], sizes = [1, 32], strides = [1, 1]} : vector<10x64xf32> to vector<1x32xf32>
    %6 = vector.extract_strided_slice %0 {offsets = [5, 0], sizes = [1, 32], strides = [1, 1]} : vector<10x64xf32> to vector<1x32xf32>
    %7 = vector.extract_strided_slice %0 {offsets = [6, 0], sizes = [1, 64], strides = [1, 1]} : vector<10x64xf32> to vector<1x64xf32>
    %8 = vector.extract_strided_slice %0 {offsets = [7, 0], sizes = [1, 32], strides = [1, 1]} : vector<10x64xf32> to vector<1x32xf32>
    %9 = vector.extract_strided_slice %0 {offsets = [8, 0], sizes = [1, 32], strides = [1, 1]} : vector<10x64xf32> to vector<1x32xf32>
    %10 = vector.extract_strided_slice %0 {offsets = [9, 0], sizes = [1, 32], strides = [1, 1]} : vector<10x64xf32> to vector<1x32xf32>
    %c0_1 = arith.constant 0 : index
    %c0_2 = arith.constant 0 : index
    %c0_3 = arith.constant 0 : index
    %11 = vector.load %arg1[%c0_1, %c0_2, %c0_3] : memref<2x8x32xf32, #tpu.memory_space<vmem>>, vector<2x8x32xf32>
    %c0_4 = arith.constant 0 : index
    %c0_5 = arith.constant 0 : index
    %c0_6 = arith.constant 0 : index
    %12 = vector.load %arg2[%c0_4, %c0_5, %c0_6] : memref<2x8x32xf32, #tpu.memory_space<vmem>>, vector<2x8x32xf32>
    %c0_7 = arith.constant 0 : index
    %c0_8 = arith.constant 0 : index
    %c0_9 = arith.constant 0 : index
    %13 = vector.load %arg3[%c0_7, %c0_8, %c0_9] : memref<2x1x8xf32, #tpu.memory_space<vmem>>, vector<2x1x8xf32>
    %c0_10 = arith.constant 0 : index
    %c0_11 = arith.constant 0 : index
    %c0_12 = arith.constant 0 : index
    %14 = vector.load %arg4[%c0_10, %c0_11, %c0_12] : memref<2x1x16xf32, #tpu.memory_space<vmem>>, vector<2x1x16xf32>
    %15 = vector.shape_cast %11 : vector<2x8x32xf32> to vector<16x32xf32>
    %16 = arith.truncf %15 : vector<16x32xf32> to vector<16x32xbf16>
    %17 = vector.shape_cast %12 : vector<2x8x32xf32> to vector<16x32xf32>
    %18 = arith.truncf %17 : vector<16x32xf32> to vector<16x32xbf16>
    %19 = tpu.concatenate %16, %18 in 0 : vector<16x32xbf16>, vector<16x32xbf16> -> vector<32x32xbf16>
    %c0_13 = arith.constant 0 : index
    %c0_14 = arith.constant 0 : index
    %20 = vector.load %arg5[%c0_13, %c0_14] : memref<32x32xbf16, #tpu.memory_space<vmem>>, vector<32x32xbf16>
    %cst = arith.constant dense<0.000000e+00> : vector<32x32xf32>
    %21 = tpu.matmul %19, %20, %cst {dimension_numbers = #tpu.dot_dimension_numbers<[1], [0], [0], [1], [0, 0, 1, 1], [], []>} : vector<32x32xbf16>, vector<32x32xbf16>, vector<32x32xf32> -> vector<32x32xf32>
    %22 = vector.broadcast %1 : vector<1x32xf32> to vector<32x32xf32>
    %23 = arith.addf %21, %22 : vector<32x32xf32>
    %cst_15 = arith.constant 2.500000e-01 : f32
    %24 = vector.broadcast %cst_15 : f32 to vector<32x32xf32>
    %25 = arith.mulf %23, %24 : vector<32x32xf32>
    %c0_16 = arith.constant 0 : index
    %c0_17 = arith.constant 0 : index
    %26 = vector.load %arg6[%c0_16, %c0_17] : memref<32x32xbf16, #tpu.memory_space<vmem>>, vector<32x32xbf16>
    %cst_18 = arith.constant dense<0.000000e+00> : vector<32x32xf32>
    %27 = tpu.matmul %19, %26, %cst_18 {dimension_numbers = #tpu.dot_dimension_numbers<[1], [0], [0], [1], [0, 0, 1, 1], [], []>} : vector<32x32xbf16>, vector<32x32xbf16>, vector<32x32xf32> -> vector<32x32xf32>
    %28 = vector.broadcast %2 : vector<1x32xf32> to vector<32x32xf32>
    %29 = arith.addf %27, %28 : vector<32x32xf32>
    %c0_19 = arith.constant 0 : index
    %c0_20 = arith.constant 0 : index
    %30 = vector.load %arg7[%c0_19, %c0_20] : memref<32x32xbf16, #tpu.memory_space<vmem>>, vector<32x32xbf16>
    %cst_21 = arith.constant dense<0.000000e+00> : vector<32x32xf32>
    %31 = tpu.matmul %19, %30, %cst_21 {dimension_numbers = #tpu.dot_dimension_numbers<[1], [0], [0], [1], [0, 0, 1, 1], [], []>} : vector<32x32xbf16>, vector<32x32xbf16>, vector<32x32xf32> -> vector<32x32xf32>
    %32 = vector.broadcast %3 : vector<1x32xf32> to vector<32x32xf32>
    %33 = arith.addf %31, %32 : vector<32x32xf32>
    %34 = vector.extract_strided_slice %25 {offsets = [0, 0], sizes = [16, 32], strides = [1, 1]} : vector<32x32xf32> to vector<16x32xf32>
    %35 = vector.shape_cast %34 : vector<16x32xf32> to vector<2x8x2x16xf32>
    %36 = arith.truncf %35 : vector<2x8x2x16xf32> to vector<2x8x2x16xbf16>
    %37 = tpu.transpose %36, [0, 2, 1, 3] : vector<2x8x2x16xbf16> -> vector<2x2x8x16xbf16>
    %38 = vector.shape_cast %37 : vector<2x2x8x16xbf16> to vector<4x8x16xbf16>
    %39 = vector.extract_strided_slice %25 {offsets = [16, 0], sizes = [16, 32], strides = [1, 1]} : vector<32x32xf32> to vector<16x32xf32>
    %40 = vector.shape_cast %39 : vector<16x32xf32> to vector<2x8x2x16xf32>
    %41 = arith.truncf %40 : vector<2x8x2x16xf32> to vector<2x8x2x16xbf16>
    %42 = tpu.transpose %41, [0, 2, 1, 3] : vector<2x8x2x16xbf16> -> vector<2x2x8x16xbf16>
    %43 = vector.shape_cast %42 : vector<2x2x8x16xbf16> to vector<4x8x16xbf16>
    %44 = vector.extract_strided_slice %29 {offsets = [0, 0], sizes = [16, 32], strides = [1, 1]} : vector<32x32xf32> to vector<16x32xf32>
    %45 = vector.shape_cast %44 : vector<16x32xf32> to vector<2x8x2x16xf32>
    %46 = arith.truncf %45 : vector<2x8x2x16xf32> to vector<2x8x2x16xbf16>
    %47 = tpu.transpose %46, [0, 2, 1, 3] : vector<2x8x2x16xbf16> -> vector<2x2x8x16xbf16>
    %48 = vector.shape_cast %47 : vector<2x2x8x16xbf16> to vector<4x8x16xbf16>
    %49 = vector.extract_strided_slice %29 {offsets = [16, 0], sizes = [16, 32], strides = [1, 1]} : vector<32x32xf32> to vector<16x32xf32>
    %50 = vector.shape_cast %49 : vector<16x32xf32> to vector<2x8x2x16xf32>
    %51 = arith.truncf %50 : vector<2x8x2x16xf32> to vector<2x8x2x16xbf16>
    %52 = tpu.transpose %51, [0, 2, 1, 3] : vector<2x8x2x16xbf16> -> vector<2x2x8x16xbf16>
    %53 = vector.shape_cast %52 : vector<2x2x8x16xbf16> to vector<4x8x16xbf16>
    %54 = vector.extract_strided_slice %33 {offsets = [0, 0], sizes = [16, 32], strides = [1, 1]} : vector<32x32xf32> to vector<16x32xf32>
    %55 = vector.shape_cast %54 : vector<16x32xf32> to vector<2x8x2x16xf32>
    %56 = arith.truncf %55 : vector<2x8x2x16xf32> to vector<2x8x2x16xbf16>
    %57 = tpu.transpose %56, [0, 2, 1, 3] : vector<2x8x2x16xbf16> -> vector<2x2x8x16xbf16>
    %58 = vector.shape_cast %57 : vector<2x2x8x16xbf16> to vector<4x8x16xbf16>
    %59 = vector.extract_strided_slice %33 {offsets = [16, 0], sizes = [16, 32], strides = [1, 1]} : vector<32x32xf32> to vector<16x32xf32>
    %60 = vector.shape_cast %59 : vector<16x32xf32> to vector<2x8x2x16xf32>
    %61 = arith.truncf %60 : vector<2x8x2x16xf32> to vector<2x8x2x16xbf16>
    %62 = tpu.transpose %61, [0, 2, 1, 3] : vector<2x8x2x16xbf16> -> vector<2x2x8x16xbf16>
    %63 = vector.shape_cast %62 : vector<2x2x8x16xbf16> to vector<4x8x16xbf16>
    %64 = tpu.concatenate %48, %53 in 1 : vector<4x8x16xbf16>, vector<4x8x16xbf16> -> vector<4x16x16xbf16>
    %65 = tpu.concatenate %58, %63 in 1 : vector<4x8x16xbf16>, vector<4x8x16xbf16> -> vector<4x16x16xbf16>
    "tpu.trace_start"() <{level = 10 : i32, message = "nqd,nkd->nqk"}> : () -> ()
    %cst_22 = arith.constant dense<0.000000e+00> : vector<4x8x8xf32>
    %66 = tpu.matmul %38, %48, %cst_22 {dimension_numbers = #tpu.dot_dimension_numbers<[2], [2], [1], [1], [0, 0, 0, 1, 1, 1], [0], [0]>} : vector<4x8x16xbf16>, vector<4x8x16xbf16>, vector<4x8x8xf32> -> vector<4x8x8xf32>
    "tpu.trace_stop"() : () -> ()
    %67 = vector.shape_cast %66 : vector<4x8x8xf32> to vector<2x2x8x8xf32>
    %68 = vector.shape_cast %13 : vector<2x1x8xf32> to vector<2x1x1x8xf32>
    %69 = vector.broadcast %68 : vector<2x1x1x8xf32> to vector<2x2x8x8xf32>
    %70 = arith.addf %67, %69 : vector<2x2x8x8xf32>
    %cst_23 = arith.constant dense<0xFF800000> : vector<2x2x8xf32>
    %71 = vector.multi_reduction <maximumf>, %70, %cst_23 [3] : vector<2x2x8x8xf32> to vector<2x2x8xf32>
    %72 = vector.shape_cast %71 : vector<2x2x8xf32> to vector<2x2x8x1xf32>
    %73 = vector.broadcast %72 : vector<2x2x8x1xf32> to vector<2x2x8x8xf32>
    %74 = arith.subf %70, %73 : vector<2x2x8x8xf32>
    %75 = math.exp %74 : vector<2x2x8x8xf32>
    %cst_24 = arith.constant dense<0.000000e+00> : vector<2x2x8xf32>
    %76 = vector.multi_reduction <add>, %75, %cst_24 [3] : vector<2x2x8x8xf32> to vector<2x2x8xf32>
    %77 = vector.shape_cast %76 : vector<2x2x8xf32> to vector<2x2x8x1xf32>
    %78 = tpu.reciprocal %77 {approx = true} : vector<2x2x8x1xf32> -> vector<2x2x8x1xf32>
    %79 = vector.broadcast %78 : vector<2x2x8x1xf32> to vector<2x2x8x8xf32>
    %80 = arith.mulf %75, %79 : vector<2x2x8x8xf32>
    %81 = vector.shape_cast %80 : vector<2x2x8x8xf32> to vector<4x8x8xf32>
    %82 = arith.truncf %81 : vector<4x8x8xf32> to vector<4x8x8xbf16>
    "tpu.trace_start"() <{level = 10 : i32, message = "nqk,nkd->nqd"}> : () -> ()
    %cst_25 = arith.constant dense<0.000000e+00> : vector<4x8x16xf32>
    %83 = tpu.matmul %82, %58, %cst_25 {dimension_numbers = #tpu.dot_dimension_numbers<[2], [1], [1], [2], [0, 0, 0, 1, 1, 2], [0], [0]>} : vector<4x8x8xbf16>, vector<4x8x16xbf16>, vector<4x8x16xf32> -> vector<4x8x16xf32>
    "tpu.trace_stop"() : () -> ()
    %84 = vector.shape_cast %83 : vector<4x8x16xf32> to vector<2x2x8x16xf32>
    %85 = tpu.transpose %84, [0, 2, 1, 3] : vector<2x2x8x16xf32> -> vector<2x8x2x16xf32>
    %86 = vector.shape_cast %85 : vector<2x8x2x16xf32> to vector<16x32xf32>
    %87 = vector.shape_cast %11 : vector<2x8x32xf32> to vector<16x32xf32>
    %88 = arith.truncf %86 : vector<16x32xf32> to vector<16x32xbf16>
    %c0_26 = arith.constant 0 : index
    %c0_27 = arith.constant 0 : index
    %89 = vector.load %arg8[%c0_26, %c0_27] : memref<32x32xbf16, #tpu.memory_space<vmem>>, vector<32x32xbf16>
    %cst_28 = arith.constant dense<0.000000e+00> : vector<16x32xf32>
    %90 = tpu.matmul %88, %89, %cst_28 {dimension_numbers = #tpu.dot_dimension_numbers<[1], [0], [0], [1], [0, 0, 1, 1], [], []>} : vector<16x32xbf16>, vector<32x32xbf16>, vector<16x32xf32> -> vector<16x32xf32>
    %91 = vector.broadcast %4 : vector<1x32xf32> to vector<16x32xf32>
    %92 = arith.addf %90, %91 : vector<16x32xf32>
    %93 = arith.addf %92, %87 : vector<16x32xf32>
    %cst_29 = arith.constant dense<0.000000e+00> : vector<16xf32>
    %94 = vector.multi_reduction <add>, %93, %cst_29 [1] : vector<16x32xf32> to vector<16xf32>
    %95 = vector.shape_cast %94 : vector<16xf32> to vector<16x1xf32>
    %cst_30 = arith.constant 3.200000e+01 : f32
    %96 = vector.broadcast %cst_30 : f32 to vector<16x1xf32>
    %97 = arith.divf %95, %96 : vector<16x1xf32>
    %98 = vector.broadcast %97 : vector<16x1xf32> to vector<16x32xf32>
    %99 = arith.subf %93, %98 : vector<16x32xf32>
    %100 = arith.mulf %99, %99 : vector<16x32xf32>
    %cst_31 = arith.constant dense<0.000000e+00> : vector<16xf32>
    %101 = vector.multi_reduction <add>, %100, %cst_31 [1] : vector<16x32xf32> to vector<16xf32>
    %102 = vector.shape_cast %101 : vector<16xf32> to vector<16x1xf32>
    %cst_32 = arith.constant 3.200000e+01 : f32
    %103 = vector.broadcast %cst_32 : f32 to vector<16x1xf32>
    %104 = arith.divf %102, %103 : vector<16x1xf32>
    %105 = vector.broadcast %97 : vector<16x1xf32> to vector<16x32xf32>
    %106 = arith.subf %93, %105 : vector<16x32xf32>
    %cst_33 = arith.constant 9.99999996E-13 : f32
    %107 = vector.broadcast %cst_33 : f32 to vector<16x1xf32>
    %108 = arith.addf %104, %107 : vector<16x1xf32>
    %109 = math.rsqrt %108 : vector<16x1xf32>
    %110 = vector.broadcast %109 : vector<16x1xf32> to vector<16x32xf32>
    %111 = arith.mulf %106, %110 : vector<16x32xf32>
    %112 = vector.broadcast %5 : vector<1x32xf32> to vector<16x32xf32>
    %113 = arith.mulf %111, %112 : vector<16x32xf32>
    %114 = vector.broadcast %6 : vector<1x32xf32> to vector<16x32xf32>
    %115 = arith.addf %113, %114 : vector<16x32xf32>
    %116 = arith.truncf %115 : vector<16x32xf32> to vector<16x32xbf16>
    %c0_34 = arith.constant 0 : index
    %c0_35 = arith.constant 0 : index
    %117 = vector.load %arg9[%c0_34, %c0_35] : memref<32x64xbf16, #tpu.memory_space<vmem>>, vector<32x64xbf16>
    %cst_36 = arith.constant dense<0.000000e+00> : vector<16x64xf32>
    %118 = tpu.matmul %116, %117, %cst_36 {dimension_numbers = #tpu.dot_dimension_numbers<[1], [0], [0], [1], [0, 0, 1, 1], [], []>} : vector<16x32xbf16>, vector<32x64xbf16>, vector<16x64xf32> -> vector<16x64xf32>
    %119 = vector.broadcast %7 : vector<1x64xf32> to vector<16x64xf32>
    %120 = arith.addf %118, %119 : vector<16x64xf32>
    %cst_37 = arith.constant 5.000000e-01 : f32
    %121 = vector.broadcast %cst_37 : f32 to vector<16x64xf32>
    %122 = arith.mulf %121, %120 : vector<16x64xf32>
    %cst_38 = arith.constant 0.707106769 : f32
    %123 = vector.broadcast %cst_38 : f32 to vector<16x64xf32>
    %124 = arith.mulf %120, %123 : vector<16x64xf32>
    %125 = math.erf %124 : vector<16x64xf32>
    %cst_39 = arith.constant 1.000000e+00 : f32
    %126 = vector.broadcast %cst_39 : f32 to vector<16x64xf32>
    %127 = arith.addf %126, %125 : vector<16x64xf32>
    %128 = arith.mulf %122, %127 : vector<16x64xf32>
    %129 = arith.truncf %128 : vector<16x64xf32> to vector<16x64xbf16>
    %c0_40 = arith.constant 0 : index
    %c0_41 = arith.constant 0 : index
    %130 = vector.load %arg10[%c0_40, %c0_41] : memref<64x32xbf16, #tpu.memory_space<vmem>>, vector<64x32xbf16>
    %cst_42 = arith.constant dense<0.000000e+00> : vector<16x32xf32>
    %131 = tpu.matmul %129, %130, %cst_42 {dimension_numbers = #tpu.dot_dimension_numbers<[1], [0], [0], [1], [0, 0, 1, 1], [], []>} : vector<16x64xbf16>, vector<64x32xbf16>, vector<16x32xf32> -> vector<16x32xf32>
    %132 = vector.broadcast %8 : vector<1x32xf32> to vector<16x32xf32>
    %133 = arith.addf %131, %132 : vector<16x32xf32>
    %134 = arith.addf %133, %115 : vector<16x32xf32>
    %cst_43 = arith.constant dense<0.000000e+00> : vector<16xf32>
    %135 = vector.multi_reduction <add>, %134, %cst_43 [1] : vector<16x32xf32> to vector<16xf32>
    %136 = vector.shape_cast %135 : vector<16xf32> to vector<16x1xf32>
    %cst_44 = arith.constant 3.200000e+01 : f32
    %137 = vector.broadcast %cst_44 : f32 to vector<16x1xf32>
    %138 = arith.divf %136, %137 : vector<16x1xf32>
    %139 = vector.broadcast %138 : vector<16x1xf32> to vector<16x32xf32>
    %140 = arith.subf %134, %139 : vector<16x32xf32>
    %141 = arith.mulf %140, %140 : vector<16x32xf32>
    %cst_45 = arith.constant dense<0.000000e+00> : vector<16xf32>
    %142 = vector.multi_reduction <add>, %141, %cst_45 [1] : vector<16x32xf32> to vector<16xf32>
    %143 = vector.shape_cast %142 : vector<16xf32> to vector<16x1xf32>
    %cst_46 = arith.constant 3.200000e+01 : f32
    %144 = vector.broadcast %cst_46 : f32 to vector<16x1xf32>
    %145 = arith.divf %143, %144 : vector<16x1xf32>
    %146 = vector.broadcast %138 : vector<16x1xf32> to vector<16x32xf32>
    %147 = arith.subf %134, %146 : vector<16x32xf32>
    %cst_47 = arith.constant 9.99999996E-13 : f32
    %148 = vector.broadcast %cst_47 : f32 to vector<16x1xf32>
    %149 = arith.addf %145, %148 : vector<16x1xf32>
    %150 = math.rsqrt %149 : vector<16x1xf32>
    %151 = vector.broadcast %150 : vector<16x1xf32> to vector<16x32xf32>
    %152 = arith.mulf %147, %151 : vector<16x32xf32>
    %153 = vector.broadcast %9 : vector<1x32xf32> to vector<16x32xf32>
    %154 = arith.mulf %152, %153 : vector<16x32xf32>
    %155 = vector.broadcast %10 : vector<1x32xf32> to vector<16x32xf32>
    %156 = arith.addf %154, %155 : vector<16x32xf32>
    "tpu.trace_start"() <{level = 10 : i32, message = "nqd,nkd->nqk"}> : () -> ()
    %cst_48 = arith.constant dense<0.000000e+00> : vector<4x8x16xf32>
    %157 = tpu.matmul %43, %64, %cst_48 {dimension_numbers = #tpu.dot_dimension_numbers<[2], [2], [1], [1], [0, 0, 0, 1, 1, 1], [0], [0]>} : vector<4x8x16xbf16>, vector<4x16x16xbf16>, vector<4x8x16xf32> -> vector<4x8x16xf32>
    "tpu.trace_stop"() : () -> ()
    %158 = vector.shape_cast %157 : vector<4x8x16xf32> to vector<2x2x8x16xf32>
    %159 = vector.shape_cast %14 : vector<2x1x16xf32> to vector<2x1x1x16xf32>
    %160 = vector.broadcast %159 : vector<2x1x1x16xf32> to vector<2x2x8x16xf32>
    %161 = arith.addf %158, %160 : vector<2x2x8x16xf32>
    %cst_49 = arith.constant dense<0xFF800000> : vector<2x2x8xf32>
    %162 = vector.multi_reduction <maximumf>, %161, %cst_49 [3] : vector<2x2x8x16xf32> to vector<2x2x8xf32>
    %163 = vector.shape_cast %162 : vector<2x2x8xf32> to vector<2x2x8x1xf32>
    %164 = vector.broadcast %163 : vector<2x2x8x1xf32> to vector<2x2x8x16xf32>
    %165 = arith.subf %161, %164 : vector<2x2x8x16xf32>
    %166 = math.exp %165 : vector<2x2x8x16xf32>
    %cst_50 = arith.constant dense<0.000000e+00> : vector<2x2x8xf32>
    %167 = vector.multi_reduction <add>, %166, %cst_50 [3] : vector<2x2x8x16xf32> to vector<2x2x8xf32>
    %168 = vector.shape_cast %167 : vector<2x2x8xf32> to vector<2x2x8x1xf32>
    %169 = tpu.reciprocal %168 {approx = true} : vector<2x2x8x1xf32> -> vector<2x2x8x1xf32>
    %170 = vector.broadcast %169 : vector<2x2x8x1xf32> to vector<2x2x8x16xf32>
    %171 = arith.mulf %166, %170 : vector<2x2x8x16xf32>
    %172 = vector.shape_cast %171 : vector<2x2x8x16xf32> to vector<4x8x16xf32>
    %173 = arith.truncf %172 : vector<4x8x16xf32> to vector<4x8x16xbf16>
    "tpu.trace_start"() <{level = 10 : i32, message = "nqk,nkd->nqd"}> : () -> ()
    %cst_51 = arith.constant dense<0.000000e+00> : vector<4x8x16xf32>
    %174 = tpu.matmul %173, %65, %cst_51 {dimension_numbers = #tpu.dot_dimension_numbers<[2], [1], [1], [2], [0, 0, 0, 1, 1, 2], [0], [0]>} : vector<4x8x16xbf16>, vector<4x16x16xbf16>, vector<4x8x16xf32> -> vector<4x8x16xf32>
    "tpu.trace_stop"() : () -> ()
    %175 = vector.shape_cast %174 : vector<4x8x16xf32> to vector<2x2x8x16xf32>
    %176 = tpu.transpose %175, [0, 2, 1, 3] : vector<2x2x8x16xf32> -> vector<2x8x2x16xf32>
    %177 = vector.shape_cast %176 : vector<2x8x2x16xf32> to vector<16x32xf32>
    %178 = vector.shape_cast %12 : vector<2x8x32xf32> to vector<16x32xf32>
    %179 = arith.truncf %177 : vector<16x32xf32> to vector<16x32xbf16>
    %c0_52 = arith.constant 0 : index
    %c0_53 = arith.constant 0 : index
    %180 = vector.load %arg8[%c0_52, %c0_53] : memref<32x32xbf16, #tpu.memory_space<vmem>>, vector<32x32xbf16>
    %cst_54 = arith.constant dense<0.000000e+00> : vector<16x32xf32>
    %181 = tpu.matmul %179, %180, %cst_54 {dimension_numbers = #tpu.dot_dimension_numbers<[1], [0], [0], [1], [0, 0, 1, 1], [], []>} : vector<16x32xbf16>, vector<32x32xbf16>, vector<16x32xf32> -> vector<16x32xf32>
    %182 = vector.broadcast %4 : vector<1x32xf32> to vector<16x32xf32>
    %183 = arith.addf %181, %182 : vector<16x32xf32>
    %184 = arith.addf %183, %178 : vector<16x32xf32>
    %cst_55 = arith.constant dense<0.000000e+00> : vector<16xf32>
    %185 = vector.multi_reduction <add>, %184, %cst_55 [1] : vector<16x32xf32> to vector<16xf32>
    %186 = vector.shape_cast %185 : vector<16xf32> to vector<16x1xf32>
    %cst_56 = arith.constant 3.200000e+01 : f32
    %187 = vector.broadcast %cst_56 : f32 to vector<16x1xf32>
    %188 = arith.divf %186, %187 : vector<16x1xf32>
    %189 = vector.broadcast %188 : vector<16x1xf32> to vector<16x32xf32>
    %190 = arith.subf %184, %189 : vector<16x32xf32>
    %191 = arith.mulf %190, %190 : vector<16x32xf32>
    %cst_57 = arith.constant dense<0.000000e+00> : vector<16xf32>
    %192 = vector.multi_reduction <add>, %191, %cst_57 [1] : vector<16x32xf32> to vector<16xf32>
    %193 = vector.shape_cast %192 : vector<16xf32> to vector<16x1xf32>
    %cst_58 = arith.constant 3.200000e+01 : f32
    %194 = vector.broadcast %cst_58 : f32 to vector<16x1xf32>
    %195 = arith.divf %193, %194 : vector<16x1xf32>
    %196 = vector.broadcast %188 : vector<16x1xf32> to vector<16x32xf32>
    %197 = arith.subf %184, %196 : vector<16x32xf32>
    %cst_59 = arith.constant 9.99999996E-13 : f32
    %198 = vector.broadcast %cst_59 : f32 to vector<16x1xf32>
    %199 = arith.addf %195, %198 : vector<16x1xf32>
    %200 = math.rsqrt %199 : vector<16x1xf32>
    %201 = vector.broadcast %200 : vector<16x1xf32> to vector<16x32xf32>
    %202 = arith.mulf %197, %201 : vector<16x32xf32>
    %203 = vector.broadcast %5 : vector<1x32xf32> to vector<16x32xf32>
    %204 = arith.mulf %202, %203 : vector<16x32xf32>
    %205 = vector.broadcast %6 : vector<1x32xf32> to vector<16x32xf32>
    %206 = arith.addf %204, %205 : vector<16x32xf32>
    %207 = arith.truncf %206 : vector<16x32xf32> to vector<16x32xbf16>
    %c0_60 = arith.constant 0 : index
    %c0_61 = arith.constant 0 : index
    %208 = vector.load %arg9[%c0_60, %c0_61] : memref<32x64xbf16, #tpu.memory_space<vmem>>, vector<32x64xbf16>
    %cst_62 = arith.constant dense<0.000000e+00> : vector<16x64xf32>
    %209 = tpu.matmul %207, %208, %cst_62 {dimension_numbers = #tpu.dot_dimension_numbers<[1], [0], [0], [1], [0, 0, 1, 1], [], []>} : vector<16x32xbf16>, vector<32x64xbf16>, vector<16x64xf32> -> vector<16x64xf32>
    %210 = vector.broadcast %7 : vector<1x64xf32> to vector<16x64xf32>
    %211 = arith.addf %209, %210 : vector<16x64xf32>
    %cst_63 = arith.constant 5.000000e-01 : f32
    %212 = vector.broadcast %cst_63 : f32 to vector<16x64xf32>
    %213 = arith.mulf %212, %211 : vector<16x64xf32>
    %cst_64 = arith.constant 0.707106769 : f32
    %214 = vector.broadcast %cst_64 : f32 to vector<16x64xf32>
    %215 = arith.mulf %211, %214 : vector<16x64xf32>
    %216 = math.erf %215 : vector<16x64xf32>
    %cst_65 = arith.constant 1.000000e+00 : f32
    %217 = vector.broadcast %cst_65 : f32 to vector<16x64xf32>
    %218 = arith.addf %217, %216 : vector<16x64xf32>
    %219 = arith.mulf %213, %218 : vector<16x64xf32>
    %220 = arith.truncf %219 : vector<16x64xf32> to vector<16x64xbf16>
    %c0_66 = arith.constant 0 : index
    %c0_67 = arith.constant 0 : index
    %221 = vector.load %arg10[%c0_66, %c0_67] : memref<64x32xbf16, #tpu.memory_space<vmem>>, vector<64x32xbf16>
    %cst_68 = arith.constant dense<0.000000e+00> : vector<16x32xf32>
    %222 = tpu.matmul %220, %221, %cst_68 {dimension_numbers = #tpu.dot_dimension_numbers<[1], [0], [0], [1], [0, 0, 1, 1], [], []>} : vector<16x64xbf16>, vector<64x32xbf16>, vector<16x32xf32> -> vector<16x32xf32>
    %223 = vector.broadcast %8 : vector<1x32xf32> to vector<16x32xf32>
    %224 = arith.addf %222, %223 : vector<16x32xf32>
    %225 = arith.addf %224, %206 : vector<16x32xf32>
    %cst_69 = arith.constant dense<0.000000e+00> : vector<16xf32>
    %226 = vector.multi_reduction <add>, %225, %cst_69 [1] : vector<16x32xf32> to vector<16xf32>
    %227 = vector.shape_cast %226 : vector<16xf32> to vector<16x1xf32>
    %cst_70 = arith.constant 3.200000e+01 : f32
    %228 = vector.broadcast %cst_70 : f32 to vector<16x1xf32>
    %229 = arith.divf %227, %228 : vector<16x1xf32>
    %230 = vector.broadcast %229 : vector<16x1xf32> to vector<16x32xf32>
    %231 = arith.subf %225, %230 : vector<16x32xf32>
    %232 = arith.mulf %231, %231 : vector<16x32xf32>
    %cst_71 = arith.constant dense<0.000000e+00> : vector<16xf32>
    %233 = vector.multi_reduction <add>, %232, %cst_71 [1] : vector<16x32xf32> to vector<16xf32>
    %234 = vector.shape_cast %233 : vector<16xf32> to vector<16x1xf32>
    %cst_72 = arith.constant 3.200000e+01 : f32
    %235 = vector.broadcast %cst_72 : f32 to vector<16x1xf32>
    %236 = arith.divf %234, %235 : vector<16x1xf32>
    %237 = vector.broadcast %229 : vector<16x1xf32> to vector<16x32xf32>
    %238 = arith.subf %225, %237 : vector<16x32xf32>
    %cst_73 = arith.constant 9.99999996E-13 : f32
    %239 = vector.broadcast %cst_73 : f32 to vector<16x1xf32>
    %240 = arith.addf %236, %239 : vector<16x1xf32>
    %241 = math.rsqrt %240 : vector<16x1xf32>
    %242 = vector.broadcast %241 : vector<16x1xf32> to vector<16x32xf32>
    %243 = arith.mulf %238, %242 : vector<16x32xf32>
    %244 = vector.broadcast %9 : vector<1x32xf32> to vector<16x32xf32>
    %245 = arith.mulf %243, %244 : vector<16x32xf32>
    %246 = vector.broadcast %10 : vector<1x32xf32> to vector<16x32xf32>
    %247 = arith.addf %245, %246 : vector<16x32xf32>
    %248 = vector.shape_cast %156 : vector<16x32xf32> to vector<2x8x32xf32>
    %c0_74 = arith.constant 0 : index
    %c0_75 = arith.constant 0 : index
    %c0_76 = arith.constant 0 : index
    %249 = vector.load %arg12[%c0_74, %c0_75, %c0_76] : memref<2x8x32xf32, #tpu.memory_space<vmem>>, vector<2x8x32xf32>
    tpu.vector_store %arg12[%c0_74, %c0_75, %c0_76], %248 {strides = array<i32>} : memref<2x8x32xf32, #tpu.memory_space<vmem>>, vector<2x8x32xf32>,
    %250 = vector.shape_cast %247 : vector<16x32xf32> to vector<2x8x32xf32>
    %c0_77 = arith.constant 0 : index
    %c0_78 = arith.constant 0 : index
    %c0_79 = arith.constant 0 : index
    %251 = vector.load %arg13[%c0_77, %c0_78, %c0_79] : memref<2x8x32xf32, #tpu.memory_space<vmem>>, vector<2x8x32xf32>
    tpu.vector_store %arg13[%c0_77, %c0_78, %c0_79], %250 {strides = array<i32>} : memref<2x8x32xf32, #tpu.memory_space<vmem>>, vector<2x8x32xf32>,
    return
  }
  func.func @transform_0(%arg0: i32) -> (i32, i32, i32) {
    %c0_i32 = arith.constant 0 : i32
    %c0_i32_0 = arith.constant 0 : i32
    %c0_i32_1 = arith.constant 0 : i32
    return %arg0, %c0_i32, %c0_i32_0 : i32, i32, i32
  }
  func.func @transform_1(%arg0: i32) -> (i32, i32, i32) {
    %c0_i32 = arith.constant 0 : i32
    %c0_i32_0 = arith.constant 0 : i32
    %c0_i32_1 = arith.constant 0 : i32
    return %arg0, %c0_i32, %c0_i32_0 : i32, i32, i32
  }
  func.func @transform_2(%arg0: i32) -> (i32, i32, i32) {
    %c0_i32 = arith.constant 0 : i32
    %c0_i32_0 = arith.constant 0 : i32
    %c0_i32_1 = arith.constant 0 : i32
    return %arg0, %c0_i32, %c0_i32_0 : i32, i32, i32
  }
  func.func @transform_3(%arg0: i32) -> (i32, i32, i32) {
    %c0_i32 = arith.constant 0 : i32
    %c0_i32_0 = arith.constant 0 : i32
    %c0_i32_1 = arith.constant 0 : i32
    return %arg0, %c0_i32, %c0_i32_0 : i32, i32, i32
  }
  func.func @transform_4(%arg0: i32) -> (i32, i32) {
    %c0_i32 = arith.constant 0 : i32
    %c0_i32_0 = arith.constant 0 : i32
    %c0_i32_1 = arith.constant 0 : i32
    return %c0_i32, %c0_i32_0 : i32, i32
  }
  func.func @transform_5(%arg0: i32) -> (i32, i32) {
    %c0_i32 = arith.constant 0 : i32
    %c0_i32_0 = arith.constant 0 : i32
    %c0_i32_1 = arith.constant 0 : i32
    return %c0_i32, %c0_i32_0 : i32, i32
  }
  func.func @transform_6(%arg0: i32) -> (i32, i32) {
    %c0_i32 = arith.constant 0 : i32
    %c0_i32_0 = arith.constant 0 : i32
    %c0_i32_1 = arith.constant 0 : i32
    return %c0_i32, %c0_i32_0 : i32, i32
  }
  func.func @transform_7(%arg0: i32) -> (i32, i32) {
    %c0_i32 = arith.constant 0 : i32
    %c0_i32_0 = arith.constant 0 : i32
    %c0_i32_1 = arith.constant 0 : i32
    return %c0_i32, %c0_i32_0 : i32, i32
  }
  func.func @transform_8(%arg0: i32) -> (i32, i32) {
    %c0_i32 = arith.constant 0 : i32
    %c0_i32_0 = arith.constant 0 : i32
    %c0_i32_1 = arith.constant 0 : i32
    return %c0_i32, %c0_i32_0 : i32, i32
  }
  func.func @transform_9(%arg0: i32) -> (i32, i32) {
    %c0_i32 = arith.constant 0 : i32
    %c0_i32_0 = arith.constant 0 : i32
    %c0_i32_1 = arith.constant 0 : i32
    return %c0_i32, %c0_i32_0 : i32, i32
  }
  func.func @transform_10(%arg0: i32) -> (i32, i32) {
    %c0_i32 = arith.constant 0 : i32
    %c0_i32_0 = arith.constant 0 : i32
    %c0_i32_1 = arith.constant 0 : i32
    return %c0_i32, %c0_i32_0 : i32, i32
  }
  func.func @transform_11(%arg0: i32) -> (i32, i32, i32) {
    %c0_i32 = arith.constant 0 : i32
    %c0_i32_0 = arith.constant 0 : i32
    %c0_i32_1 = arith.constant 0 : i32
    return %arg0, %c0_i32, %c0_i32_0 : i32, i32, i32
  }
  func.func @transform_12(%arg0: i32) -> (i32, i32, i32) {
    %c0_i32 = arith.constant 0 : i32
    %c0_i32_0 = arith.constant 0 : i32
    %c0_i32_1 = arith.constant 0 : i32
    return %arg0, %c0_i32, %c0_i32_0 : i32, i32, i32
  }
}

module attributes {stable_mosaic.version = 11 : i64} {
  func.func @table_layer_kernel(%arg0: i32, %arg1: memref<2x8x32xf32, #tpu.memory_space<vmem>>, %arg2: memref<2x8x32xf32, #tpu.memory_space<vmem>>, %arg3: memref<2x1x8xf32, #tpu.memory_space<vmem>>, %arg4: memref<2x1x16xf32, #tpu.memory_space<vmem>>, %arg5: memref<32x32xbf16, #tpu.memory_space<vmem>>, %arg6: memref<32x32xbf16, #tpu.memory_space<vmem>>, %arg7: memref<32x32xbf16, #tpu.memory_space<vmem>>, %arg8: memref<32x32xbf16, #tpu.memory_space<vmem>>, %arg9: memref<32x64xbf16, #tpu.memory_space<vmem>>, %arg10: memref<64x32xbf16, #tpu.memory_space<vmem>>, %arg11: memref<10x64xf32, #tpu.memory_space<vmem>>, %arg12: memref<2x8x32xf32, #tpu.memory_space<vmem>>, %arg13: memref<2x8x32xf32, #tpu.memory_space<vmem>>) attributes {dimension_semantics = [#tpu.dimension_semantics<parallel>], iteration_bounds = array<i64: 2>, scalar_prefetch = 0 : i64, scratch_operands = 0 : i64, tpu.core_type = #tpu.core_type<tc>, window_params = [{transform_indices = @transform_0, window_bounds = array<i64: 2, 8, 32>}, {transform_indices = @transform_1, window_bounds = array<i64: 2, 8, 32>}, {transform_indices = @transform_2, window_bounds = array<i64: 2, 1, 8>}, {transform_indices = @transform_3, window_bounds = array<i64: 2, 1, 16>}, {pipeline_mode = #tpu.pipeline_mode<synchronous>, transform_indices = @transform_4, window_bounds = array<i64: 32, 32>}, {pipeline_mode = #tpu.pipeline_mode<synchronous>, transform_indices = @transform_5, window_bounds = array<i64: 32, 32>}, {pipeline_mode = #tpu.pipeline_mode<synchronous>, transform_indices = @transform_6, window_bounds = array<i64: 32, 32>}, {pipeline_mode = #tpu.pipeline_mode<synchronous>, transform_indices = @transform_7, window_bounds = array<i64: 32, 32>}, {pipeline_mode = #tpu.pipeline_mode<synchronous>, transform_indices = @transform_8, window_bounds = array<i64: 32, 64>}, {pipeline_mode = #tpu.pipeline_mode<synchronous>, transform_indices = @transform_9, window_bounds = array<i64: 64, 32>}, {pipeline_mode = #tpu.pipeline_mode<synchronous>, transform_indices = @transform_10, window_bounds = array<i64: 10, 64>}, {transform_indices = @transform_11, window_bounds = array<i64: 2, 8, 32>}, {transform_indices = @transform_12, window_bounds = array<i64: 2, 8, 32>}]} {
    %c0 = arith.constant 0 : index
    %c0_0 = arith.constant 0 : index
    %0 = vector.load %arg11[%c0, %c0_0] : memref<10x64xf32, #tpu.memory_space<vmem>>, vector<10x64xf32>
    %1 = vector.extract_strided_slice %0 {offsets = [0, 0], sizes = [1, 32], strides = [1, 1]} : vector<10x64xf32> to vector<1x32xf32>
    %2 = vector.extract_strided_slice %0 {offsets = [1, 0], sizes = [1, 32], strides = [1, 1]} : vector<10x64xf32> to vector<1x32xf32>
    %3 = vector.extract_strided_slice %0 {offsets = [2, 0], sizes = [1, 32], strides = [1, 1]} : vector<10x64xf32> to vector<1x32xf32>
    %4 = vector.extract_strided_slice %0 {offsets = [3, 0], sizes = [1, 32], strides = [1, 1]} : vector<10x64xf32> to vector<1x32xf32>
    %5 = vector.extract_strided_slice %0 {offsets = [4, 0], sizes = [1, 32], strides = [1, 1]} : vector<10x64xf32> to vector<1x32xf32>
    %6 = vector.extract_strided_slice %0 {offsets = [5, 0], sizes = [1, 32], strides = [1, 1]} : vector<10x64xf32> to vector<1x32xf32>
    %7 = vector.extract_strided_slice %0 {offsets = [6, 0], sizes = [1, 64], strides = [1, 1]} : vector<10x64xf32> to vector<1x64xf32>
    %8 = vector.extract_strided_slice %0 {offsets = [7, 0], sizes = [1, 32], strides = [1, 1]} : vector<10x64xf32> to vector<1x32xf32>
    %9 = vector.extract_strided_slice %0 {offsets = [8, 0], sizes = [1, 32], strides = [1, 1]} : vector<10x64xf32> to vector<1x32xf32>
    %10 = vector.extract_strided_slice %0 {offsets = [9, 0], sizes = [1, 32], strides = [1, 1]} : vector<10x64xf32> to vector<1x32xf32>
    %c0_1 = arith.constant 0 : index
    %c0_2 = arith.constant 0 : index
    %c0_3 = arith.constant 0 : index
    %11 = vector.load %arg1[%c0_1, %c0_2, %c0_3] : memref<2x8x32xf32, #tpu.memory_space<vmem>>, vector<2x8x32xf32>
    %c0_4 = arith.constant 0 : index
    %c0_5 = arith.constant 0 : index
    %c0_6 = arith.constant 0 : index
    %12 = vector.load %arg2[%c0_4, %c0_5, %c0_6] : memref<2x8x32xf32, #tpu.memory_space<vmem>>, vector<2x8x32xf32>
    %c0_7 = arith.constant 0 : index
    %c0_8 = arith.constant 0 : index
    %c0_9 = arith.constant 0 : index
    %13 = vector.load %arg3[%c0_7, %c0_8, %c0_9] : memref<2x1x8xf32, #tpu.memory_space<vmem>>, vector<2x1x8xf32>
    %c0_10 = arith.constant 0 : index
    %c0_11 = arith.constant 0 : index
    %c0_12 = arith.constant 0 : index
    %14 = vector.load %arg4[%c0_10, %c0_11, %c0_12] : memref<2x1x16xf32, #tpu.memory_space<vmem>>, vector<2x1x16xf32>
    %15 = vector.shape_cast %11 : vector<2x8x32xf32> to vector<16x32xf32>
    %16 = arith.truncf %15 : vector<16x32xf32> to vector<16x32xbf16>
    %17 = vector.shape_cast %12 : vector<2x8x32xf32> to vector<16x32xf32>
    %18 = arith.truncf %17 : vector<16x32xf32> to vector<16x32xbf16>
    %19 = tpu.concatenate %16, %18 in 0 : vector<16x32xbf16>, vector<16x32xbf16> -> vector<32x32xbf16>
    %c0_13 = arith.constant 0 : index
    %c0_14 = arith.constant 0 : index
    %20 = vector.load %arg5[%c0_13, %c0_14] : memref<32x32xbf16, #tpu.memory_space<vmem>>, vector<32x32xbf16>
    %cst = arith.constant dense<0.000000e+00> : vector<32x32xf32>
    %21 = tpu.matmul %19, %20, %cst {dimension_numbers = #tpu.dot_dimension_numbers<[1], [0], [0], [1], [0, 0, 1, 1], [], []>} : vector<32x32xbf16>, vector<32x32xbf16>, vector<32x32xf32> -> vector<32x32xf32>
    %22 = vector.broadcast %1 : vector<1x32xf32> to vector<32x32xf32>
    %23 = arith.addf %21, %22 : vector<32x32xf32>
    %cst_15 = arith.constant 2.500000e-01 : f32
    %24 = vector.broadcast %cst_15 : f32 to vector<32x32xf32>
    %25 = arith.mulf %23, %24 : vector<32x32xf32>
    %c0_16 = arith.constant 0 : index
    %c0_17 = arith.constant 0 : index
    %26 = vector.load %arg6[%c0_16, %c0_17] : memref<32x32xbf16, #tpu.memory_space<vmem>>, vector<32x32xbf16>
    %cst_18 = arith.constant dense<0.000000e+00> : vector<32x32xf32>
    %27 = tpu.matmul %19, %26, %cst_18 {dimension_numbers = #tpu.dot_dimension_numbers<[1], [0], [0], [1], [0, 0, 1, 1], [], []>} : vector<32x32xbf16>, vector<32x32xbf16>, vector<32x32xf32> -> vector<32x32xf32>
    %28 = vector.broadcast %2 : vector<1x32xf32> to vector<32x32xf32>
    %29 = arith.addf %27, %28 : vector<32x32xf32>
    %c0_19 = arith.constant 0 : index
    %c0_20 = arith.constant 0 : index
    %30 = vector.load %arg7[%c0_19, %c0_20] : memref<32x32xbf16, #tpu.memory_space<vmem>>, vector<32x32xbf16>
    %cst_21 = arith.constant dense<0.000000e+00> : vector<32x32xf32>
    %31 = tpu.matmul %19, %30, %cst_21 {dimension_numbers = #tpu.dot_dimension_numbers<[1], [0], [0], [1], [0, 0, 1, 1], [], []>} : vector<32x32xbf16>, vector<32x32xbf16>, vector<32x32xf32> -> vector<32x32xf32>
    %32 = vector.broadcast %3 : vector<1x32xf32> to vector<32x32xf32>
    %33 = arith.addf %31, %32 : vector<32x32xf32>
    %34 = vector.extract_strided_slice %25 {offsets = [0, 0], sizes = [16, 32], strides = [1, 1]} : vector<32x32xf32> to vector<16x32xf32>
    %35 = vector.shape_cast %34 : vector<16x32xf32> to vector<2x8x2x16xf32>
    %36 = arith.truncf %35 : vector<2x8x2x16xf32> to vector<2x8x2x16xbf16>
    %37 = tpu.transpose %36, [0, 2, 1, 3] : vector<2x8x2x16xbf16> -> vector<2x2x8x16xbf16>
    %38 = vector.shape_cast %37 : vector<2x2x8x16xbf16> to vector<4x8x16xbf16>
    %39 = vector.extract_strided_slice %25 {offsets = [16, 0], sizes = [16, 32], strides = [1, 1]} : vector<32x32xf32> to vector<16x32xf32>
    %40 = vector.shape_cast %39 : vector<16x32xf32> to vector<2x8x2x16xf32>
    %41 = arith.truncf %40 : vector<2x8x2x16xf32> to vector<2x8x2x16xbf16>
    %42 = tpu.transpose %41, [0, 2, 1, 3] : vector<2x8x2x16xbf16> -> vector<2x2x8x16xbf16>
    %43 = vector.shape_cast %42 : vector<2x2x8x16xbf16> to vector<4x8x16xbf16>
    %44 = vector.extract_strided_slice %29 {offsets = [0, 0], sizes = [16, 32], strides = [1, 1]} : vector<32x32xf32> to vector<16x32xf32>
    %45 = vector.shape_cast %44 : vector<16x32xf32> to vector<2x8x2x16xf32>
    %46 = arith.truncf %45 : vector<2x8x2x16xf32> to vector<2x8x2x16xbf16>
    %47 = tpu.transpose %46, [0, 2, 1, 3] : vector<2x8x2x16xbf16> -> vector<2x2x8x16xbf16>
    %48 = vector.shape_cast %47 : vector<2x2x8x16xbf16> to vector<4x8x16xbf16>
    %49 = vector.extract_strided_slice %29 {offsets = [16, 0], sizes = [16, 32], strides = [1, 1]} : vector<32x32xf32> to vector<16x32xf32>
    %50 = vector.shape_cast %49 : vector<16x32xf32> to vector<2x8x2x16xf32>
    %51 = arith.truncf %50 : vector<2x8x2x16xf32> to vector<2x8x2x16xbf16>
    %52 = tpu.transpose %51, [0, 2, 1, 3] : vector<2x8x2x16xbf16> -> vector<2x2x8x16xbf16>
    %53 = vector.shape_cast %52 : vector<2x2x8x16xbf16> to vector<4x8x16xbf16>
    %54 = vector.extract_strided_slice %33 {offsets = [0, 0], sizes = [16, 32], strides = [1, 1]} : vector<32x32xf32> to vector<16x32xf32>
    %55 = vector.shape_cast %54 : vector<16x32xf32> to vector<2x8x2x16xf32>
    %56 = arith.truncf %55 : vector<2x8x2x16xf32> to vector<2x8x2x16xbf16>
    %57 = tpu.transpose %56, [0, 2, 1, 3] : vector<2x8x2x16xbf16> -> vector<2x2x8x16xbf16>
    %58 = vector.shape_cast %57 : vector<2x2x8x16xbf16> to vector<4x8x16xbf16>
    %59 = vector.extract_strided_slice %33 {offsets = [16, 0], sizes = [16, 32], strides = [1, 1]} : vector<32x32xf32> to vector<16x32xf32>
    %60 = vector.shape_cast %59 : vector<16x32xf32> to vector<2x8x2x16xf32>
    %61 = arith.truncf %60 : vector<2x8x2x16xf32> to vector<2x8x2x16xbf16>
    %62 = tpu.transpose %61, [0, 2, 1, 3] : vector<2x8x2x16xbf16> -> vector<2x2x8x16xbf16>
    %63 = vector.shape_cast %62 : vector<2x2x8x16xbf16> to vector<4x8x16xbf16>
    %64 = tpu.concatenate %48, %53 in 1 : vector<4x8x16xbf16>, vector<4x8x16xbf16> -> vector<4x16x16xbf16>
    %65 = tpu.concatenate %58, %63 in 1 : vector<4x8x16xbf16>, vector<4x8x16xbf16> -> vector<4x16x16xbf16>
    "tpu.trace_start"() <{level = 10 : i32, message = "nqd,nkd->nqk"}> : () -> ()
    %cst_22 = arith.constant dense<0.000000e+00> : vector<4x8x8xf32>
    %66 = tpu.matmul %38, %48, %cst_22 {dimension_numbers = #tpu.dot_dimension_numbers<[2], [2], [1], [1], [0, 0, 0, 1, 1, 1], [0], [0]>} : vector<4x8x16xbf16>, vector<4x8x16xbf16>, vector<4x8x8xf32> -> vector<4x8x8xf32>
    "tpu.trace_stop"() : () -> ()
    %67 = vector.shape_cast %66 : vector<4x8x8xf32> to vector<2x2x8x8xf32>
    %68 = vector.shape_cast %13 : vector<2x1x8xf32> to vector<2x1x1x8xf32>
    %69 = vector.broadcast %68 : vector<2x1x1x8xf32> to vector<2x2x8x8xf32>
    %70 = arith.addf %67, %69 : vector<2x2x8x8xf32>
    %cst_23 = arith.constant dense<0xFF800000> : vector<2x2x8xf32>
    %71 = vector.multi_reduction <maximumf>, %70, %cst_23 [3] : vector<2x2x8x8xf32> to vector<2x2x8xf32>
    %72 = vector.shape_cast %71 : vector<2x2x8xf32> to vector<2x2x8x1xf32>
    %73 = vector.broadcast %72 : vector<2x2x8x1xf32> to vector<2x2x8x8xf32>
    %74 = arith.subf %70, %73 : vector<2x2x8x8xf32>
    %75 = math.exp %74 : vector<2x2x8x8xf32>
    %cst_24 = arith.constant dense<0.000000e+00> : vector<2x2x8xf32>
    %76 = vector.multi_reduction <add>, %75, %cst_24 [3] : vector<2x2x8x8xf32> to vector<2x2x8xf32>
    %77 = vector.shape_cast %76 : vector<2x2x8xf32> to vector<2x2x8x1xf32>
    %78 = tpu.reciprocal %77 {approx = true} : vector<2x2x8x1xf32> -> vector<2x2x8x1xf32>
    %79 = vector.broadcast %78 : vector<2x2x8x1xf32> to vector<2x2x8x8xf32>
    %80 = arith.mulf %75, %79 : vector<2x2x8x8xf32>
    %81 = vector.shape_cast %80 : vector<2x2x8x8xf32> to vector<4x8x8xf32>
    %82 = arith.truncf %81 : vector<4x8x8xf32> to vector<4x8x8xbf16>
    "tpu.trace_start"() <{level = 10 : i32, message = "nqk,nkd->nqd"}> : () -> ()
    %cst_25 = arith.constant dense<0.000000e+00> : vector<4x8x16xf32>
    %83 = tpu.matmul %82, %58, %cst_25 {dimension_numbers = #tpu.dot_dimension_numbers<[2], [1], [1], [2], [0, 0, 0, 1, 1, 2], [0], [0]>} : vector<4x8x8xbf16>, vector<4x8x16xbf16>, vector<4x8x16xf32> -> vector<4x8x16xf32>
    "tpu.trace_stop"() : () -> ()
    %84 = vector.shape_cast %83 : vector<4x8x16xf32> to vector<2x2x8x16xf32>
    %85 = tpu.transpose %84, [0, 2, 1, 3] : vector<2x2x8x16xf32> -> vector<2x8x2x16xf32>
    %86 = vector.shape_cast %85 : vector<2x8x2x16xf32> to vector<16x32xf32>
    %87 = vector.shape_cast %11 : vector<2x8x32xf32> to vector<16x32xf32>
    %88 = arith.truncf %86 : vector<16x32xf32> to vector<16x32xbf16>
    %c0_26 = arith.constant 0 : index
    %c0_27 = arith.constant 0 : index
    %89 = vector.load %arg8[%c0_26, %c0_27] : memref<32x32xbf16, #tpu.memory_space<vmem>>, vector<32x32xbf16>
    %cst_28 = arith.constant dense<0.000000e+00> : vector<16x32xf32>
    %90 = tpu.matmul %88, %89, %cst_28 {dimension_numbers = #tpu.dot_dimension_numbers<[1], [0], [0], [1], [0, 0, 1, 1], [], []>} : vector<16x32xbf16>, vector<32x32xbf16>, vector<16x32xf32> -> vector<16x32xf32>
    %91 = vector.broadcast %4 : vector<1x32xf32> to vector<16x32xf32>
    %92 = arith.addf %90, %91 : vector<16x32xf32>
    %93 = arith.addf %92, %87 : vector<16x32xf32>
    %cst_29 = arith.constant dense<0.000000e+00> : vector<16xf32>
    %94 = vector.multi_reduction <add>, %93, %cst_29 [1] : vector<16x32xf32> to vector<16xf32>
    %95 = vector.shape_cast %94 : vector<16xf32> to vector<16x1xf32>
    %cst_30 = arith.constant 3.200000e+01 : f32
    %96 = vector.broadcast %cst_30 : f32 to vector<16x1xf32>
    %97 = arith.divf %95, %96 : vector<16x1xf32>
    %98 = vector.broadcast %97 : vector<16x1xf32> to vector<16x32xf32>
    %99 = arith.subf %93, %98 : vector<16x32xf32>
    %100 = arith.mulf %99, %99 : vector<16x32xf32>
    %cst_31 = arith.constant dense<0.000000e+00> : vector<16xf32>
    %101 = vector.multi_reduction <add>, %100, %cst_31 [1] : vector<16x32xf32> to vector<16xf32>
    %102 = vector.shape_cast %101 : vector<16xf32> to vector<16x1xf32>
    %cst_32 = arith.constant 3.200000e+01 : f32
    %103 = vector.broadcast %cst_32 : f32 to vector<16x1xf32>
    %104 = arith.divf %102, %103 : vector<16x1xf32>
    %105 = vector.broadcast %97 : vector<16x1xf32> to vector<16x32xf32>
    %106 = arith.subf %93, %105 : vector<16x32xf32>
    %cst_33 = arith.constant 9.99999996E-13 : f32
    %107 = vector.broadcast %cst_33 : f32 to vector<16x1xf32>
    %108 = arith.addf %104, %107 : vector<16x1xf32>
    %109 = math.rsqrt %108 : vector<16x1xf32>
    %110 = vector.broadcast %109 : vector<16x1xf32> to vector<16x32xf32>
    %111 = arith.mulf %106, %110 : vector<16x32xf32>
    %112 = vector.broadcast %5 : vector<1x32xf32> to vector<16x32xf32>
    %113 = arith.mulf %111, %112 : vector<16x32xf32>
    %114 = vector.broadcast %6 : vector<1x32xf32> to vector<16x32xf32>
    %115 = arith.addf %113, %114 : vector<16x32xf32>
    %116 = arith.truncf %115 : vector<16x32xf32> to vector<16x32xbf16>
    %c0_34 = arith.constant 0 : index
    %c0_35 = arith.constant 0 : index
    %117 = vector.load %arg9[%c0_34, %c0_35] : memref<32x64xbf16, #tpu.memory_space<vmem>>, vector<32x64xbf16>
    %cst_36 = arith.constant dense<0.000000e+00> : vector<16x64xf32>
    %118 = tpu.matmul %116, %117, %cst_36 {dimension_numbers = #tpu.dot_dimension_numbers<[1], [0], [0], [1], [0, 0, 1, 1], [], []>} : vector<16x32xbf16>, vector<32x64xbf16>, vector<16x64xf32> -> vector<16x64xf32>
    %119 = vector.broadcast %7 : vector<1x64xf32> to vector<16x64xf32>
    %120 = arith.addf %118, %119 : vector<16x64xf32>
    %cst_37 = arith.constant 5.000000e-01 : f32
    %121 = vector.broadcast %cst_37 : f32 to vector<16x64xf32>
    %122 = arith.mulf %121, %120 : vector<16x64xf32>
    %cst_38 = arith.constant 0.707106769 : f32
    %123 = vector.broadcast %cst_38 : f32 to vector<16x64xf32>
    %124 = arith.mulf %120, %123 : vector<16x64xf32>
    %125 = math.erf %124 : vector<16x64xf32>
    %cst_39 = arith.constant 1.000000e+00 : f32
    %126 = vector.broadcast %cst_39 : f32 to vector<16x64xf32>
    %127 = arith.addf %126, %125 : vector<16x64xf32>
    %128 = arith.mulf %122, %127 : vector<16x64xf32>
    %129 = arith.truncf %128 : vector<16x64xf32> to vector<16x64xbf16>
    %c0_40 = arith.constant 0 : index
    %c0_41 = arith.constant 0 : index
    %130 = vector.load %arg10[%c0_40, %c0_41] : memref<64x32xbf16, #tpu.memory_space<vmem>>, vector<64x32xbf16>
    %cst_42 = arith.constant dense<0.000000e+00> : vector<16x32xf32>
    %131 = tpu.matmul %129, %130, %cst_42 {dimension_numbers = #tpu.dot_dimension_numbers<[1], [0], [0], [1], [0, 0, 1, 1], [], []>} : vector<16x64xbf16>, vector<64x32xbf16>, vector<16x32xf32> -> vector<16x32xf32>
    %132 = vector.broadcast %8 : vector<1x32xf32> to vector<16x32xf32>
    %133 = arith.addf %131, %132 : vector<16x32xf32>
    %134 = arith.addf %133, %115 : vector<16x32xf32>
    %cst_43 = arith.constant dense<0.000000e+00> : vector<16xf32>
    %135 = vector.multi_reduction <add>, %134, %cst_43 [1] : vector<16x32xf32> to vector<16xf32>
    %136 = vector.shape_cast %135 : vector<16xf32> to vector<16x1xf32>
    %cst_44 = arith.constant 3.200000e+01 : f32
    %137 = vector.broadcast %cst_44 : f32 to vector<16x1xf32>
    %138 = arith.divf %136, %137 : vector<16x1xf32>
    %139 = vector.broadcast %138 : vector<16x1xf32> to vector<16x32xf32>
    %140 = arith.subf %134, %139 : vector<16x32xf32>
    %141 = arith.mulf %140, %140 : vector<16x32xf32>
    %cst_45 = arith.constant dense<0.000000e+00> : vector<16xf32>
    %142 = vector.multi_reduction <add>, %141, %cst_45 [1] : vector<16x32xf32> to vector<16xf32>
    %143 = vector.shape_cast %142 : vector<16xf32> to vector<16x1xf32>
    %cst_46 = arith.constant 3.200000e+01 : f32
    %144 = vector.broadcast %cst_46 : f32 to vector<16x1xf32>
    %145 = arith.divf %143, %144 : vector<16x1xf32>
    %146 = vector.broadcast %138 : vector<16x1xf32> to vector<16x32xf32>
    %147 = arith.subf %134, %146 : vector<16x32xf32>
    %cst_47 = arith.constant 9.99999996E-13 : f32
    %148 = vector.broadcast %cst_47 : f32 to vector<16x1xf32>
    %149 = arith.addf %145, %148 : vector<16x1xf32>
    %150 = math.rsqrt %149 : vector<16x1xf32>
    %151 = vector.broadcast %150 : vector<16x1xf32> to vector<16x32xf32>
    %152 = arith.mulf %147, %151 : vector<16x32xf32>
    %153 = vector.broadcast %9 : vector<1x32xf32> to vector<16x32xf32>
    %154 = arith.mulf %152, %153 : vector<16x32xf32>
    %155 = vector.broadcast %10 : vector<1x32xf32> to vector<16x32xf32>
    %156 = arith.addf %154, %155 : vector<16x32xf32>
    "tpu.trace_start"() <{level = 10 : i32, message = "nqd,nkd->nqk"}> : () -> ()
    %cst_48 = arith.constant dense<0.000000e+00> : vector<4x8x16xf32>
    %157 = tpu.matmul %43, %64, %cst_48 {dimension_numbers = #tpu.dot_dimension_numbers<[2], [2], [1], [1], [0, 0, 0, 1, 1, 1], [0], [0]>} : vector<4x8x16xbf16>, vector<4x16x16xbf16>, vector<4x8x16xf32> -> vector<4x8x16xf32>
    "tpu.trace_stop"() : () -> ()
    %158 = vector.shape_cast %157 : vector<4x8x16xf32> to vector<2x2x8x16xf32>
    %159 = vector.shape_cast %14 : vector<2x1x16xf32> to vector<2x1x1x16xf32>
    %160 = vector.broadcast %159 : vector<2x1x1x16xf32> to vector<2x2x8x16xf32>
    %161 = arith.addf %158, %160 : vector<2x2x8x16xf32>
    %cst_49 = arith.constant dense<0xFF800000> : vector<2x2x8xf32>
    %162 = vector.multi_reduction <maximumf>, %161, %cst_49 [3] : vector<2x2x8x16xf32> to vector<2x2x8xf32>
    %163 = vector.shape_cast %162 : vector<2x2x8xf32> to vector<2x2x8x1xf32>
    %164 = vector.broadcast %163 : vector<2x2x8x1xf32> to vector<2x2x8x16xf32>
    %165 = arith.subf %161, %164 : vector<2x2x8x16xf32>
    %166 = math.exp %165 : vector<2x2x8x16xf32>
    %cst_50 = arith.constant dense<0.000000e+00> : vector<2x2x8xf32>
    %167 = vector.multi_reduction <add>, %166, %cst_50 [3] : vector<2x2x8x16xf32> to vector<2x2x8xf32>
    %168 = vector.shape_cast %167 : vector<2x2x8xf32> to vector<2x2x8x1xf32>
    %169 = tpu.reciprocal %168 {approx = true} : vector<2x2x8x1xf32> -> vector<2x2x8x1xf32>
    %170 = vector.broadcast %169 : vector<2x2x8x1xf32> to vector<2x2x8x16xf32>
    %171 = arith.mulf %166, %170 : vector<2x2x8x16xf32>
    %172 = vector.shape_cast %171 : vector<2x2x8x16xf32> to vector<4x8x16xf32>
    %173 = arith.truncf %172 : vector<4x8x16xf32> to vector<4x8x16xbf16>
    "tpu.trace_start"() <{level = 10 : i32, message = "nqk,nkd->nqd"}> : () -> ()
    %cst_51 = arith.constant dense<0.000000e+00> : vector<4x8x16xf32>
    %174 = tpu.matmul %173, %65, %cst_51 {dimension_numbers = #tpu.dot_dimension_numbers<[2], [1], [1], [2], [0, 0, 0, 1, 1, 2], [0], [0]>} : vector<4x8x16xbf16>, vector<4x16x16xbf16>, vector<4x8x16xf32> -> vector<4x8x16xf32>
    "tpu.trace_stop"() : () -> ()
    %175 = vector.shape_cast %174 : vector<4x8x16xf32> to vector<2x2x8x16xf32>
    %176 = tpu.transpose %175, [0, 2, 1, 3] : vector<2x2x8x16xf32> -> vector<2x8x2x16xf32>
    %177 = vector.shape_cast %176 : vector<2x8x2x16xf32> to vector<16x32xf32>
    %178 = vector.shape_cast %12 : vector<2x8x32xf32> to vector<16x32xf32>
    %179 = arith.truncf %177 : vector<16x32xf32> to vector<16x32xbf16>
    %c0_52 = arith.constant 0 : index
    %c0_53 = arith.constant 0 : index
    %180 = vector.load %arg8[%c0_52, %c0_53] : memref<32x32xbf16, #tpu.memory_space<vmem>>, vector<32x32xbf16>
    %cst_54 = arith.constant dense<0.000000e+00> : vector<16x32xf32>
    %181 = tpu.matmul %179, %180, %cst_54 {dimension_numbers = #tpu.dot_dimension_numbers<[1], [0], [0], [1], [0, 0, 1, 1], [], []>} : vector<16x32xbf16>, vector<32x32xbf16>, vector<16x32xf32> -> vector<16x32xf32>
    %182 = vector.broadcast %4 : vector<1x32xf32> to vector<16x32xf32>
    %183 = arith.addf %181, %182 : vector<16x32xf32>
    %184 = arith.addf %183, %178 : vector<16x32xf32>
    %cst_55 = arith.constant dense<0.000000e+00> : vector<16xf32>
    %185 = vector.multi_reduction <add>, %184, %cst_55 [1] : vector<16x32xf32> to vector<16xf32>
    %186 = vector.shape_cast %185 : vector<16xf32> to vector<16x1xf32>
    %cst_56 = arith.constant 3.200000e+01 : f32
    %187 = vector.broadcast %cst_56 : f32 to vector<16x1xf32>
    %188 = arith.divf %186, %187 : vector<16x1xf32>
    %189 = vector.broadcast %188 : vector<16x1xf32> to vector<16x32xf32>
    %190 = arith.subf %184, %189 : vector<16x32xf32>
    %191 = arith.mulf %190, %190 : vector<16x32xf32>
    %cst_57 = arith.constant dense<0.000000e+00> : vector<16xf32>
    %192 = vector.multi_reduction <add>, %191, %cst_57 [1] : vector<16x32xf32> to vector<16xf32>
    %193 = vector.shape_cast %192 : vector<16xf32> to vector<16x1xf32>
    %cst_58 = arith.constant 3.200000e+01 : f32
    %194 = vector.broadcast %cst_58 : f32 to vector<16x1xf32>
    %195 = arith.divf %193, %194 : vector<16x1xf32>
    %196 = vector.broadcast %188 : vector<16x1xf32> to vector<16x32xf32>
    %197 = arith.subf %184, %196 : vector<16x32xf32>
    %cst_59 = arith.constant 9.99999996E-13 : f32
    %198 = vector.broadcast %cst_59 : f32 to vector<16x1xf32>
    %199 = arith.addf %195, %198 : vector<16x1xf32>
    %200 = math.rsqrt %199 : vector<16x1xf32>
    %201 = vector.broadcast %200 : vector<16x1xf32> to vector<16x32xf32>
    %202 = arith.mulf %197, %201 : vector<16x32xf32>
    %203 = vector.broadcast %5 : vector<1x32xf32> to vector<16x32xf32>
    %204 = arith.mulf %202, %203 : vector<16x32xf32>
    %205 = vector.broadcast %6 : vector<1x32xf32> to vector<16x32xf32>
    %206 = arith.addf %204, %205 : vector<16x32xf32>
    %207 = arith.truncf %206 : vector<16x32xf32> to vector<16x32xbf16>
    %c0_60 = arith.constant 0 : index
    %c0_61 = arith.constant 0 : index
    %208 = vector.load %arg9[%c0_60, %c0_61] : memref<32x64xbf16, #tpu.memory_space<vmem>>, vector<32x64xbf16>
    %cst_62 = arith.constant dense<0.000000e+00> : vector<16x64xf32>
    %209 = tpu.matmul %207, %208, %cst_62 {dimension_numbers = #tpu.dot_dimension_numbers<[1], [0], [0], [1], [0, 0, 1, 1], [], []>} : vector<16x32xbf16>, vector<32x64xbf16>, vector<16x64xf32> -> vector<16x64xf32>
    %210 = vector.broadcast %7 : vector<1x64xf32> to vector<16x64xf32>
    %211 = arith.addf %209, %210 : vector<16x64xf32>
    %cst_63 = arith.constant 5.000000e-01 : f32
    %212 = vector.broadcast %cst_63 : f32 to vector<16x64xf32>
    %213 = arith.mulf %212, %211 : vector<16x64xf32>
    %cst_64 = arith.constant 0.707106769 : f32
    %214 = vector.broadcast %cst_64 : f32 to vector<16x64xf32>
    %215 = arith.mulf %211, %214 : vector<16x64xf32>
    %216 = math.erf %215 : vector<16x64xf32>
    %cst_65 = arith.constant 1.000000e+00 : f32
    %217 = vector.broadcast %cst_65 : f32 to vector<16x64xf32>
    %218 = arith.addf %217, %216 : vector<16x64xf32>
    %219 = arith.mulf %213, %218 : vector<16x64xf32>
    %220 = arith.truncf %219 : vector<16x64xf32> to vector<16x64xbf16>
    %c0_66 = arith.constant 0 : index
    %c0_67 = arith.constant 0 : index
    %221 = vector.load %arg10[%c0_66, %c0_67] : memref<64x32xbf16, #tpu.memory_space<vmem>>, vector<64x32xbf16>
    %cst_68 = arith.constant dense<0.000000e+00> : vector<16x32xf32>
    %222 = tpu.matmul %220, %221, %cst_68 {dimension_numbers = #tpu.dot_dimension_numbers<[1], [0], [0], [1], [0, 0, 1, 1], [], []>} : vector<16x64xbf16>, vector<64x32xbf16>, vector<16x32xf32> -> vector<16x32xf32>
    %223 = vector.broadcast %8 : vector<1x32xf32> to vector<16x32xf32>
    %224 = arith.addf %222, %223 : vector<16x32xf32>
    %225 = arith.addf %224, %206 : vector<16x32xf32>
    %cst_69 = arith.constant dense<0.000000e+00> : vector<16xf32>
    %226 = vector.multi_reduction <add>, %225, %cst_69 [1] : vector<16x32xf32> to vector<16xf32>
    %227 = vector.shape_cast %226 : vector<16xf32> to vector<16x1xf32>
    %cst_70 = arith.constant 3.200000e+01 : f32
    %228 = vector.broadcast %cst_70 : f32 to vector<16x1xf32>
    %229 = arith.divf %227, %228 : vector<16x1xf32>
    %230 = vector.broadcast %229 : vector<16x1xf32> to vector<16x32xf32>
    %231 = arith.subf %225, %230 : vector<16x32xf32>
    %232 = arith.mulf %231, %231 : vector<16x32xf32>
    %cst_71 = arith.constant dense<0.000000e+00> : vector<16xf32>
    %233 = vector.multi_reduction <add>, %232, %cst_71 [1] : vector<16x32xf32> to vector<16xf32>
    %234 = vector.shape_cast %233 : vector<16xf32> to vector<16x1xf32>
    %cst_72 = arith.constant 3.200000e+01 : f32
    %235 = vector.broadcast %cst_72 : f32 to vector<16x1xf32>
    %236 = arith.divf %234, %235 : vector<16x1xf32>
    %237 = vector.broadcast %229 : vector<16x1xf32> to vector<16x32xf32>
    %238 = arith.subf %225, %237 : vector<16x32xf32>
    %cst_73 = arith.constant 9.99999996E-13 : f32
    %239 = vector.broadcast %cst_73 : f32 to vector<16x1xf32>
    %240 = arith.addf %236, %239 : vector<16x1xf32>
    %241 = math.rsqrt %240 : vector<16x1xf32>
    %242 = vector.broadcast %241 : vector<16x1xf32> to vector<16x32xf32>
    %243 = arith.mulf %238, %242 : vector<16x32xf32>
    %244 = vector.broadcast %9 : vector<1x32xf32> to vector<16x32xf32>
    %245 = arith.mulf %243, %244 : vector<16x32xf32>
    %246 = vector.broadcast %10 : vector<1x32xf32> to vector<16x32xf32>
    %247 = arith.addf %245, %246 : vector<16x32xf32>
    %248 = vector.shape_cast %156 : vector<16x32xf32> to vector<2x8x32xf32>
    %c0_74 = arith.constant 0 : index
    %c0_75 = arith.constant 0 : index
    %c0_76 = arith.constant 0 : index
    %249 = vector.load %arg12[%c0_74, %c0_75, %c0_76] : memref<2x8x32xf32, #tpu.memory_space<vmem>>, vector<2x8x32xf32>
    tpu.vector_store %arg12[%c0_74, %c0_75, %c0_76], %248 {strides = array<i32>} : memref<2x8x32xf32, #tpu.memory_space<vmem>>, vector<2x8x32xf32>,
    %250 = vector.shape_cast %247 : vector<16x32xf32> to vector<2x8x32xf32>
    %c0_77 = arith.constant 0 : index
    %c0_78 = arith.constant 0 : index
    %c0_79 = arith.constant 0 : index
    %251 = vector.load %arg13[%c0_77, %c0_78, %c0_79] : memref<2x8x32xf32, #tpu.memory_space<vmem>>, vector<2x8x32xf32>
    tpu.vector_store %arg13[%c0_77, %c0_78, %c0_79], %250 {strides = array<i32>} : memref<2x8x32xf32, #tpu.memory_space<vmem>>, vector<2x8x32xf32>,
    return
  }
  func.func @transform_0(%arg0: i32) -> (i32, i32, i32) {
    %c0_i32 = arith.constant 0 : i32
    %c0_i32_0 = arith.constant 0 : i32
    %c0_i32_1 = arith.constant 0 : i32
    return %arg0, %c0_i32, %c0_i32_0 : i32, i32, i32
  }
  func.func @transform_1(%arg0: i32) -> (i32, i32, i32) {
    %c0_i32 = arith.constant 0 : i32
    %c0_i32_0 = arith.constant 0 : i32
    %c0_i32_1 = arith.constant 0 : i32
    return %arg0, %c0_i32, %c0_i32_0 : i32, i32, i32
  }
  func.func @transform_2(%arg0: i32) -> (i32, i32, i32) {
    %c0_i32 = arith.constant 0 : i32
    %c0_i32_0 = arith.constant 0 : i32
    %c0_i32_1 = arith.constant 0 : i32
    return %arg0, %c0_i32, %c0_i32_0 : i32, i32, i32
  }
  func.func @transform_3(%arg0: i32) -> (i32, i32, i32) {
    %c0_i32 = arith.constant 0 : i32
    %c0_i32_0 = arith.constant 0 : i32
    %c0_i32_1 = arith.constant 0 : i32
    return %arg0, %c0_i32, %c0_i32_0 : i32, i32, i32
  }
  func.func @transform_4(%arg0: i32) -> (i32, i32) {
    %c0_i32 = arith.constant 0 : i32
    %c0_i32_0 = arith.constant 0 : i32
    %c0_i32_1 = arith.constant 0 : i32
    return %c0_i32, %c0_i32_0 : i32, i32
  }
  func.func @transform_5(%arg0: i32) -> (i32, i32) {
    %c0_i32 = arith.constant 0 : i32
    %c0_i32_0 = arith.constant 0 : i32
    %c0_i32_1 = arith.constant 0 : i32
    return %c0_i32, %c0_i32_0 : i32, i32
  }
  func.func @transform_6(%arg0: i32) -> (i32, i32) {
    %c0_i32 = arith.constant 0 : i32
    %c0_i32_0 = arith.constant 0 : i32
    %c0_i32_1 = arith.constant 0 : i32
    return %c0_i32, %c0_i32_0 : i32, i32
  }
  func.func @transform_7(%arg0: i32) -> (i32, i32) {
    %c0_i32 = arith.constant 0 : i32
    %c0_i32_0 = arith.constant 0 : i32
    %c0_i32_1 = arith.constant 0 : i32
    return %c0_i32, %c0_i32_0 : i32, i32
  }
  func.func @transform_8(%arg0: i32) -> (i32, i32) {
    %c0_i32 = arith.constant 0 : i32
    %c0_i32_0 = arith.constant 0 : i32
    %c0_i32_1 = arith.constant 0 : i32
    return %c0_i32, %c0_i32_0 : i32, i32
  }
  func.func @transform_9(%arg0: i32) -> (i32, i32) {
    %c0_i32 = arith.constant 0 : i32
    %c0_i32_0 = arith.constant 0 : i32
    %c0_i32_1 = arith.constant 0 : i32
    return %c0_i32, %c0_i32_0 : i32, i32
  }
  func.func @transform_10(%arg0: i32) -> (i32, i32) {
    %c0_i32 = arith.constant 0 : i32
    %c0_i32_0 = arith.constant 0 : i32
    %c0_i32_1 = arith.constant 0 : i32
    return %c0_i32, %c0_i32_0 : i32, i32
  }
  func.func @transform_11(%arg0: i32) -> (i32, i32, i32) {
    %c0_i32 = arith.constant 0 : i32
    %c0_i32_0 = arith.constant 0 : i32
    %c0_i32_1 = arith.constant 0 : i32
    return %arg0, %c0_i32, %c0_i32_0 : i32, i32, i32
  }
  func.func @transform_12(%arg0: i32) -> (i32, i32, i32) {
    %c0_i32 = arith.constant 0 : i32
    %c0_i32_0 = arith.constant 0 : i32
    %c0_i32_1 = arith.constant 0 : i32
    return %arg0, %c0_i32, %c0_i32_0 : i32, i32, i32
  }
}

</mosaic_0001>

<bundles_post_ra>
// kernel: table_encoder_simple.3
= control target key start
LH: loop header
LB: loop body
LE: loop exit
PB: predicated region body
PF: predicated region fallthrough
CT: control target
= control target key end

     0   :  { %s6062_s0 = inlined_call_operand.vmem [shape: f32[4,8,32], index: 0, kind: input, shape index: {}]   ;;  %s6063_s1 = inlined_call_operand.vmem [shape: f32[4,8,32], index: 1, kind: input, shape index: {}]   ;;  %s6064_s2 = inlined_call_operand.vmem [shape: f32[4,1,8], index: 2, kind: input, shape index: {}]   ;;  %s6065_s3 = inlined_call_operand.vmem [shape: f32[4,1,16], index: 3, kind: input, shape index: {}]   ;;  %s6066_s4 = inlined_call_operand.vmem [shape: bf16[32,32], index: 4, kind: input, shape index: {}]   ;;  %s6067_s5 = inlined_call_operand.vmem [shape: bf16[32,32], index: 5, kind: input, shape index: {}]   ;;  %s6068_s6 = inlined_call_operand.vmem [shape: bf16[32,32], index: 6, kind: input, shape index: {}]   ;;  %s6069_s7 = inlined_call_operand.vmem [shape: bf16[32,32], index: 7, kind: input, shape index: {}]   ;;  %s6070_s8 = inlined_call_operand.vmem [shape: bf16[32,64], index: 8, kind: input, shape index: {}]   ;;  %s6071_s9 = inlined_call_operand.vmem [shape: bf16[64,32], index: 9, kind: input, shape index: {}]   ;;  %s6072_s10 = inlined_call_operand.vmem [shape: f32[10,64], index: 10, kind: input, shape index: {}]   ;;  %s6073_s11 = inlined_call_operand.hbm [shape: f32[4,8,32], index: 11, kind: output, shape index: {0}]   ;;  %s6074_s12 = inlined_call_operand.hbm [shape: f32[4,8,32], index: 12, kind: output, shape index: {1}]  }
   0x1   :  { %6078 = sst [smem:[#allocation8_spill]] %s6062_s0 }
   0x2   :  { %6079 = sst [smem:[#allocation9_spill]] %s6063_s1 }
   0x3   :  { %6080 = sst [smem:[#allocation10_spill]] %s6067_s5 }
   0x4   :  { %18 = vsyncpa [#allocation3], 0 }
   0x5   :  { %20 = vsyncpa [#allocation3 + $0x1], 0 }
   0x6   :  { %21 = vsyncpa [#allocation5], 0 }
   0x7   :  { %23 = vsyncpa [#allocation5 + $0x1], 0  ;;  %s5094_s21 = smov 0   ;;  %s5096_s22 = smov 0  }
   0x8   :  { %s5098_s23 = smov 0   ;;  %s5100_s24 = smov 0  }
   0x9 LB: > { %s5115_s25 = sadd.s32 4294967295, %s5017_s24   ;;  %s4404_s26 = sadd.s32 4294967294, %s5017_s24   ;;  %s5017_s24 = sphi %s5100_s24, %s6092_s24   ;;  %s5013_s23 = sphi %s5098_s23, %s6091_s23   ;;  %s5009_s22 = sphi %s5096_s22, %s6090_s22   ;;  %s5005_s21 = sphi %s5094_s21, %s6089_s21  }
   0xa   : > { %s5119_s27 = sadd.s32 1, %s5017_s24   ;;  %s287_s28 = sadd.s32 1, %s5013_s23 }
   0xb   : > { %s284_s29 = ssub.s32 %s5017_s24, %s5119_s27  ;;  %p297_p0 = scmp.ne.s32.totalorder %s5013_s23, %s5009_s22 }
   0xc   : > { %p285_p1 = scmp.eq.s32.totalorder %s284_s29, 0  ;;  %p298_p2 = scmp.eq.s32.totalorder %s5115_s25, 1 }
   0xd   : > { %p303_p3 = scmp.ne.s32.totalorder %s5009_s22, %s5005_s21  ;;  %p304_p4 = scmp.eq.s32.totalorder %s4404_s26, 1 }
   0xe   : > { %s5130_s30 = scalar_select %p285_p1, %s5013_s23, %s287_s28  }
   0xf   : > { %p5132_p5 = por %p298_p2, %p297_p0  ;;  %p5136_p6 = por %p304_p4, %p303_p3 }
  0x10   : > { %p4407_p7 = scmp.ge.s32.totalorder %s5017_s24, 1  ;;  %p403_p8 = scmp.lt.s32.totalorder %s5017_s24, 3 }
  0x12   : > { %p404_p9 = pnand %p4407_p7, %p403_p8 }
  0x13   : > { %s6083_s5 = sld [smem:[#allocation10_spill]] (!%p404_p9)  ;;  %s4410_s17 = sshll.u32 (!%p404_p9), %s5115_s25, 1  ;;  %v4841_v1 = vld [vmem:[%s6066_s4] sm:$0xff] (!%p404_p9)   ;;  %v4843_v3 = vld [vmem:[%s6066_s4 + $0x8] sm:$0xff] (!%p404_p9)   ;;  %vm520_vm0 = vcmask (!%p404_p9), 261120   ;;  %v5019_v10 = vmov (!%p404_p9), 0.0   ;;  %v504_v11 = vlaneseq (!%p404_p9) }
  0x14   : > { %407 = sbr.rel (%p404_p9) target bundleno = 4303 (0x10cf), region = 64  ;;  %p464_p10 = scmp.lt.s32.totalorder (!%p404_p9), %s4410_s17, 3  ;;  %4602 = vmatprep.subr.bf16.mxu0 (!%p404_p9), %v4841_v1  ;;  %v5184_v14 = vld [vmem:[%s6072_s10] sm:$0xff] (!%p404_p9)  ;;  %v4845_v37 = vld [vmem:[%s6068_s6 + $0x8] sm:$0xff] (!%p404_p9)   ;;  %vm5021_vm1 = vmmov (!%p404_p9), 0   ;;  %vm2339_vm2 = vcmask (!%p404_p9), 130048  }
  0x15   : > { %4603 = vmatpush3.bf16.msra.mxu0 (!%p404_p9), %v4841_v1  ;;  %s6084_s0 = sld [smem:[#allocation8_spill]] (!%p404_p9)  ;;  %s6085_s1 = sld [smem:[#allocation9_spill]] (!%p404_p9)  ;;  %v5178_v12 = vshrl.u32 (!%p404_p9), %v504_v11, 7  ;;  %v4844_v33 = vld [vmem:[%s6068_s6] sm:$0xff] (!%p404_p9)   ;;  %v5022_v38 = vmov (!%p404_p9), 1983009808  }
  0x16   : > { %4604 = vmatprep.subr.bf16.mxu0 (!%p404_p9), %v4843_v3  ;;  %v728_v39 = vunpack.c.l.s4 (!%p404_p9), %v5022_v38  ;;  %v5023_v41 = vmov (!%p404_p9), 1934713408   ;;  %vm2536_vm3 = vcmask (!%p404_p9), 64512   ;;  %vm2306_vm4 = vcmask (!%p404_p9), 1043456   ;;  %s5024_s29 = smov (!%p404_p9), 16   ;;  %s5949_s20 = sand.u32 (!%p404_p9), 1, %s5009_s22  }
  0x17   : > { %v586_v13 = vsub.s32 (!%p404_p9), 1, %v5178_v12  ;;  %v506_v15 = vsub.s32 (!%p404_p9), 0, %v5178_v12  ;;  %v759_v42 = vunpack.c.l.s4 (!%p404_p9), %v5023_v41  ;;  %vm3225_vm5 = vcmask (!%p404_p9), 523264  }
  0x18   : > { %v729_v40 = vunpack.c.0.s8 (!%p404_p9), %v728_v39 }
  0x19   : > { %v4840_v0 = vld [vmem:[%s6083_s5] sm:$0xff] (!%p404_p9)   ;;  %v4842_v2 = vld [vmem:[%s6083_s5 + $0x8] sm:$0xff] (!%p404_p9)   ;;  %4605 = vmatpush3.bf16.msra.mxu0 (!%p404_p9), %v4843_v3  ;;  %v587_v16 = vrot.slane (!%p404_p9), %v5184_v14, %v586_v13  ;;  %v507_v17 = vrot.slane (!%p404_p9), %v5184_v14, %v506_v15  ;;  %v760_v44 = vunpack.c.0.s8 (!%p404_p9), %v759_v42 }
  0x1a   : > { %4610 = vmatprep.subr.bf16.mxu1 (!%p404_p9), %v4840_v0  ;;  %4618 = vmatprep.subr.bf16.mxu0 (!%p404_p9), %v4844_v33  ;;  %v5218_v43 = vsub.s32 (!%p404_p9), %v729_v40, %v5178_v12 }
  0x1b   : > { %4611 = vmatpush3.bf16.msra.mxu1 %v4840_v0  ;;  %s6094_s17 = smov (!%p464_p10, %s4410_s17), 3  ;;  %v5225_v50 = vsub.s32 %v760_v44, %v5178_v12 }
  0x1c   : > { %4612 = vmatprep.subr.bf16.mxu1 %v4842_v2  ;;  %s4411_s15 = sshll.u32 %s6094_s17, 3  ;;  %s478_s16 = scalar_lea.vmem %s6064_s2, %s6094_s17 }
  0x1d   : > { %s5161_s19 = scalar_lea.vmem %s6084_s0, %s4411_s15  ;;  %s5166_s5 = scalar_lea.vmem %s6085_s1, %s4411_s15 }
  0x1e   : > { %v490_v4 = vld [vmem:[%s5161_s19] sm:$0xff]  ;;  %v491_v5 = vld [vmem:[%s5161_s19 + $0x8] sm:$0xff]  ;;  %s5020_s15 = smov 112   ;;  %s5712_s26 = scalar_lea.vmem %s6065_s3, %s6094_s17 }
  0x1f   : > { %4613 = vmatpush3.bf16.msra.mxu1 %v4842_v2  ;;  %v492_v6 = vld [vmem:[%s5166_s5] sm:$0xff]  ;;  %v498_v7 = vpack.c.bf16 %v491_v5, %v490_v4  ;;  %v493_v8 = vld [vmem:[%s5166_s5 + $0x8] sm:$0xff] }
  0x20   : > { %v499_v9 = vpack.c.bf16 %v493_v8, %v492_v6  ;;  %4626 = vmatprep.subr.bf16.mxu1 %v5019_v10 }
  0x21   : > { %4614 = vmatprep.mubr.msk.bf16.mxu1 %vm520_vm0, %v498_v7  ;;  %4606 = vmatprep.mubr.msk.bf16.mxu0 %vm520_vm0, %v498_v7 }
  0x22   : > { %4615 = vmatmul.mubr.msk.bf16.vlgmr.msra.gmra.mrb[0].mxu1 %vm520_vm0, %v499_v9  ;;  %4607 = vmatmul.mubr.msk.bf16.vlgmr.msra.gmra.mrb[0].mxu0 %vm520_vm0, %v499_v9 }
  0x23   : > { %4622 = vmatprep.mubr.msk.bf16.mxu0 %vm520_vm0, %v498_v7  ;;  %4619 = vmatpush3.bf16.msra.mxu0 %v4844_v33 }
  0x24   : > { %4620 = vmatprep.subr.bf16.mxu0 %v4845_v37  ;;  %4628 = vmatprep.mubr.msk.bf16.mxu1 %vm5021_vm1, %v5019_v10 }
  0x27   : > { %4621 = vmatpush3.bf16.msra.mxu0 %v4845_v37 }
  0x28   : > { %4632 = vmatprep.subr.bf16.mxu0 %v5019_v10 }
  0x2a   : > { %4623 = vmatmul.mubr.msk.bf16.vlgmr.msra.gmra.mrb[4].mxu0 %vm520_vm0, %v499_v9 }
  0x2b   : > { %4634 = vmatprep.mubr.msk.bf16.mxu0 %vm5021_vm1, %v5019_v10 }
  0xf5   : > { %v4616_v18 = vpop.f32.mrb[0].mxu1  ;;  %v4608_v19 = vpop.f32.mrb[0].mxu0 }
  0xf6   : > { %v5193_v20 = vadd.f32 %v4616_v18, %v587_v16  ;;  %v634_v21 = vpop.f32.mrb[1].mxu1  ;;  %v5195_v22 = vadd.f32 %v4608_v19, %v507_v17  ;;  %v561_v23 = vpop.f32.mrb[1].mxu0 }
  0xf7   : > { %v635_v24 = vadd.f32 %v634_v21, %v587_v16  ;;  %v4617_v25 = vpop.f32.mrb[2].mxu1  ;;  %v562_v26 = vadd.f32 %v561_v23, %v507_v17  ;;  %v4609_v27 = vpop.f32.mrb[2].mxu0 }
  0xf8   : > { %v5197_v28 = vadd.f32 %v4617_v25, %v587_v16  ;;  %v637_v29 = vpop.f32.mrb[3].mxu1  ;;  %v564_v30 = vpop.f32.mrb[3].mxu0  ;;  %v5204_v34 = vadd.f32 %v4609_v27, %v507_v17 }
  0xf9   : > { %v576_v31 = vmul.f32 0.25, %v562_v26  ;;  %v638_v32 = vadd.f32 %v637_v29, %v587_v16  ;;  %1248 = vrot.lane.b32.xlu0 %v635_v24, %s5020_s15  ;;  %v565_v35 = vadd.f32 %v564_v30, %v507_v17  ;;  %v1254_v45 = vcombine.high %v635_v24, %v5019_v10 }
  0xfa   : > { %v1261_v47 = vrot.slane %v635_v24, %v5218_v43 }
  0xfb   : > { %1250 = vrot.lane.b32.xlu1 %v638_v32, %s5020_s15  ;;  %v577_v36 = vmul.f32 0.25, %v565_v35  ;;  %v1268_v51 = vrot.slane %v1254_v45, %v5218_v43  ;;  %v1320_v57 = vcombine.high %v638_v32, %v5019_v10  ;;  %v726_v61 = vcombine.high %v576_v31, %v5019_v10 }
  0xfc   : > { %v1327_v62 = vrot.slane %v638_v32, %v5218_v43  ;;  %v733_v11 = vrot.slane %v576_v31, %v5218_v43 }
  0xfd   : > { %720 = vrot.lane.b32.xlu0 %v576_v31, %s5020_s15  ;;  %v792_v1 = vcombine.high %v577_v36, %v5019_v10  ;;  %v1334_v4 = vrot.slane %v1320_v57, %v5218_v43  ;;  %v740_v16 = vrot.slane %v726_v61, %v5218_v43  ;;  %v799_v19 = vrot.slane %v577_v36, %v5218_v43 }
  0xff   : > { %722 = vrot.lane.b32.xlu1 %v577_v36, %s5020_s15  ;;  %v806_v21 = vrot.slane %v792_v1, %v5218_v43 }
 0x16b   : > { %v1249_v46 = vpop.permute.xlu0 %1248 }
 0x16c   : > { %v1269_v48 = vcombine.high %v1249_v46, %v5019_v10  ;;  %v1276_v49 = vrot.slane %v1249_v46, %v5218_v43 }
 0x16d   : > { %v1251_v52 = vpop.permute.xlu1 %1250 }
 0x16e   : > { %v1283_v53 = vrot.slane %v1269_v48, %v5218_v43  ;;  %v1284_v54 = vcombine.low %v1261_v47, %v1276_v49  ;;  %v1285_v55 = vcombine.high %v1261_v47, %v1276_v49  ;;  %v1335_v56 = vcombine.high %v1251_v52, %v5019_v10 }
 0x16f   : > { %v1342_v58 = vrot.slane %v1251_v52, %v5218_v43  ;;  %v721_v0 = vpop.permute.xlu0 %720 }
 0x170   : > { %v1300_v59 = vcombine.low %v1268_v51, %v1283_v53  ;;  %v1301_v60 = vcombine.high %v1268_v51, %v1283_v53  ;;  %v1349_v63 = vrot.slane %v1335_v56, %v5218_v43  ;;  %v1292_v2 = vrot.slane %v1284_v54, %v5225_v50 }
 0x171   : > { %v1299_v3 = vrot.slane %v1285_v55, %v5225_v50  ;;  %v1350_v6 = vcombine.low %v1327_v62, %v1342_v58  ;;  %v1351_v7 = vcombine.high %v1327_v62, %v1342_v58  ;;  %v741_v9 = vcombine.high %v721_v0, %v5019_v10  ;;  %v723_v18 = vpop.permute.xlu1 %722 }
 0x172   : > { %v1308_v5 = vrot.slane %v1300_v59, %v5225_v50  ;;  %v1315_v8 = vrot.slane %v1301_v60, %v5225_v50  ;;  %v1366_v17 = vcombine.low %v1334_v4, %v1349_v63  ;;  %v1316_v23 = vcombine.high %v1292_v2, %v5019_v10 }
 0x173   : > { %v1317_v24 = vcombine.high %v1299_v3, %v5019_v10  ;;  %v1358_v26 = vrot.slane %v1350_v6, %v5225_v50  ;;  %v1365_v27 = vrot.slane %v1351_v7, %v5225_v50  ;;  %v1367_v29 = vcombine.high %v1334_v4, %v1349_v63 }
 0x174   : > { %v1318_v25 = vcombine.high %v1308_v5, %v5019_v10  ;;  %v1319_v30 = vcombine.high %v1315_v8, %v5019_v10  ;;  %v748_v31 = vrot.slane %v721_v0, %v5218_v43  ;;  %v755_v32 = vrot.slane %v741_v9, %v5218_v43 }
 0x175   : > { %v807_v33 = vcombine.high %v723_v18, %v5019_v10  ;;  %v4444_v35 = vpack.c.bf16 %v1308_v5, %v1292_v2  ;;  %v4445_v36 = vpack.c.bf16 %v1315_v8, %v1299_v3  ;;  %v1374_v37 = vrot.slane %v1366_v17, %v5225_v50 }
 0x176   : > { %v814_v38 = vrot.slane %v723_v18, %v5218_v43  ;;  %v756_v39 = vcombine.low %v733_v11, %v748_v31  ;;  %v757_v40 = vcombine.high %v733_v11, %v748_v31  ;;  %v772_v41 = vcombine.low %v740_v16, %v755_v32 }
 0x177   : > { %v773_v42 = vcombine.high %v740_v16, %v755_v32  ;;  %v1381_v44 = vrot.slane %v1367_v29, %v5225_v50  ;;  %v1382_v45 = vcombine.high %v1358_v26, %v5019_v10  ;;  %v1383_v46 = vcombine.high %v1365_v27, %v5019_v10 }
 0x178   : > { %v821_v47 = vrot.slane %v807_v33, %v5218_v43  ;;  %v764_v48 = vrot.slane %v756_v39, %v5225_v50  ;;  %v771_v49 = vrot.slane %v757_v40, %v5225_v50  ;;  %v780_v51 = vrot.slane %v772_v41, %v5225_v50 }
 0x179   : > { %v787_v52 = vrot.slane %v773_v42, %v5225_v50  ;;  %v1409_v53 = vrot.slane %v4444_v35, %v5218_v43  ;;  %v1417_v54 = vrot.slane %v4445_v36, %v5218_v43  ;;  %v822_v59 = vcombine.low %v799_v19, %v814_v38 }
 0x17a   : > { %v838_v55 = vcombine.low %v806_v21, %v821_v47  ;;  %v839_v56 = vcombine.high %v806_v21, %v821_v47  ;;  %v790_v57 = vcombine.high %v780_v51, %v5019_v10  ;;  %v823_v60 = vcombine.high %v799_v19, %v814_v38 }
 0x17b   : > { %v791_v58 = vcombine.high %v787_v52, %v5019_v10  ;;  %v1384_v61 = vcombine.high %v1374_v37, %v5019_v10  ;;  %v1385_v62 = vcombine.high %v1381_v44, %v5019_v10  ;;  %v788_v63 = vcombine.high %v764_v48, %v5019_v10 }
 0x17c   : > { %v789_v0 = vcombine.high %v771_v49, %v5019_v10  ;;  %v4446_v1 = vpack.c.bf16 %v1318_v25, %v1316_v23  ;;  %v4448_v2 = vpack.c.bf16 %v1374_v37, %v1358_v26  ;;  %v846_v3 = vrot.slane %v838_v55, %v5225_v50 }
 0x17d   : > { %v853_v4 = vrot.slane %v839_v56, %v5225_v50  ;;  %v4447_v5 = vpack.c.bf16 %v1319_v30, %v1317_v24  ;;  %v4449_v6 = vpack.c.bf16 %v1381_v44, %v1365_v27  ;;  %v4430_v7 = vpack.c.bf16 %v790_v57, %v788_v63 }
 0x17e   : > { %v4431_v8 = vpack.c.bf16 %v791_v58, %v789_v0  ;;  %v4428_v9 = vpack.c.bf16 %v780_v51, %v764_v48  ;;  %v4429_v11 = vpack.c.bf16 %v787_v52, %v771_v49  ;;  %v830_v16 = vrot.slane %v822_v59, %v5225_v50 }
 0x17f   : > { %v837_v17 = vrot.slane %v823_v60, %v5225_v50  ;;  %v4450_v18 = vpack.c.bf16 %v1384_v61, %v1382_v45  ;;  %v4451_v19 = vpack.c.bf16 %v1385_v62, %v1383_v46  ;;  %v1418_v21 = vcombine.low %v1409_v53, %v1417_v54 }
 0x180   : > { %v1457_v23 = vrot.slane %v4448_v2, %v5218_v43  ;;  %v856_v25 = vcombine.high %v846_v3, %v5019_v10  ;;  %v857_v26 = vcombine.high %v853_v4, %v5019_v10  ;;  %v1433_v24 = vrot.slane %v4446_v1, %v5218_v43 }
 0x181   : > { %v1465_v27 = vrot.slane %v4449_v6, %v5218_v43  ;;  %v905_v29 = vrot.slane %v4430_v7, %v5218_v43  ;;  %v913_v30 = vrot.slane %v4431_v8, %v5218_v43  ;;  %v1441_v31 = vrot.slane %v4447_v5, %v5218_v43 }
 0x182   : > { %v881_v32 = vrot.slane %v4428_v9, %v5218_v43  ;;  %v889_v33 = vrot.slane %v4429_v11, %v5218_v43  ;;  %v854_v35 = vcombine.high %v830_v16, %v5019_v10  ;;  %v855_v36 = vcombine.high %v837_v17, %v5019_v10 }
 0x183   : > { %v1425_v37 = vrot.slane %v1418_v21, %v5225_v50  ;;  %v1442_v38 = vcombine.low %v1433_v24, %v1441_v31  ;;  %v1481_v39 = vrot.slane %v4450_v18, %v5218_v43  ;;  %v1489_v40 = vrot.slane %v4451_v19, %v5218_v43 }
 0x184   : > { %v4434_v41 = vpack.c.bf16 %v856_v25, %v854_v35  ;;  %v4435_v42 = vpack.c.bf16 %v857_v26, %v855_v36  ;;  %v914_v44 = vcombine.low %v905_v29, %v913_v30  ;;  %v1466_v46 = vcombine.low %v1457_v23, %v1465_v27  ;;  %v4624_v30 = vpop.f32.mrb[4].mxu0 }
 0x185   : > { %v1449_v45 = vrot.slane %v1442_v38, %v5225_v50  ;;  %v1490_v47 = vcombine.low %v1481_v39, %v1489_v40  ;;  %v890_v48 = vcombine.low %v881_v32, %v889_v33  ;;  %v4432_v49 = vpack.c.bf16 %v846_v3, %v830_v16  ;;  %v5342_v32 = vpop.f32.mrb[5].mxu0 }
 0x186   : > { %v4433_v51 = vpack.c.bf16 %v853_v4, %v837_v17  ;;  %v1501_v53 = vshrl.u32 %v1425_v37, 16  ;;  %v953_v56 = vrot.slane %v4434_v41, %v5218_v43  ;;  %v961_v57 = vrot.slane %v4435_v42, %v5218_v43  ;;  %v4625_v33 = vpop.f32.mrb[6].mxu0 }
 0x187   : > { %v5293_v52 = vpack.i.b16 %v1449_v45, %v1425_v37  ;;  %v1502_v54 = vshrl.u32 %v1449_v45, 16  ;;  %v1497_v55 = vrot.slane %v1490_v47, %v5225_v50  ;;  %v921_v60 = vrot.slane %v914_v44, %v5225_v50  ;;  %v5347_v36 = vpop.f32.mrb[7].mxu0  ;;  %v4480_v37 = vld [vmem:[%s478_s16] ss:$0 sm:$0xff] }
 0x188   : > { %v1473_v61 = vrot.slane %v1466_v46, %v5225_v50  ;;  %v929_v62 = vrot.slane %v4432_v49, %v5218_v43  ;;  %v897_v63 = vrot.slane %v890_v48, %v5225_v50  ;;  %v937_v0 = vrot.slane %v4433_v51, %v5218_v43 }
 0x189   : > { %v2343_v58 = vsel %vm2339_vm2, %v5293_v52, 0  ;;  %v5300_v59 = vpack.i.b16 %v1502_v54, %v1501_v53  ;;  %v1508_v2 = vshrl.u32 %v1497_v55, 16  ;;  %v962_v3 = vcombine.low %v953_v56, %v961_v57  ;;  %v4481_v53 = vld [vmem:[%s478_s16 + $0x1] ss:$0 sm:$0xff]  ;;  %s4246_s16 = scalar_lea.sflag [#allocation3], %s5949_s20 }
 0x18a   : > { %4627 = vmatpush3.bf16.xpose.msra.mxu1 %v2343_v58  ;;  %v5310_v4 = vpack.i.b16 %v1497_v55, %v1473_v61  ;;  %v974_v5 = vshrl.u32 %v921_v60, 16  ;;  %v1507_v6 = vshrl.u32 %v1473_v61, 16  ;;  %v938_v7 = vcombine.low %v929_v62, %v937_v0 }
 0x18b   : > { %v2388_v1 = vsel %vm2339_vm2, %v5300_v59, 0  ;;  %4638 = vmatprep.subr.bf16.mxu1 %v5019_v10  ;;  %v972_v8 = vpack.i.b16 %v921_v60, %v897_v63  ;;  %v973_v9 = vshrl.u32 %v897_v63, 16  ;;  %v969_v18 = vrot.slane %v962_v3, %v5225_v50 }
 0x18c   : > { %4633 = vmatpush3.bf16.xpose.msra.mxu0 %v2388_v1  ;;  %v5313_v11 = vpack.i.b16 %v1508_v2, %v1507_v6  ;;  %v2433_v16 = vsel %vm2339_vm2, %v5310_v4, 0  ;;  %v945_v19 = vrot.slane %v938_v7, %v5225_v50  ;;  %v655_v27 = vsub.s32 2, %v5178_v12 }
 0x18d   : > { %4644 = vmatprep.subr.bf16.mxu0 %v5019_v10  ;;  %v975_v17 = vpack.i.b16 %v974_v5, %v973_v9  ;;  %v980_v23 = vshrl.u32 %v969_v18, 16 }
 0x18e   : > { %v2478_v21 = vsel %vm2339_vm2, %v5313_v11, 0  ;;  %v978_v25 = vpack.i.b16 %v969_v18, %v945_v19  ;;  %v979_v26 = vshrl.u32 %v945_v19, 16  ;;  %v5337_v29 = vrot.slane %v5184_v14, %v655_v27 }
 0x190   : > { %v981_v24 = vpack.i.b16 %v980_v23, %v979_v26  ;;  %v5340_v31 = vadd.f32 %v4624_v30, %v5337_v29  ;;  %v5345_v35 = vadd.f32 %v4625_v33, %v5337_v29 }
 0x191   : > { %4629 = vmatmul.mubr.msk.bf16.vlgmr.msra.gmra.mrb[4].mxu1 %vm2339_vm2, %v972_v8 }
 0x192   : > { %4639 = vmatpush3.bf16.xpose.msra.mxu1 %v2433_v16  ;;  %4640 = vmatprep.mubr.msk.bf16.mxu1 %vm5021_vm1, %v5019_v10 }
 0x193   : > { %4635 = vmatmul.mubr.msk.bf16.vlgmr.msra.gmra.mrb[8].mxu0 %vm2339_vm2, %v975_v17  ;;  %4650 = vmatprep.subr.bf16.mxu1 %v5019_v10 }
 0x194   : > { %4645 = vmatpush3.bf16.xpose.msra.mxu0 %v2478_v21  ;;  %4646 = vmatprep.mubr.msk.bf16.mxu0 %vm5021_vm1, %v5019_v10 }
 0x195   : > { %4656 = vmatprep.subr.bf16.mxu0 %v5019_v10 }
 0x199   : > { %4641 = vmatmul.mubr.msk.bf16.vlgmr.msra.gmra.mrb[8].mxu1 %vm2339_vm2, %v978_v25 }
 0x19a   : > { %4652 = vmatprep.mubr.msk.bf16.mxu1 %vm5021_vm1, %v5019_v10 }
 0x19b   : > { %4647 = vmatmul.mubr.msk.bf16.vlgmr.msra.gmra.mrb[12].mxu0 %vm2339_vm2, %v981_v24 }
 0x19c   : > { %4658 = vmatprep.mubr.msk.bf16.mxu0 %vm5021_vm1, %v5019_v10 }
 0x264   : > { %v2379_v38 = vpop.f32.mrb[4].mxu1 }
 0x265   : > { %v2532_v39 = vadd.f32 %v4480_v37, %v2379_v38  ;;  %v4630_v40 = vpop.f32.mrb[5].mxu1 }
 0x266   : > { %v2382_v41 = vpop.f32.mrb[6].mxu1  ;;  %v2424_v42 = vpop.f32.mrb[8].mxu0  ;;  %v707_v40 = vadd.f32 %v5347_v36, %v5337_v29 }
 0x267   : > { %v2533_v44 = vadd.f32 %v4480_v37, %v2424_v42  ;;  %v4631_v45 = vpop.f32.mrb[7].mxu1  ;;  %v4636_v46 = vpop.f32.mrb[9].mxu0  ;;  %v2537_v47 = vsel %vm2536_vm3, %v2532_v39, -inf }
 0x268   : > { %v2427_v48 = vpop.f32.mrb[10].mxu0  ;;  %2538 = vmax.xlane.f32.xlu0 %v2537_v47 }
 0x269   : > { %v4637_v49 = vpop.f32.mrb[11].mxu0  ;;  %v2540_v51 = vsel %vm2536_vm3, %v2533_v44, -inf }
 0x26a   : > { %2541 = vmax.xlane.f32.xlu1 %v2540_v51 }
 0x26c   : > { %v2469_v54 = vpop.f32.mrb[8].mxu1 }
 0x26d   : > { %v2534_v55 = vadd.f32 %v4481_v53, %v2469_v54  ;;  %v4642_v56 = vpop.f32.mrb[9].mxu1 }
 0x26e   : > { %v2472_v57 = vpop.f32.mrb[10].mxu1  ;;  %v2514_v58 = vpop.f32.mrb[12].mxu0 }
 0x26f   : > { %v2535_v60 = vadd.f32 %v4481_v53, %v2514_v58  ;;  %v4643_v61 = vpop.f32.mrb[11].mxu1  ;;  %v4648_v62 = vpop.f32.mrb[13].mxu0  ;;  %v2543_v63 = vsel %vm2536_vm3, %v2534_v55, -inf }
 0x270   : > { %v2517_v0 = vpop.f32.mrb[14].mxu0  ;;  %2544 = vmax.xlane.f32.xlu0 %v2543_v63 }
 0x271   : > { %v4649_v1 = vpop.f32.mrb[15].mxu0  ;;  %v2546_v2 = vsel %vm2536_vm3, %v2535_v60, -inf }
 0x274   : > { %2547 = vmax.xlane.f32.xlu0 %v2546_v2 }
 0x2f5   : > { %v2539_v3 = vpop.xlane.xlu0 %2538 }
 0x2f6   : > { %v2549_v5 = vsub.f32 %v2532_v39, %v2539_v3  ;;  %v704_v39 = vadd.f32 %v5342_v32, %v5337_v29  ;;  %v1848_v3 = vcombine.high %v707_v40, %v5019_v10 }
 0x2f7   : > { %v2542_v6 = vpop.xlane.xlu1 %2541 }
 0x2f8   : > { %v2553_v7 = vmul.f32 1.442695, %v2549_v5  ;;  %v2550_v8 = vsub.f32 %v2533_v44, %v2542_v6  ;;  %v1782_v42 = vcombine.high %v704_v39, %v5019_v10  ;;  %v1789_v46 = vrot.slane %v704_v39, %v5218_v43 }
 0x2fa   : > { %4862 = vpow2.f32 %v2553_v7  ;;  %v2555_v9 = vmul.f32 1.442695, %v2550_v8  ;;  %v1796_v32 = vrot.slane %v1782_v42, %v5218_v43 }
 0x2fc   : > { %4864 = vpow2.f32 %v2555_v9  ;;  %v1855_v9 = vrot.slane %v707_v40, %v5218_v43 }
 0x2fd   : > { %v2545_v16 = vpop.xlane.xlu0 %2544 }
 0x2fe   : > { %v2551_v17 = vsub.f32 %v2534_v55, %v2545_v16 }
 0x300   : > { %v2557_v18 = vmul.f32 1.442695, %v2551_v17 }
 0x301   : > { %v2548_v19 = vpop.xlane.xlu0 %2547 }
 0x302   : > { %4866 = vpow2.f32 %v2557_v18  ;;  %v2552_v21 = vsub.f32 %v2535_v60, %v2548_v19 }
 0x304   : > { %v5357_v23 = vpop.eup %4862  ;;  %v2559_v25 = vmul.f32 1.442695, %v2552_v21 }
 0x305   : > { %v2561_v26 = vsel %vm2536_vm3, %v5357_v23, 0.0 }
 0x306   : > { %v5361_v24 = vpop.eup %4864  ;;  %4868 = vpow2.f32 %v2559_v25  ;;  %2562 = vadd.xlane.f32.xlu1 %v2561_v26 }
 0x307   : > { %v2564_v27 = vsel %vm2536_vm3, %v5361_v24, 0.0 }
 0x308   : > { %2565 = vadd.xlane.f32.xlu0 %v2564_v27  ;;  %v1862_v27 = vrot.slane %v1848_v3, %v5218_v43 }
 0x30c   : > { %v5365_v30 = vpop.eup %4866 }
 0x30d   : > { %v2567_v33 = vsel %vm2536_vm3, %v5365_v30, 0.0 }
 0x30e   : > { %2568 = vadd.xlane.f32.xlu0 %v2567_v33 }
 0x310   : > { %v5369_v37 = vpop.eup %4868 }
 0x311   : > { %v2570_v38 = vsel %vm2536_vm3, %v5369_v37, 0.0 }
 0x312   : > { %2571 = vadd.xlane.f32.xlu0 %v2570_v38 }
 0x317   : > { %1776 = vrot.lane.b32.xlu1 %v704_v39, %s5020_s15 }
 0x328   : > { %1778 = vrot.lane.b32.xlu0 %v707_v40, %s5020_s15 }
 0x393   : > { %v2563_v41 = vpop.xlane.xlu1 %2562 }
 0x394   : > { %4870 = vrcp.f32 %v2563_v41 }
 0x395   : > { %v2566_v44 = vpop.xlane.xlu0 %2565 }
 0x396   : > { %4872 = vrcp.f32 %v2566_v44 }
 0x397   : > { %v1777_v45 = vpop.permute.xlu1 %1776 }
 0x398   : > { %v1797_v47 = vcombine.high %v1777_v45, %v5019_v10  ;;  %v1804_v48 = vrot.slane %v1777_v45, %v5218_v43 }
 0x39a   : > { %v1811_v49 = vrot.slane %v1797_v47, %v5218_v43  ;;  %v1812_v51 = vcombine.low %v1789_v46, %v1804_v48  ;;  %v1813_v53 = vcombine.high %v1789_v46, %v1804_v48 }
 0x39b   : > { %v2569_v29 = vpop.xlane.xlu0 %2568 }
 0x39c   : > { %v1820_v36 = vrot.slane %v1812_v51, %v5225_v50  ;;  %v1827_v54 = vrot.slane %v1813_v53, %v5225_v50  ;;  %v1828_v55 = vcombine.low %v1796_v32, %v1811_v49  ;;  %v1829_v56 = vcombine.high %v1796_v32, %v1811_v49 }
 0x39d   : > { %4874 = vrcp.f32 %v2569_v29 }
 0x39e   : > { %v1836_v57 = vrot.slane %v1828_v55, %v5225_v50  ;;  %v1843_v58 = vrot.slane %v1829_v56, %v5225_v50  ;;  %v1844_v60 = vcombine.high %v1820_v36, %v5019_v10  ;;  %v1845_v61 = vcombine.high %v1827_v54, %v5019_v10  ;;  %v4871_v25 = vpop.eup %4870 }
 0x39f   : > { %v2572_v62 = vpop.xlane.xlu0 %2571  ;;  %v2577_v32 = vmul.f32 %v4871_v25, %v5357_v23 }
 0x3a0   : > { %v1846_v63 = vcombine.high %v1836_v57, %v5019_v10  ;;  %v1847_v0 = vcombine.high %v1843_v58, %v5019_v10  ;;  %v4460_v1 = vpack.c.bf16 %v1836_v57, %v1820_v36  ;;  %v4461_v2 = vpack.c.bf16 %v1843_v58, %v1827_v54  ;;  %v4873_v41 = vpop.eup %4872 }
 0x3a1   : > { %v2578_v49 = vmul.f32 %v4873_v41, %v5361_v24  ;;  %4876 = vrcp.f32 %v2572_v62  ;;  %v2581_v3 = vpack.c.bf16 %v2577_v32, %v2577_v32 }
 0x3a2   : > { %v1937_v5 = vrot.slane %v4460_v1, %v5218_v43  ;;  %v1945_v6 = vrot.slane %v4461_v2, %v5218_v43  ;;  %v4462_v7 = vpack.c.bf16 %v1846_v63, %v1844_v60  ;;  %v4463_v8 = vpack.c.bf16 %v1847_v0, %v1845_v61 }
 0x3a3   : > { %v1779_v16 = vpop.permute.xlu0 %1778 }
 0x3a4   : > { %v1863_v17 = vcombine.high %v1779_v16, %v5019_v10  ;;  %v1870_v18 = vrot.slane %v1779_v16, %v5218_v43  ;;  %v1946_v19 = vcombine.low %v1937_v5, %v1945_v6  ;;  %v1961_v21 = vrot.slane %v4462_v7, %v5218_v43 }
 0x3a5   : > { %v1969_v26 = vrot.slane %v4463_v8, %v5218_v43  ;;  %v2582_v6 = vpack.c.bf16 %v2578_v49, %v2578_v49 }
 0x3a6   : > { %v1877_v33 = vrot.slane %v1863_v17, %v5218_v43  ;;  %v1878_v38 = vcombine.low %v1855_v9, %v1870_v18  ;;  %v1879_v39 = vcombine.high %v1855_v9, %v1870_v18  ;;  %v1953_v40 = vrot.slane %v1946_v19, %v5225_v50 }
 0x3a7   : > { %v1970_v42 = vcombine.low %v1961_v21, %v1969_v26  ;;  %v4875_v9 = vpop.eup %4874 }
 0x3a8   : > { %v1886_v44 = vrot.slane %v1878_v38, %v5225_v50  ;;  %v1893_v45 = vrot.slane %v1879_v39, %v5225_v50  ;;  %v1894_v46 = vcombine.low %v1862_v27, %v1877_v33  ;;  %v1895_v47 = vcombine.high %v1862_v27, %v1877_v33 }
 0x3a9   : > { %v1977_v48 = vrot.slane %v1970_v42, %v5225_v50  ;;  %v2029_v54 = vshrl.u32 %v1953_v40, 16  ;;  %v2579_v21 = vmul.f32 %v4875_v9, %v5365_v30 }
 0x3aa   : > { %v1902_v51 = vrot.slane %v1894_v46, %v5225_v50  ;;  %v1909_v53 = vrot.slane %v1895_v47, %v5225_v50  ;;  %v1910_v56 = vcombine.high %v1886_v44, %v5019_v10  ;;  %v1911_v29 = vcombine.high %v1893_v45, %v5019_v10 }
 0x3ab   : > { %v5411_v36 = vpack.i.b16 %v1977_v48, %v1953_v40  ;;  %v2030_v55 = vshrl.u32 %v1977_v48, 16  ;;  %v4877_v18 = vpop.eup %4876  ;;  %v2583_v40 = vpack.c.bf16 %v2579_v21, %v2579_v21 }
 0x3ac   : > { %v1912_v57 = vcombine.high %v1902_v51, %v5019_v10  ;;  %v4464_v58 = vpack.c.bf16 %v1902_v51, %v1886_v44  ;;  %v1913_v23 = vcombine.high %v1909_v53, %v5019_v10  ;;  %v4465_v60 = vpack.c.bf16 %v1909_v53, %v1893_v45 }
 0x3ad   : > { %v2588_v24 = vsel %vm2306_vm4, %v5411_v36, 0  ;;  %v5419_v61 = vpack.i.b16 %v2030_v55, %v2029_v54  ;;  %v2580_v33 = vmul.f32 %v4877_v18, %v5369_v37  ;;  %v4846_v37 = vld [vmem:[%s6069_s7] sm:$0xff]  }
 0x3ae   : > { %v1985_v62 = vrot.slane %v4464_v58, %v5218_v43  ;;  %v4466_v63 = vpack.c.bf16 %v1912_v57, %v1910_v56  ;;  %4651 = vmatpush3.bf16.msra.mxu1 %v2588_v24  ;;  %v1993_v0 = vrot.slane %v4465_v60, %v5218_v43  ;;  %v4467_v1 = vpack.c.bf16 %v1913_v23, %v1911_v29 }
 0x3af   : > { %v2633_v2 = vsel %vm2306_vm4, %v5419_v61, 0  ;;  %4662 = vmatprep.subr.bf16.mxu1 %v5019_v10  ;;  %v2584_v30 = vpack.c.bf16 %v2580_v33, %v2580_v33 }
 0x3b0   : > { %4657 = vmatpush3.bf16.msra.mxu0 %v2633_v2  ;;  %v2009_v5 = vrot.slane %v4466_v63, %v5218_v43  ;;  %v1994_v7 = vcombine.low %v1985_v62, %v1993_v0  ;;  %v2017_v8 = vrot.slane %v4467_v1, %v5218_v43 }
 0x3b1   : > { %4653 = vmatmul.mubr.msk.bf16.vlgmr.msra.gmra.mrb[12].mxu1 %vm2536_vm3, %v2581_v3  ;;  %4668 = vmatprep.subr.bf16.mxu0 %v5019_v10 }
 0x3b2   : > { %4664 = vmatprep.mubr.msk.bf16.mxu1 %vm5021_vm1, %v5019_v10  ;;  %v2001_v16 = vrot.slane %v1994_v7, %v5225_v50  ;;  %v2018_v17 = vcombine.low %v2009_v5, %v2017_v8 }
 0x3b3   : > { %4659 = vmatmul.mubr.msk.bf16.vlgmr.msra.gmra.mrb[16].mxu0 %vm2536_vm3, %v2582_v6 }
 0x3b4   : > { %4670 = vmatprep.mubr.msk.bf16.mxu0 %vm5021_vm1, %v5019_v10  ;;  %v2025_v19 = vrot.slane %v2018_v17, %v5225_v50  ;;  %v2035_v26 = vshrl.u32 %v2001_v16, 16 }
 0x3b6   : > { %v5438_v25 = vpack.i.b16 %v2025_v19, %v2001_v16  ;;  %v2036_v27 = vshrl.u32 %v2025_v19, 16 }
 0x3b8   : > { %v2678_v38 = vsel %vm2306_vm4, %v5438_v25, 0  ;;  %v5443_v39 = vpack.i.b16 %v2036_v27, %v2035_v26 }
 0x3b9   : > { %4663 = vmatpush3.bf16.msra.mxu1 %v2678_v38 }
 0x3ba   : > { %v2723_v41 = vsel %vm2306_vm4, %v5443_v39, 0  ;;  %4674 = vmatprep.subr.bf16.mxu1 %v5019_v10 }
 0x3bb   : > { %4669 = vmatpush3.bf16.msra.mxu0 %v2723_v41 }
 0x3bc   : > { %4665 = vmatmul.mubr.msk.bf16.vlgmr.msra.gmra.mrb[16].mxu1 %vm2536_vm3, %v2583_v40  ;;  %4682 = vmatprep.subr.bf16.mxu0 %v5019_v10 }
 0x3bd   : > { %4678 = vmatprep.mubr.msk.bf16.mxu1 %vm5021_vm1, %v5019_v10  ;;  %4675 = vmatpush3.bf16.msra.mxu1 %v4846_v37 }
 0x3be   : > { %4671 = vmatmul.mubr.msk.bf16.vlgmr.msra.gmra.mrb[20].mxu0 %vm2536_vm3, %v2584_v30  ;;  %4676 = vmatprep.subr.bf16.mxu1 %v5019_v10 }
 0x3bf   : > { %4686 = vmatprep.mubr.msk.bf16.mxu0 %vm5021_vm1, %v5019_v10 }
 0x484   : > { %v2624_v42 = vpop.f32.mrb[12].mxu1 }
 0x485   : > { %v2765_v44 = vcombine.high %v2624_v42, %v5019_v10  ;;  %v4654_v45 = vpop.f32.mrb[13].mxu1  ;;  %v2772_v48 = vrot.slane %v2624_v42, %v5218_v43 }
 0x486   : > { %v2627_v46 = vpop.f32.mrb[14].mxu1  ;;  %v2669_v47 = vpop.f32.mrb[16].mxu0 }
 0x487   : > { %v2780_v32 = vcombine.high %v2669_v47, %v5019_v10  ;;  %v2787_v49 = vrot.slane %v2669_v47, %v5218_v43  ;;  %v4655_v51 = vpop.f32.mrb[15].mxu1  ;;  %v4660_v53 = vpop.f32.mrb[17].mxu0  ;;  %v2779_v55 = vrot.slane %v2765_v44, %v5218_v43 }
 0x488   : > { %v2672_v54 = vpop.f32.mrb[18].mxu0 }
 0x489   : > { %v2794_v56 = vrot.slane %v2780_v32, %v5218_v43  ;;  %v2795_v29 = vcombine.low %v2772_v48, %v2787_v49  ;;  %v2796_v57 = vcombine.high %v2772_v48, %v2787_v49  ;;  %v4661_v58 = vpop.f32.mrb[19].mxu0 }
 0x48b   : > { %v2803_v23 = vrot.slane %v2795_v29, %v5225_v50  ;;  %v2810_v60 = vrot.slane %v2796_v57, %v5225_v50  ;;  %v2811_v24 = vcombine.low %v2779_v55, %v2794_v56  ;;  %v2812_v62 = vcombine.high %v2779_v55, %v2794_v56 }
 0x48d   : > { %v2819_v63 = vrot.slane %v2811_v24, %v5225_v50  ;;  %v2826_v0 = vrot.slane %v2812_v62, %v5225_v50  ;;  %v2897_v1 = vcombine.low %v2803_v23, %v2810_v60  ;;  %v4486_v2 = vcombine.high %v2803_v23, %v2810_v60 }
 0x48f   : > { %v2904_v3 = vrot.slane %v2897_v1, %v5218_v43  ;;  %v2912_v5 = vrot.slane %v4486_v2, %v5218_v43  ;;  %v2913_v6 = vcombine.low %v2819_v63, %v2826_v0  ;;  %v4487_v7 = vcombine.high %v2819_v63, %v2826_v0  ;;  %v2714_v8 = vpop.f32.mrb[16].mxu1  ;;  %v4847_v0 = vld [vmem:[%s6069_s7 + $0x8] sm:$0xff]  }
 0x490   : > { %v2831_v17 = vcombine.high %v2714_v8, %v5019_v10  ;;  %v4666_v18 = vpop.f32.mrb[17].mxu1  ;;  %v2838_v27 = vrot.slane %v2714_v8, %v5218_v43  ;;  %4677 = vmatpush3.bf16.msra.mxu1 %v4847_v0 }
 0x491   : > { %v2920_v9 = vrot.slane %v2913_v6, %v5218_v43  ;;  %v2928_v16 = vrot.slane %v4487_v7, %v5218_v43  ;;  %v2717_v19 = vpop.f32.mrb[18].mxu1  ;;  %v2759_v21 = vpop.f32.mrb[20].mxu0  ;;  %v2929_v26 = vcombine.low %v2904_v3, %v2912_v5  ;;  %4690 = vmatprep.subr.bf16.mxu1 %v5019_v10 }
 0x492   : > { %v2846_v33 = vcombine.high %v2759_v21, %v5019_v10  ;;  %v2853_v38 = vrot.slane %v2759_v21, %v5218_v43  ;;  %v4667_v41 = vpop.f32.mrb[19].mxu1  ;;  %v4672_v40 = vpop.f32.mrb[21].mxu0  ;;  %v2845_v37 = vrot.slane %v2831_v17, %v5218_v43 }
 0x493   : > { %v2937_v30 = vcombine.low %v2920_v9, %v2928_v16  ;;  %v2762_v42 = vpop.f32.mrb[22].mxu0  ;;  %v2936_v32 = vrot.slane %v2929_v26, %v5225_v50 }
 0x494   : > { %v2860_v44 = vrot.slane %v2846_v33, %v5218_v43  ;;  %v2861_v45 = vcombine.low %v2838_v27, %v2853_v38  ;;  %v2862_v46 = vcombine.high %v2838_v27, %v2853_v38  ;;  %v4673_v47 = vpop.f32.mrb[23].mxu0  ;;  %v3014_v33 = vsub.s32 3, %v5178_v12 }
 0x495   : > { %v2944_v48 = vrot.slane %v2937_v30, %v5225_v50 }
 0x496   : > { %v2869_v49 = vrot.slane %v2861_v45, %v5225_v50  ;;  %v2876_v51 = vrot.slane %v2862_v46, %v5225_v50  ;;  %v2877_v53 = vcombine.low %v2845_v37, %v2860_v44  ;;  %v2878_v54 = vcombine.high %v2845_v37, %v2860_v44  ;;  %v4918_v45 = vld [vmem:[%s5161_s19] sm:$0xff] }
 0x497   : > { %v2945_v55 = vcombine.low %v2936_v32, %v2944_v48  ;;  %v2946_v56 = vcombine.high %v2936_v32, %v2944_v48  ;;  %v5503_v38 = vrot.slane %v5184_v14, %v3014_v33  ;;  %v4919_v48 = vld [vmem:[%s5161_s19 + $0x8] sm:$0xff]  ;;  %v579_v14 = vmul.f32 0.25, %v5204_v34 }
 0x498   : > { %v2885_v29 = vrot.slane %v2877_v53, %v5225_v50  ;;  %v2892_v57 = vrot.slane %v2878_v54, %v5225_v50  ;;  %v2947_v58 = vcombine.low %v2869_v49, %v2876_v51  ;;  %v4488_v23 = vcombine.high %v2869_v49, %v2876_v51 }
 0x499   : > { %v1056_v34 = vcombine.high %v579_v14, %v5019_v10 }
 0x49a   : > { %v2954_v60 = vrot.slane %v2947_v58, %v5218_v43  ;;  %v2962_v24 = vrot.slane %v4488_v23, %v5218_v43  ;;  %v2963_v62 = vcombine.low %v2885_v29, %v2892_v57  ;;  %v4489_v63 = vcombine.high %v2885_v29, %v2892_v57 }
 0x49c   : > { %v2970_v1 = vrot.slane %v2963_v62, %v5218_v43  ;;  %v2978_v2 = vrot.slane %v4489_v63, %v5218_v43  ;;  %v2979_v3 = vcombine.low %v2954_v60, %v2962_v24  ;;  %v1063_v63 = vrot.slane %v579_v14, %v5218_v43 }
 0x49e   : > { %v2987_v5 = vcombine.low %v2970_v1, %v2978_v2  ;;  %v2986_v6 = vrot.slane %v2979_v3, %v5225_v50  ;;  %v1070_v2 = vrot.slane %v1056_v34, %v5218_v43 }
 0x4a0   : > { %v2994_v7 = vrot.slane %v2987_v5, %v5225_v50 }
 0x4a2   : > { %v2996_v8 = vcombine.high %v2986_v6, %v2994_v7  ;;  %v2995_v9 = vcombine.low %v2986_v6, %v2994_v7 }
 0x4a4   : > { %v4830_v16 = vpack.i.bf16 %v2996_v8, %v2946_v56 }
 0x4a6   : > { %4831 = vrot.lane.b32.xlu1 %v4830_v16, %s5024_s29 }
 0x518   : > { %v4832_v17 = vpop.permute.xlu1 %4831 }
 0x519   : > { %v4834_v18 = vunpack.i.h.bf16 %v4832_v17  ;;  %v4833_v19 = vunpack.i.l.bf16 %v4832_v17 }
 0x51b   : > { %v3005_v21 = vsel %vm2339_vm2, %v2945_v55, %v4833_v19  ;;  %v3006_v26 = vsel %vm2339_vm2, %v2995_v9, %v4834_v18 }
 0x51c   : > { %v3007_v27 = vpack.c.bf16 %v3006_v26, %v3005_v21 }
 0x51e   : > { %4679 = vmatmul.mubr.msk.bf16.vlgmr.msra.gmra.mrb[20].mxu1 %vm520_vm0, %v3007_v27 }
 0x51f   : > { %4698 = vmatprep.mubr.msk.bf16.mxu1 %vm5021_vm1, %v5019_v10 }
 0x5f1   : > { %v3065_v41 = vpop.f32.mrb[20].mxu1 }
 0x5f2   : > { %v3066_v40 = vadd.f32 %v3065_v41, %v5503_v38  ;;  %v4680_v30 = vpop.f32.mrb[21].mxu1 }
 0x5f3   : > { %v3068_v37 = vpop.f32.mrb[22].mxu1 }
 0x5f4   : > { %v3069_v42 = vadd.f32 %v3068_v37, %v5503_v38  ;;  %v4681_v44 = vpop.f32.mrb[23].mxu1  ;;  %v3072_v46 = vadd.f32 %v4918_v45, %v3066_v40 }
 0x5f6   : > { %v3074_v47 = vsel %vm520_vm0, %v3072_v46, 0.0  ;;  %v3073_v32 = vadd.f32 %v4919_v48, %v3069_v42  ;;  %v578_v48 = vmul.f32 0.25, %v5195_v22  ;;  %v4849_v22 = vld [vmem:[%s6070_s8 + $0x8] sm:$0xff]  }
 0x5f7   : > { %3075 = vadd.xlane.f32.xlu1 %v3074_v47 }
 0x5f8   : > { %v3077_v49 = vsel %vm520_vm0, %v3073_v32, 0.0 }
 0x5f9   : > { %3078 = vadd.xlane.f32.xlu0 %v3077_v49 }
 0x60f   : > { %1512 = vrot.lane.b32.xlu0 %v5193_v20, %s5020_s15 }
 0x613   : > { %986 = vrot.lane.b32.xlu0 %v579_v14, %s5020_s15 }
 0x684   : > { %v3076_v51 = vpop.xlane.xlu1 %3075 }
 0x685   : > { %v3081_v53 = vmul.f32 0.03125, %v3076_v51  ;;  %v4848_v51 = vld [vmem:[%s6070_s8] sm:$0xff]  }
 0x686   : > { %v3079_v54 = vpop.xlane.xlu0 %3078  ;;  %4683 = vmatpush3.bf16.msra.mxu0 %v4848_v51 }
 0x687   : > { %v5515_v55 = vsub.f32 %v3072_v46, %v3081_v53  ;;  %v3082_v56 = vmul.f32 0.03125, %v3079_v54  ;;  %4684 = vmatprep.subr.bf16.mxu0 %v5019_v10  ;;  %v1518_v54 = vcombine.high %v5193_v20, %v5019_v10 }
 0x689   : > { %v5517_v29 = vsub.f32 %v3073_v32, %v3082_v56  ;;  %v3085_v57 = vmul.f32 %v5515_v55, %v5515_v55 }
 0x68a   : > { %v1513_v58 = vpop.permute.xlu0 %1512  ;;  %4685 = vmatpush3.bf16.msra.mxu0 %v4849_v22 }
 0x68b   : > { %v3087_v23 = vsel %vm520_vm0, %v3085_v57, 0.0  ;;  %v3086_v60 = vmul.f32 %v5517_v29, %v5517_v29  ;;  %4702 = vmatprep.subr.bf16.mxu0 %v5019_v10  ;;  %v1533_v53 = vcombine.high %v1513_v58, %v5019_v10  ;;  %v1532_v57 = vrot.slane %v1518_v54, %v5218_v43 }
 0x68c   : > { %3088 = vadd.xlane.f32.xlu1 %v3087_v23  ;;  %v1540_v23 = vrot.slane %v1513_v58, %v5218_v43  ;;  %v3103_v54 = vsub.s32 4, %v5178_v12 }
 0x68d   : > { %v3090_v62 = vsel %vm520_vm0, %v3086_v60, 0.0  ;;  %v1547_v56 = vrot.slane %v1533_v53, %v5218_v43  ;;  %v1525_v60 = vrot.slane %v5193_v20, %v5218_v43  ;;  %v1584_v53 = vcombine.high %v5197_v28, %v5019_v10 }
 0x68e   : > { %v987_v24 = vpop.permute.xlu0 %986 }
 0x68f   : > { %v1071_v0 = vcombine.high %v987_v24, %v5019_v10  ;;  %v1078_v1 = vrot.slane %v987_v24, %v5218_v43  ;;  %v1564_v34 = vcombine.low %v1532_v57, %v1547_v56  ;;  %v1565_v24 = vcombine.high %v1532_v57, %v1547_v56 }
 0x690   : > { %3091 = vadd.xlane.f32.xlu1 %v3090_v62  ;;  %v1548_v62 = vcombine.low %v1525_v60, %v1540_v23 }
 0x691   : > { %v1085_v3 = vrot.slane %v1071_v0, %v5218_v43  ;;  %v1086_v5 = vcombine.low %v1063_v63, %v1078_v1  ;;  %v1087_v6 = vcombine.high %v1063_v63, %v1078_v1  ;;  %v1549_v63 = vcombine.high %v1525_v60, %v1540_v23 }
 0x692   : > { %v1572_v0 = vrot.slane %v1564_v34, %v5225_v50  ;;  %v1579_v1 = vrot.slane %v1565_v24, %v5225_v50 }
 0x693   : > { %v1094_v7 = vrot.slane %v1086_v5, %v5225_v50  ;;  %v1101_v8 = vrot.slane %v1087_v6, %v5225_v50  ;;  %v1102_v9 = vcombine.low %v1070_v2, %v1085_v3  ;;  %v1103_v16 = vcombine.high %v1070_v2, %v1085_v3 }
 0x694   : > { %v1556_v2 = vrot.slane %v1548_v62, %v5225_v50  ;;  %v1563_v3 = vrot.slane %v1549_v63, %v5225_v50  ;;  %v1582_v5 = vcombine.high %v1572_v0, %v5019_v10  ;;  %v1583_v6 = vcombine.high %v1579_v1, %v5019_v10 }
 0x695   : > { %v1110_v17 = vrot.slane %v1102_v9, %v5225_v50  ;;  %v1117_v18 = vrot.slane %v1103_v16, %v5225_v50  ;;  %v1118_v19 = vcombine.high %v1094_v7, %v5019_v10  ;;  %v1119_v21 = vcombine.high %v1101_v8, %v5019_v10 }
 0x696   : > { %v1580_v58 = vcombine.high %v1556_v2, %v5019_v10  ;;  %v1581_v20 = vcombine.high %v1563_v3, %v5019_v10  ;;  %v4452_v9 = vpack.c.bf16 %v1572_v0, %v1556_v2  ;;  %v4453_v16 = vpack.c.bf16 %v1579_v1, %v1563_v3  ;;  %v5602_v3 = vld [vmem:[%s6072_s10] sm:$0xff] }
 0x697   : > { %v1120_v26 = vcombine.high %v1110_v17, %v5019_v10  ;;  %v1121_v27 = vcombine.high %v1117_v18, %v5019_v10  ;;  %v4440_v33 = vpack.c.bf16 %v1110_v17, %v1094_v7  ;;  %v4441_v41 = vpack.c.bf16 %v1117_v18, %v1101_v8 }
 0x698   : > { %v4454_v7 = vpack.c.bf16 %v1582_v5, %v1580_v58  ;;  %v4455_v8 = vpack.c.bf16 %v1583_v6, %v1581_v20  ;;  %v1598_v2 = vrot.slane %v1584_v53, %v5218_v43  ;;  %v5605_v5 = vrot.slane %v5602_v3, %v3103_v54 }
 0x699   : > { %v1193_v40 = vrot.slane %v4440_v33, %v5218_v43  ;;  %v1201_v30 = vrot.slane %v4441_v41, %v5218_v43  ;;  %v4442_v37 = vpack.c.bf16 %v1120_v26, %v1118_v19  ;;  %v4443_v42 = vpack.c.bf16 %v1121_v27, %v1119_v21 }
 0x69a   : > { %v1697_v19 = vrot.slane %v4454_v7, %v5218_v43  ;;  %v1705_v21 = vrot.slane %v4455_v8, %v5218_v43  ;;  %v1673_v27 = vrot.slane %v4452_v9, %v5218_v43  ;;  %v1681_v33 = vrot.slane %v4453_v16, %v5218_v43 }
 0x69b   : > { %v1202_v44 = vcombine.low %v1193_v40, %v1201_v30  ;;  %v1217_v45 = vrot.slane %v4442_v37, %v5218_v43  ;;  %v1225_v46 = vrot.slane %v4443_v42, %v5218_v43  ;;  %v990_v30 = vcombine.high %v578_v48, %v5019_v10 }
 0x69c   : > { %v1706_v42 = vcombine.low %v1697_v19, %v1705_v21  ;;  %v3109_v8 = vsub.s32 5, %v5178_v12 }
 0x69d   : > { %v1226_v47 = vcombine.low %v1217_v45, %v1225_v46  ;;  %v5545_v32 = vrot.slane %v1202_v44, %v5225_v50  ;;  %v1682_v44 = vcombine.low %v1673_v27, %v1681_v33  ;;  %v997_v46 = vrot.slane %v578_v48, %v5218_v43 }
 0x69e   : > { %v1004_v22 = vrot.slane %v990_v30, %v5218_v43  ;;  %v1713_v60 = vrot.slane %v1706_v42, %v5225_v50  ;;  %v5623_v53 = vrot.slane %v5602_v3, %v3109_v8 }
 0x69f   : > { %v5548_v49 = vrot.slane %v1226_v47, %v5225_v50  ;;  %v1689_v24 = vrot.slane %v1682_v44, %v5225_v50 }
 0x6a1   : > { %984 = vrot.lane.b32.xlu1 %v578_v48, %s5020_s15  ;;  %v1242_v14 = vpack.i.b16 %v5548_v49, %v5545_v32  ;;  %v1591_v48 = vrot.slane %v5197_v28, %v5218_v43  ;;  %v1764_v9 = vpack.i.b16 %v1713_v60, %v1689_v24  ;;  %v1765_v30 = vshrl.u32 %v1689_v24, 16 }
 0x6a5   : > { %1514 = vrot.lane.b32.xlu1 %v5197_v28, %s5020_s15 }
 0x719   : > { %v3089_v17 = vpop.xlane.xlu1 %3088 }
 0x71a   : > { %v3093_v18 = vmul.f32 0.03125, %v3089_v17 }
 0x71c   : > { %v3095_v26 = vadd.f32 1e-12, %v3093_v18 }
 0x71d   : > { %v3092_v41 = vpop.xlane.xlu1 %3091 }
 0x71e   : > { %4878 = vrsqrt.f32 %v3095_v26  ;;  %v3094_v40 = vmul.f32 0.03125, %v3092_v41 }
 0x720   : > { %v3096_v37 = vadd.f32 1e-12, %v3094_v40 }
 0x721   : > { %v985_v45 = vpop.permute.xlu1 %984 }
 0x722   : > { %4880 = vrsqrt.f32 %v3096_v37  ;;  %v1005_v47 = vcombine.high %v985_v45, %v5019_v10  ;;  %v1012_v51 = vrot.slane %v985_v45, %v5218_v43  ;;  %v1766_v37 = vshrl.u32 %v1713_v60, 16 }
 0x724   : > { %v1019_v56 = vrot.slane %v1005_v47, %v5218_v43  ;;  %v1020_v57 = vcombine.low %v997_v46, %v1012_v51  ;;  %v1021_v23 = vcombine.high %v997_v46, %v1012_v51  ;;  %v2302_v47 = vrot.slane %v1764_v9, 4 }
 0x725   : > { %v1515_v34 = vpop.permute.xlu1 %1514 }
 0x726   : > { %v1028_v62 = vrot.slane %v1020_v57, %v5225_v50  ;;  %v1035_v63 = vrot.slane %v1021_v23, %v5225_v50  ;;  %v1036_v0 = vcombine.low %v1004_v22, %v1019_v56  ;;  %v1037_v1 = vcombine.high %v1004_v22, %v1019_v56 }
 0x727   : > { %v1599_v28 = vcombine.high %v1515_v34, %v5019_v10  ;;  %v1606_v6 = vrot.slane %v1515_v34, %v5218_v43 }
 0x728   : > { %v4879_v58 = vpop.eup %4878  ;;  %v1044_v20 = vrot.slane %v1036_v0, %v5225_v50  ;;  %v1051_v7 = vrot.slane %v1037_v1, %v5225_v50  ;;  %v1052_v16 = vcombine.high %v1028_v62, %v5019_v10  ;;  %v1053_v26 = vcombine.high %v1035_v63, %v5019_v10 }
 0x729   : > { %v1613_v17 = vrot.slane %v1599_v28, %v5218_v43  ;;  %v1614_v18 = vcombine.low %v1591_v48, %v1606_v6  ;;  %v1615_v19 = vcombine.high %v1591_v48, %v1606_v6  ;;  %v3099_v21 = vmul.f32 %v4879_v58, %v5515_v55 }
 0x72a   : > { %v1054_v27 = vcombine.high %v1044_v20, %v5019_v10  ;;  %v1055_v33 = vcombine.high %v1051_v7, %v5019_v10  ;;  %v4436_v56 = vpack.c.bf16 %v1044_v20, %v1028_v62  ;;  %v4437_v57 = vpack.c.bf16 %v1051_v7, %v1035_v63 }
 0x72b   : > { %v1622_v41 = vrot.slane %v1614_v18, %v5225_v50  ;;  %v1630_v40 = vcombine.low %v1598_v2, %v1613_v17  ;;  %v1629_v46 = vrot.slane %v1615_v19, %v5225_v50  ;;  %v1631_v55 = vcombine.high %v1598_v2, %v1613_v17 }
 0x72c   : > { %v4881_v42 = vpop.eup %4880  ;;  %v4438_v44 = vpack.c.bf16 %v1054_v27, %v1052_v16  ;;  %v4439_v45 = vpack.c.bf16 %v1055_v33, %v1053_v26  ;;  %v3105_v54 = vmul.f32 %v5605_v5, %v3099_v21  ;;  %v1767_v2 = vpack.i.b16 %v1766_v37, %v1765_v30 }
 0x72d   : > { %v3100_v51 = vmul.f32 %v4881_v42, %v5517_v29  ;;  %v1638_v22 = vrot.slane %v1630_v40, %v5225_v50  ;;  %v1646_v23 = vcombine.high %v1622_v41, %v5019_v10  ;;  %v1645_v48 = vrot.slane %v1631_v55, %v5225_v50 }
 0x72e   : > { %v1169_v29 = vrot.slane %v4438_v44, %v5218_v43  ;;  %v1177_v0 = vrot.slane %v4439_v45, %v5218_v43  ;;  %v1647_v1 = vcombine.high %v1629_v46, %v5019_v10  ;;  %v1145_v58 = vrot.slane %v4436_v56, %v5218_v43 }
 0x72f   : > { %v3106_v60 = vmul.f32 %v5605_v5, %v3100_v51  ;;  %v1648_v34 = vcombine.high %v1638_v22, %v5019_v10  ;;  %v4456_v24 = vpack.c.bf16 %v1638_v22, %v1622_v41  ;;  %v1649_v28 = vcombine.high %v1645_v48, %v5019_v10 }
 0x730   : > { %v4457_v63 = vpack.c.bf16 %v1645_v48, %v1629_v46  ;;  %v1153_v20 = vrot.slane %v4437_v57, %v5218_v43  ;;  %v5638_v7 = vadd.f32 %v5623_v53, %v3105_v54  ;;  %v2309_v18 = vsel %vm2306_vm4, %v5293_v52, %v2302_v47 }
 0x731   : > { %v1721_v62 = vrot.slane %v4456_v24, %v5218_v43  ;;  %v4458_v6 = vpack.c.bf16 %v1648_v34, %v1646_v23  ;;  %v5641_v8 = vadd.f32 %v5623_v53, %v3106_v60  ;;  %v4459_v17 = vpack.c.bf16 %v1649_v28, %v1647_v1  ;;  %v4852_v1 = vld [vmem:[%s6071_s9 + $0x10] sm:$0xff]  }
 0x732   : > { %v1729_v9 = vrot.slane %v4457_v63, %v5218_v43  ;;  %v1178_v19 = vcombine.low %v1169_v29, %v1177_v0  ;;  %v1154_v33 = vcombine.low %v1145_v58, %v1153_v20  ;;  %v3313_v41 = vsel %vm2339_vm2, %v2309_v18, 0  ;;  %v4851_v0 = vld [vmem:[%s6071_s9 + $0x8] sm:$0xff]  }
 0x733   : > { %v1745_v16 = vrot.slane %v4458_v6, %v5218_v43  ;;  %v3113_v21 = vpack.c.bf16 %v5641_v8, %v5638_v7  ;;  %v1753_v27 = vrot.slane %v4459_v17, %v5218_v43  ;;  %v2303_v30 = vrot.slane %v1767_v2, 4  ;;  %v4853_v2 = vld [vmem:[%s6071_s9 + $0x18] sm:$0xff]  }
 0x734   : > { %v1730_v26 = vcombine.low %v1721_v62, %v1729_v9  ;;  %v1185_v37 = vrot.slane %v1178_v19, %v5225_v50  ;;  %v1161_v44 = vrot.slane %v1154_v33, %v5225_v50  ;;  %v1244_v34 = vshrl.u32 %v5548_v49, 16  ;;  %v4505_v19 = vld [vmem:[%s5712_s26] ss:$0 sm:$0xff] }
 0x735   : > { %4687 = vmatmul.mubr.msk.bf16.vlgmr.msra.gmra.mrb[24].mxu0 %vm520_vm0, %v3113_v21  ;;  %v1754_v40 = vcombine.low %v1745_v16, %v1753_v27  ;;  %v2312_v45 = vsel %vm2306_vm4, %v5300_v59, %v2303_v30  ;;  %v1243_v24 = vshrl.u32 %v5545_v32, 16  ;;  %v3120_v28 = vsub.s32 6, %v5178_v12 }
 0x736   : > { %4703 = vmatpush3.bf16.xpose.msra.mxu0 %v3313_v41  ;;  %4704 = vmatprep.mubr.msk.bf16.mxu0 %vm5021_vm1, %v5019_v10  ;;  %v5655_v52 = vrot.slane %v1730_v26, %v5225_v50  ;;  %v1236_v55 = vpack.i.b16 %v1185_v37, %v1161_v44  ;;  %v3358_v54 = vsel %vm2339_vm2, %v2312_v45, 0  ;;  %v1238_v59 = vshrl.u32 %v1185_v37, 16 }
 0x737   : > { %4708 = vmatprep.subr.bf16.mxu0 %v5019_v10  ;;  %v5660_v42 = vrot.slane %v1754_v40, %v5225_v50  ;;  %v1237_v57 = vshrl.u32 %v1161_v44, 16  ;;  %v1245_v29 = vpack.i.b16 %v1244_v34, %v1243_v24  ;;  %v5704_v62 = vrot.slane %v5602_v3, %v3120_v28  ;;  %v4506_v34 = vld [vmem:[%s5712_s26 + $0x1] ss:$0 sm:$0xff]  ;;  %s6075_s26 = sshll.u32 %s5949_s20, 4 }
 0x738   : > { %v1771_v46 = vshrl.u32 %v5655_v52, 16  ;;  %s455_s17 = scalar_lea.vmem [#allocation2], %s6075_s26  ;;  %s5025_s26 = smov [#allocation2]  }
 0x739   : > { %v1772_v47 = vshrl.u32 %v5660_v42, 16  ;;  %v1770_v51 = vpack.i.b16 %v5660_v42, %v5655_v52  ;;  %v1239_v60 = vpack.i.b16 %v1238_v59, %v1237_v57  ;;  %s4927_s0 = sshll.u32 %s5025_s26, 4  ;;  %s4928_s0 = int_to_ptr.vmem [resolvable:$false] %s4927_s0 }
 0x73a   : > { %s4929_s1 = scalar_lea.vmem %s4928_s0, 512 }
 0x73b   : > { %v1773_v22 = vpack.i.b16 %v1772_v47, %v1771_v46  ;;  %v2304_v46 = vrot.slane %v1770_v51, 4 }
 0x73d   : > { %4705 = vmatmul.mubr.msk.bf16.vlgmr.msra.gmra.mrb[28].mxu0 %vm2339_vm2, %v1236_v55  ;;  %v2305_v56 = vrot.slane %v1773_v22, 4 }
 0x73e   : > { %4709 = vmatpush3.bf16.xpose.msra.mxu0 %v3358_v54  ;;  %4710 = vmatprep.mubr.msk.bf16.mxu0 %vm5021_vm1, %v5019_v10 }
 0x73f   : > { %4720 = vmatprep.subr.bf16.mxu0 %v5019_v10  ;;  %v2318_v23 = vsel %vm2306_vm4, %v5313_v11, %v2305_v56  ;;  %v4850_v11 = vld [vmem:[%s6071_s9] sm:$0xff]  }
 0x740   : > { %v3448_v48 = vsel %vm2339_vm2, %v2318_v23, 0  ;;  %4691 = vmatpush3.bf16.msra.mxu1 %v4850_v11 }
 0x741   : > { %4692 = vmatprep.subr.bf16.mxu1 %v5019_v10 }
 0x744   : > { %4693 = vmatpush3.bf16.msra.mxu1 %v4851_v0 }
 0x745   : > { %4711 = vmatmul.mubr.msk.bf16.vlgmr.msra.gmra.mrb[32].mxu0 %vm2339_vm2, %v1239_v60  ;;  %4694 = vmatprep.subr.bf16.mxu1 %v5019_v10  ;;  %v2315_v60 = vsel %vm2306_vm4, %v5310_v4, %v2304_v46 }
 0x746   : > { %4721 = vmatpush3.bf16.xpose.msra.mxu0 %v3448_v48  ;;  %4722 = vmatprep.mubr.msk.bf16.mxu0 %vm5021_vm1, %v5019_v10  ;;  %v3403_v51 = vsel %vm2339_vm2, %v2315_v60, 0 }
 0x747   : > { %4732 = vmatprep.subr.bf16.mxu0 %v5019_v10 }
 0x748   : > { %4695 = vmatpush3.bf16.msra.mxu1 %v4852_v1 }
 0x749   : > { %4696 = vmatprep.subr.bf16.mxu1 %v5019_v10 }
 0x74c   : > { %4697 = vmatpush3.bf16.msra.mxu1 %v4853_v2 }
 0x74d   : > { %4723 = vmatmul.mubr.msk.bf16.vlgmr.msra.gmra.mrb[36].mxu0 %vm2339_vm2, %v1245_v29  ;;  %4714 = vmatprep.subr.bf16.mxu1 %v5019_v10 }
 0x74e   : > { %4734 = vmatprep.mubr.msk.bf16.mxu0 %vm5021_vm1, %v5019_v10 }
 0x808   : > { %v3171_v63 = vpop.f32.mrb[24].mxu0 }
 0x809   : > { %v3172_v6 = vadd.f32 %v3171_v63, %v5704_v62  ;;  %v4688_v58 = vpop.f32.mrb[25].mxu0 }
 0x80a   : > { %v3174_v20 = vpop.f32.mrb[26].mxu0 }
 0x80b   : > { %v3180_v9 = vmul.f32 0.70710677, %v3172_v6  ;;  %v3175_v16 = vadd.f32 %v3174_v20, %v5704_v62  ;;  %v4689_v17 = vpop.f32.mrb[27].mxu0  ;;  %v3178_v47 = vmul.f32 0.5, %v3172_v6 }
 0x80d   : > { %4882 = verf.f32 %v3180_v9  ;;  %v3181_v18 = vmul.f32 0.70710677, %v3175_v16  ;;  %v3179_v55 = vmul.f32 0.5, %v3175_v16 }
 0x80f   : > { %4884 = verf.f32 %v3181_v18 }
 0x810   : > { %v3349_v21 = vpop.f32.mrb[28].mxu0 }
 0x811   : > { %v3502_v26 = vadd.f32 %v4505_v19, %v3349_v21  ;;  %v4706_v27 = vpop.f32.mrb[29].mxu0 }
 0x812   : > { %v3352_v33 = vpop.f32.mrb[30].mxu0 }
 0x813   : > { %v4707_v41 = vpop.f32.mrb[31].mxu0  ;;  %v3506_v40 = vsel %vm2339_vm2, %v3502_v26, -inf }
 0x814   : > { %3507 = vmax.xlane.f32.xlu1 %v3506_v40 }
 0x817   : > { %v4883_v30 = vpop.eup %4882 }
 0x818   : > { %v3184_v52 = vadd.f32 1.0, %v4883_v30  ;;  %v3394_v37 = vpop.f32.mrb[32].mxu0 }
 0x819   : > { %v4885_v42 = vpop.eup %4884  ;;  %v3503_v44 = vadd.f32 %v4505_v19, %v3394_v37  ;;  %v4712_v45 = vpop.f32.mrb[33].mxu0 }
 0x81a   : > { %v3185_v22 = vadd.f32 1.0, %v4885_v42  ;;  %v3397_v54 = vpop.f32.mrb[34].mxu0  ;;  %v3186_v57 = vmul.f32 %v3184_v52, %v3178_v47 }
 0x81b   : > { %v4713_v56 = vpop.f32.mrb[35].mxu0  ;;  %v3509_v59 = vsel %vm2339_vm2, %v3503_v44, -inf }
 0x81c   : > { %v3187_v23 = vmul.f32 %v3185_v22, %v3179_v55  ;;  %3510 = vmax.xlane.f32.xlu0 %v3509_v59  ;;  %v2046_v22 = vcombine.high %v5340_v31, %v5019_v10  ;;  %v2053_v56 = vrot.slane %v5340_v31, %v5218_v43 }
 0x81e   : > { %v3188_v48 = vpack.c.bf16 %v3187_v23, %v3186_v57  ;;  %v2060_v23 = vrot.slane %v2046_v22, %v5218_v43 }
 0x820   : > { %4699 = vmatmul.mubr.msk.bf16.vlgmr.msra.gmra.mrb[24].mxu1 %vm3225_vm5, %v3188_v48  ;;  %v3484_v24 = vpop.f32.mrb[36].mxu0 }
 0x821   : > { %4715 = vmatpush3.bf16.xpose.msra.mxu1 %v3403_v51  ;;  %v3505_v29 = vadd.f32 %v4506_v34, %v3484_v24  ;;  %v4724_v11 = vpop.f32.mrb[37].mxu0  ;;  %4716 = vmatprep.mubr.msk.bf16.mxu1 %vm5021_vm1, %v5019_v10 }
 0x822   : > { %v3487_v0 = vpop.f32.mrb[38].mxu0  ;;  %4726 = vmatprep.subr.bf16.mxu1 %v5019_v10 }
 0x823   : > { %v4725_v1 = vpop.f32.mrb[39].mxu0  ;;  %v3515_v2 = vsel %vm2339_vm2, %v3505_v29, -inf }
 0x824   : > { %3516 = vmax.xlane.f32.xlu1 %v3515_v2 }
 0x828   : > { %4717 = vmatmul.mubr.msk.bf16.vlgmr.msra.gmra.mrb[28].mxu1 %vm2339_vm2, %v1242_v14 }
 0x829   : > { %4728 = vmatprep.mubr.msk.bf16.mxu1 %vm5021_vm1, %v5019_v10 }
 0x8a1   : > { %v3508_v6 = vpop.xlane.xlu1 %3507 }
 0x8a2   : > { %v3518_v14 = vsub.f32 %v3502_v26, %v3508_v6 }
 0x8a4   : > { %v3522_v18 = vmul.f32 1.442695, %v3518_v14 }
 0x8a9   : > { %v3511_v4 = vpop.xlane.xlu0 %3510 }
 0x8aa   : > { %v3519_v28 = vsub.f32 %v3503_v44, %v3511_v4 }
 0x8ac   : > { %v3524_v63 = vmul.f32 1.442695, %v3519_v28 }
 0x8ae   : > { %4886 = vpow2.f32 %v3524_v63 }
 0x8b1   : > { %v3517_v58 = vpop.xlane.xlu1 %3516 }
 0x8b2   : > { %v3521_v20 = vsub.f32 %v3505_v29, %v3517_v58 }
 0x8b4   : > { %v3528_v9 = vmul.f32 1.442695, %v3521_v20 }
 0x8b6   : > { %4888 = vpow2.f32 %v3528_v9 }
 0x8b7   : > { %4890 = vpow2.f32 %v3522_v18 }
 0x8b8   : > { %v5732_v16 = vpop.eup %4886 }
 0x8b9   : > { %v3533_v17 = vsel %vm2339_vm2, %v5732_v16, 0.0 }
 0x8ba   : > { %3534 = vadd.xlane.f32.xlu1 %v3533_v17 }
 0x8c0   : > { %v5736_v32 = vpop.eup %4888 }
 0x8c1   : > { %v3539_v49 = vsel %vm2339_vm2, %v5736_v32, 0.0  ;;  %v4891_v44 = vpop.eup %4890 }
 0x8c2   : > { %3540 = vadd.xlane.f32.xlu1 %v3539_v49  ;;  %v3530_v45 = vsel %vm2339_vm2, %v4891_v44, 0.0 }
 0x8f3   : > { %v5740_v19 = vpop.f32.mrb[24].mxu1 }
 0x8f4   : > { %v4700_v21 = vpop.f32.mrb[25].mxu1 }
 0x8f5   : > { %v5742_v27 = vpop.f32.mrb[26].mxu1 }
 0x8f6   : > { %v4701_v33 = vpop.f32.mrb[27].mxu1 }
 0x8fb   : > { %v3439_v41 = vpop.f32.mrb[28].mxu1 }
 0x8fc   : > { %v3504_v40 = vadd.f32 %v4506_v34, %v3439_v41  ;;  %v4718_v30 = vpop.f32.mrb[29].mxu1 }
 0x8fd   : > { %v3442_v52 = vpop.f32.mrb[30].mxu1 }
 0x8fe   : > { %v4719_v37 = vpop.f32.mrb[31].mxu1  ;;  %v3512_v42 = vsel %vm2339_vm2, %v3504_v40, -inf }
 0x8ff   : > { %3513 = vmax.xlane.f32.xlu0 %v3512_v42 }
 0x903   : > { %3531 = vadd.xlane.f32.xlu0 %v3530_v45 }
 0x919   : > { %2040 = vrot.lane.b32.xlu0 %v5340_v31, %s5020_s15 }
 0x947   : > { %v3535_v1 = vpop.xlane.xlu1 %3534 }
 0x98c   : > { %v3514_v26 = vpop.xlane.xlu0 %3513 }
 0x98d   : > { %v3520_v46 = vsub.f32 %v3504_v40, %v3514_v26 }
 0x98f   : > { %v3526_v47 = vmul.f32 1.442695, %v3520_v46 }
 0x990   : > { %v3532_v55 = vpop.xlane.xlu0 %3531 }
 0x991   : > { %4892 = vpow2.f32 %v3526_v47 }
 0x992   : > { %4894 = vrcp.f32 %v3532_v55 }
 0x993   : > { %4896 = vrcp.f32 %v3535_v1 }
 0x994   : > { %v2041_v54 = vpop.permute.xlu0 %2040 }
 0x995   : > { %v2061_v59 = vcombine.high %v2041_v54, %v5019_v10  ;;  %v2068_v57 = vrot.slane %v2041_v54, %v5218_v43 }
 0x997   : > { %v2075_v60 = vrot.slane %v2061_v59, %v5218_v43  ;;  %v2076_v48 = vcombine.low %v2053_v56, %v2068_v57  ;;  %v2077_v34 = vcombine.high %v2053_v56, %v2068_v57 }
 0x999   : > { %v2084_v51 = vrot.slane %v2076_v48, %v5225_v50  ;;  %v2091_v24 = vrot.slane %v2077_v34, %v5225_v50  ;;  %v2092_v29 = vcombine.low %v2060_v23, %v2075_v60  ;;  %v2093_v11 = vcombine.high %v2060_v23, %v2075_v60 }
 0x99a   : > { %v2119_v48 = vrot.slane %v5345_v35, %v5218_v43 }
 0x99b   : > { %v5758_v0 = vpop.eup %4892  ;;  %v2100_v31 = vrot.slane %v2092_v29, %v5225_v50  ;;  %v2107_v2 = vrot.slane %v2093_v11, %v5225_v50  ;;  %v2108_v4 = vcombine.high %v2084_v51, %v5019_v10  ;;  %v2109_v63 = vcombine.high %v2091_v24, %v5019_v10 }
 0x99c   : > { %v3536_v28 = vsel %vm2339_vm2, %v5758_v0, 0.0  ;;  %v4895_v37 = vpop.eup %4894 }
 0x99d   : > { %v2110_v6 = vcombine.high %v2100_v31, %v5019_v10  ;;  %v2111_v58 = vcombine.high %v2107_v2, %v5019_v10  ;;  %v4468_v20 = vpack.c.bf16 %v2100_v31, %v2084_v51  ;;  %3537 = vadd.xlane.f32.xlu1 %v3536_v28  ;;  %v4469_v9 = vpack.c.bf16 %v2107_v2, %v2091_v24  ;;  %v4897_v46 = vpop.eup %4896 }
 0x99e   : > { %v3546_v47 = vmul.f32 %v4895_v37, %v4891_v44  ;;  %v3547_v54 = vmul.f32 %v4897_v46, %v5732_v16  ;;  %v2112_v16 = vcombine.high %v5345_v35, %v5019_v10 }
 0x99f   : > { %v2201_v17 = vrot.slane %v4468_v20, %v5218_v43  ;;  %v4470_v49 = vpack.c.bf16 %v2110_v6, %v2108_v4  ;;  %v4471_v14 = vpack.c.bf16 %v2111_v58, %v2109_v63  ;;  %v2209_v18 = vrot.slane %v4469_v9, %v5218_v43 }
 0x9a0   : > { %v3550_v23 = vpack.c.bf16 %v3546_v47, %v3546_v47  ;;  %v3551_v44 = vpack.c.bf16 %v3547_v54, %v3547_v54  ;;  %v2126_v24 = vrot.slane %v2112_v16, %v5218_v43 }
 0x9a1   : > { %v2225_v21 = vrot.slane %v4470_v49, %v5218_v43  ;;  %v2233_v33 = vrot.slane %v4471_v14, %v5218_v43  ;;  %v2210_v41 = vcombine.low %v2201_v17, %v2209_v18 }
 0x9a3   : > { %v2234_v40 = vcombine.low %v2225_v21, %v2233_v33  ;;  %v2217_v30 = vrot.slane %v2210_v41, %v5225_v50 }
 0x9a5   : > { %v2241_v52 = vrot.slane %v2234_v40, %v5225_v50  ;;  %v2293_v45 = vshrl.u32 %v2217_v30, 16 }
 0x9a7   : > { %v2292_v42 = vpack.i.b16 %v2241_v52, %v2217_v30  ;;  %v2294_v26 = vshrl.u32 %v2241_v52, 16 }
 0x9a9   : > { %v2319_v55 = vrot.slane %v2292_v42, 4  ;;  %v2295_v22 = vpack.i.b16 %v2294_v26, %v2293_v45 }
 0x9ab   : > { %v2325_v56 = vsel %vm2306_vm4, %v5411_v36, %v2319_v55  ;;  %v2320_v59 = vrot.slane %v2295_v22, 4  ;;  %v3541_v36 = vpop.xlane.xlu1 %3540 }
 0x9ac   : > { %4727 = vmatpush3.bf16.msra.mxu1 %v2325_v56 }
 0x9ad   : > { %v2329_v57 = vsel %vm2306_vm4, %v5419_v61, %v2320_v59  ;;  %4738 = vmatprep.subr.bf16.mxu1 %v5019_v10 }
 0x9ae   : > { %2042 = vrot.lane.b32.xlu1 %v5345_v35, %s5020_s15  ;;  %4733 = vmatpush3.bf16.msra.mxu0 %v2329_v57  ;;  %s6076_s15 = sshll.u32 %s5115_s25, 8 }
 0x9af   : > { %4729 = vmatmul.mubr.msk.bf16.vlgmr.msra.gmra.mrb[32].mxu1 %vm2339_vm2, %v3550_v23  ;;  %4744 = vmatprep.subr.bf16.mxu0 %v5019_v10 }
 0x9b0   : > { %4740 = vmatprep.mubr.msk.bf16.mxu1 %vm5021_vm1, %v5019_v10 }
 0x9b1   : > { %4735 = vmatmul.mubr.msk.bf16.vlgmr.msra.gmra.mrb[40].mxu0 %vm2339_vm2, %v3551_v44 }
 0x9b2   : > { %4746 = vmatprep.mubr.msk.bf16.mxu0 %vm5021_vm1, %v5019_v10 }
 0xa2a   : > { %v3538_v61 = vpop.xlane.xlu1 %3537 }
 0xa2b   : > { %4898 = vrcp.f32 %v3538_v61 }
 0xa2c   : > { %4900 = vrcp.f32 %v3541_v36 }
 0xa2e   : > { %v2043_v60 = vpop.permute.xlu1 %2042 }
 0xa2f   : > { %v2127_v34 = vcombine.high %v2043_v60, %v5019_v10  ;;  %v2134_v51 = vrot.slane %v2043_v60, %v5218_v43 }
 0xa31   : > { %v2141_v29 = vrot.slane %v2127_v34, %v5218_v43  ;;  %v2142_v11 = vcombine.low %v2119_v48, %v2134_v51  ;;  %v2143_v1 = vcombine.high %v2119_v48, %v2134_v51 }
 0xa33   : > { %v2150_v31 = vrot.slane %v2142_v11, %v5225_v50  ;;  %v2157_v2 = vrot.slane %v2143_v1, %v5225_v50  ;;  %v2158_v4 = vcombine.low %v2126_v24, %v2141_v29  ;;  %v2159_v28 = vcombine.high %v2126_v24, %v2141_v29 }
 0xa35   : > { %v2166_v63 = vrot.slane %v2158_v4, %v5225_v50  ;;  %v2173_v35 = vrot.slane %v2159_v28, %v5225_v50  ;;  %v2174_v6 = vcombine.high %v2150_v31, %v5019_v10  ;;  %v2175_v58 = vcombine.high %v2157_v2, %v5019_v10  ;;  %v4899_v45 = vpop.eup %4898 }
 0xa36   : > { %v4901_v55 = vpop.eup %4900  ;;  %v3548_v22 = vmul.f32 %v4899_v45, %v5758_v0 }
 0xa37   : > { %v2176_v20 = vcombine.high %v2166_v63, %v5019_v10  ;;  %v2177_v9 = vcombine.high %v2173_v35, %v5019_v10  ;;  %v4472_v17 = vpack.c.bf16 %v2166_v63, %v2150_v31  ;;  %v4473_v49 = vpack.c.bf16 %v2173_v35, %v2157_v2 }
 0xa38   : > { %v3549_v59 = vmul.f32 %v4901_v55, %v5736_v32  ;;  %v3552_v36 = vpack.c.bf16 %v3548_v22, %v3548_v22 }
 0xa39   : > { %v2249_v14 = vrot.slane %v4472_v17, %v5218_v43  ;;  %v2257_v18 = vrot.slane %v4473_v49, %v5218_v43  ;;  %v4474_v21 = vpack.c.bf16 %v2176_v20, %v2174_v6  ;;  %v4475_v33 = vpack.c.bf16 %v2177_v9, %v2175_v58 }
 0xa3a   : > { %v3553_v61 = vpack.c.bf16 %v3549_v59, %v3549_v59 }
 0xa3b   : > { %v2258_v41 = vcombine.low %v2249_v14, %v2257_v18  ;;  %v2273_v40 = vrot.slane %v4474_v21, %v5218_v43  ;;  %v2281_v30 = vrot.slane %v4475_v33, %v5218_v43 }
 0xa3d   : > { %v2265_v52 = vrot.slane %v2258_v41, %v5225_v50  ;;  %v2282_v37 = vcombine.low %v2273_v40, %v2281_v30 }
 0xa3f   : > { %v2289_v42 = vrot.slane %v2282_v37, %v5225_v50  ;;  %v2299_v46 = vshrl.u32 %v2265_v52, 16 }
 0xa41   : > { %v2298_v26 = vpack.i.b16 %v2289_v42, %v2265_v52  ;;  %v2300_v47 = vshrl.u32 %v2289_v42, 16 }
 0xa43   : > { %v2321_v54 = vrot.slane %v2298_v26, 4  ;;  %v2301_v56 = vpack.i.b16 %v2300_v47, %v2299_v46  ;;  %v4854_v26 = vld [vmem:[%s6069_s7] sm:$0xff]  }
 0xa45   : > { %v2333_v57 = vsel %vm2306_vm4, %v5438_v25, %v2321_v54  ;;  %v2322_v23 = vrot.slane %v2301_v56, 4 }
 0xa46   : > { %4739 = vmatpush3.bf16.msra.mxu1 %v2333_v57 }
 0xa47   : > { %v2337_v44 = vsel %vm2306_vm4, %v5443_v39, %v2322_v23  ;;  %4750 = vmatprep.subr.bf16.mxu1 %v5019_v10 }
 0xa48   : > { %4745 = vmatpush3.bf16.msra.mxu0 %v2337_v44 }
 0xa49   : > { %4741 = vmatmul.mubr.msk.bf16.vlgmr.msra.gmra.mrb[36].mxu1 %vm2339_vm2, %v3552_v36  ;;  %4758 = vmatprep.subr.bf16.mxu0 %v5019_v10 }
 0xa4a   : > { %4754 = vmatprep.mubr.msk.bf16.mxu1 %vm5021_vm1, %v5019_v10  ;;  %4751 = vmatpush3.bf16.msra.mxu1 %v4854_v26 }
 0xa4b   : > { %4747 = vmatmul.mubr.msk.bf16.vlgmr.msra.gmra.mrb[44].mxu0 %vm2339_vm2, %v3553_v61  ;;  %4752 = vmatprep.subr.bf16.mxu1 %v5019_v10 }
 0xa4c   : > { %4762 = vmatprep.mubr.msk.bf16.mxu0 %vm5021_vm1, %v5019_v10 }
 0xa82   : > { %v3591_v25 = vpop.f32.mrb[32].mxu1 }
 0xa83   : > { %v3726_v39 = vcombine.high %v3591_v25, %v5019_v10  ;;  %v4730_v32 = vpop.f32.mrb[33].mxu1  ;;  %v3733_v60 = vrot.slane %v3591_v25, %v5218_v43 }
 0xa84   : > { %v3594_v0 = vpop.f32.mrb[34].mxu1  ;;  %v3634_v16 = vpop.f32.mrb[40].mxu0 }
 0xa85   : > { %v3741_v48 = vcombine.high %v3634_v16, %v5019_v10  ;;  %v3748_v34 = vrot.slane %v3634_v16, %v5218_v43  ;;  %v4731_v51 = vpop.f32.mrb[35].mxu1  ;;  %v4736_v24 = vpop.f32.mrb[41].mxu0  ;;  %v3740_v11 = vrot.slane %v3726_v39, %v5218_v43 }
 0xa86   : > { %v3637_v29 = vpop.f32.mrb[42].mxu0 }
 0xa87   : > { %v3755_v1 = vrot.slane %v3741_v48, %v5218_v43  ;;  %v3756_v31 = vcombine.low %v3733_v60, %v3748_v34  ;;  %v3757_v2 = vcombine.high %v3733_v60, %v3748_v34  ;;  %v4737_v4 = vpop.f32.mrb[43].mxu0 }
 0xa89   : > { %v3764_v28 = vrot.slane %v3756_v31, %v5225_v50  ;;  %v3771_v63 = vrot.slane %v3757_v2, %v5225_v50  ;;  %v3772_v35 = vcombine.low %v3740_v11, %v3755_v1  ;;  %v3773_v6 = vcombine.high %v3740_v11, %v3755_v1 }
 0xa8b   : > { %v3780_v58 = vrot.slane %v3772_v35, %v5225_v50  ;;  %v3787_v20 = vrot.slane %v3773_v6, %v5225_v50  ;;  %v3858_v9 = vcombine.low %v3764_v28, %v3771_v63  ;;  %v4511_v17 = vcombine.high %v3764_v28, %v3771_v63  ;;  %v4855_v28 = vld [vmem:[%s6069_s7 + $0x8] sm:$0xff]  }
 0xa8c   : > { %4753 = vmatpush3.bf16.msra.mxu1 %v4855_v28 }
 0xa8d   : > { %v3865_v49 = vrot.slane %v3858_v9, %v5218_v43  ;;  %v3873_v14 = vrot.slane %v4511_v17, %v5218_v43  ;;  %v3874_v18 = vcombine.low %v3780_v58, %v3787_v20  ;;  %v4512_v21 = vcombine.high %v3780_v58, %v3787_v20  ;;  %4766 = vmatprep.subr.bf16.mxu1 %v5019_v10 }
 0xa8f   : > { %v3881_v33 = vrot.slane %v3874_v18, %v5218_v43  ;;  %v3889_v41 = vrot.slane %v4512_v21, %v5218_v43  ;;  %v3890_v40 = vcombine.low %v3865_v49, %v3873_v14 }
 0xa91   : > { %v3898_v30 = vcombine.low %v3881_v33, %v3889_v41  ;;  %v3897_v52 = vrot.slane %v3890_v40, %v5225_v50 }
 0xa93   : > { %v3905_v37 = vrot.slane %v3898_v30, %v5225_v50 }
 0xa95   : > { %v3906_v42 = vcombine.low %v3897_v52, %v3905_v37  ;;  %v3907_v45 = vcombine.high %v3897_v52, %v3905_v37 }
 0xb1c   : > { %v3677_v46 = vpop.f32.mrb[36].mxu1 }
 0xb1d   : > { %v3792_v47 = vcombine.high %v3677_v46, %v5019_v10  ;;  %v4742_v55 = vpop.f32.mrb[37].mxu1  ;;  %v3799_v56 = vrot.slane %v3677_v46, %v5218_v43 }
 0xb1e   : > { %v3680_v22 = vpop.f32.mrb[38].mxu1  ;;  %v3720_v54 = vpop.f32.mrb[44].mxu0  ;;  %v4921_v55 = vld [vmem:[%s5166_s5] sm:$0xff] }
 0xb1f   : > { %v3807_v59 = vcombine.high %v3720_v54, %v5019_v10  ;;  %v3814_v57 = vrot.slane %v3720_v54, %v5218_v43  ;;  %v4743_v23 = vpop.f32.mrb[39].mxu1  ;;  %v4748_v44 = vpop.f32.mrb[45].mxu0  ;;  %v3806_v61 = vrot.slane %v3792_v47, %v5218_v43 }
 0xb20   : > { %v3723_v36 = vpop.f32.mrb[46].mxu0 }
 0xb21   : > { %v3821_v25 = vrot.slane %v3807_v59, %v5218_v43  ;;  %v3822_v39 = vcombine.low %v3799_v56, %v3814_v57  ;;  %v3823_v32 = vcombine.high %v3799_v56, %v3814_v57  ;;  %v4749_v0 = vpop.f32.mrb[47].mxu0  ;;  %v4922_v56 = vld [vmem:[%s5166_s5 + $0x8] sm:$0xff]  ;;  %s5970_s5 = scalar_lea.hbm %s6073_s11, %s6076_s15 }
 0xb23   : > { %v3830_v16 = vrot.slane %v3822_v39, %v5225_v50  ;;  %v3837_v60 = vrot.slane %v3823_v32, %v5225_v50  ;;  %v3838_v48 = vcombine.low %v3806_v61, %v3821_v25  ;;  %v3839_v34 = vcombine.high %v3806_v61, %v3821_v25 }
 0xb25   : > { %v3846_v51 = vrot.slane %v3838_v48, %v5225_v50  ;;  %v3853_v24 = vrot.slane %v3839_v34, %v5225_v50  ;;  %v3908_v29 = vcombine.low %v3830_v16, %v3837_v60  ;;  %v4513_v11 = vcombine.high %v3830_v16, %v3837_v60  ;;  %v4856_v34 = vld [vmem:[%s6070_s8] sm:$0xff]  }
 0xb26   : > { %4759 = vmatpush3.bf16.msra.mxu0 %v4856_v34 }
 0xb27   : > { %v3915_v1 = vrot.slane %v3908_v29, %v5218_v43  ;;  %v3923_v31 = vrot.slane %v4513_v11, %v5218_v43  ;;  %v3924_v2 = vcombine.low %v3846_v51, %v3853_v24  ;;  %v4514_v4 = vcombine.high %v3846_v51, %v3853_v24  ;;  %4760 = vmatprep.subr.bf16.mxu0 %v5019_v10 }
 0xb29   : > { %v3931_v63 = vrot.slane %v3924_v2, %v5218_v43  ;;  %v3939_v35 = vrot.slane %v4514_v4, %v5218_v43  ;;  %v3940_v6 = vcombine.low %v3915_v1, %v3923_v31 }
 0xb2b   : > { %v3948_v58 = vcombine.low %v3931_v63, %v3939_v35  ;;  %v3947_v20 = vrot.slane %v3940_v6, %v5225_v50 }
 0xb2d   : > { %v3955_v9 = vrot.slane %v3948_v58, %v5225_v50  ;;  %v3199_v50 = vsub.s32 7, %v5178_v12 }
 0xb2f   : > { %v3957_v17 = vcombine.high %v3947_v20, %v3955_v9  ;;  %v3956_v49 = vcombine.low %v3947_v20, %v3955_v9  ;;  %v5873_v30 = vrot.slane %v5602_v3, %v3199_v50  ;;  %v4858_v9 = vld [vmem:[%s6071_s9] sm:$0xff]  }
 0xb31   : > { %v4835_v14 = vpack.i.bf16 %v3957_v17, %v3907_v45  ;;  %v3267_v32 = vadd.f32 %v5742_v27, %v5873_v30  ;;  %v4857_v27 = vld [vmem:[%s6070_s8 + $0x8] sm:$0xff]  }
 0xb32   : > { %4761 = vmatpush3.bf16.msra.mxu0 %v4857_v27  ;;  %v4859_v17 = vld [vmem:[%s6071_s9 + $0x8] sm:$0xff]  }
 0xb33   : > { %4836 = vrot.lane.b32.xlu0 %v4835_v14, %s5024_s29  ;;  %v5893_v60 = vadd.f32 %v3267_v32, %v5641_v8  ;;  %s4264_s29 = sshll.u32 %s455_s17, 4  ;;  %s5972_s29 = int_to_ptr.vmem [resolvable:$true] %s4264_s29 }
 0xb34   : > { %s4923_s18 = scalar_lea.vmem %s5972_s29, 256  ;;  %p4930_p0 = scmp.lt.s32.totalorder %s5972_s29, %s4928_s0 }
 0xb35   : > { %v3275_v48 = vsel %vm520_vm0, %v5893_v60, 0.0  ;;  %p4924_p11 = scmp.ne.s32.totalorder %s5972_s29, %s4923_s18  ;;  %p4931_p1 = scmp.lt.s32.totalorder %s4929_s1, %s4923_s18 }
 0xb37   : > { %p4925_p12 = pnand %p4924_p11, %p5132_p5  ;;  %p4932_p2 = por %p4931_p1, %p4930_p0 }
 0xb39   : > { %p4926_p13 = pneg %p4925_p12 }
 0xb3b   : > { %p4933_p3 = pnand %p4932_p2, %p4926_p13 }
 0xba5   : > { %v4837_v18 = vpop.permute.xlu0 %4836 }
 0xba6   : > { %v4839_v21 = vunpack.i.h.bf16 %v4837_v18  ;;  %v4838_v33 = vunpack.i.l.bf16 %v4837_v18 }
 0xba8   : > { %v3966_v43 = vsel %vm2339_vm2, %v3906_v42, %v4838_v33  ;;  %v3967_v41 = vsel %vm2339_vm2, %v3956_v49, %v4839_v21  ;;  %v3264_v42 = vadd.f32 %v5740_v19, %v5873_v30 }
 0xba9   : > { %v3968_v40 = vpack.c.bf16 %v3967_v41, %v3966_v43 }
 0xbaa   : > { %v5884_v57 = vadd.f32 %v3264_v42, %v5638_v7 }
 0xbab   : > { %4755 = vmatmul.mubr.msk.bf16.vlgmr.msra.gmra.mrb[40].mxu1 %vm520_vm0, %v3968_v40 }
 0xbac   : > { %4774 = vmatprep.mubr.msk.bf16.mxu1 %vm5021_vm1, %v5019_v10  ;;  %v3272_v23 = vsel %vm520_vm0, %v5884_v57, 0.0  ;;  %4767 = vmatpush3.bf16.msra.mxu1 %v4858_v9 }
 0xbad   : > { %4768 = vmatprep.subr.bf16.mxu1 %v5019_v10 }
 0xbb0   : > { %4769 = vmatpush3.bf16.msra.mxu1 %v4859_v17 }
 0xbb1   : > { %4770 = vmatprep.subr.bf16.mxu1 %v5019_v10 }
 0xc7e   : > { %v4022_v52 = vpop.f32.mrb[40].mxu1 }
 0xc7f   : > { %v4023_v37 = vadd.f32 %v4022_v52, %v5503_v38  ;;  %v4756_v45 = vpop.f32.mrb[41].mxu1 }
 0xc80   : > { %v4025_v26 = vpop.f32.mrb[42].mxu1 }
 0xc81   : > { %v4026_v46 = vadd.f32 %v4025_v26, %v5503_v38  ;;  %v4757_v47 = vpop.f32.mrb[43].mxu1  ;;  %v4029_v22 = vadd.f32 %v4921_v55, %v4023_v37 }
 0xc83   : > { %v4031_v54 = vsel %vm520_vm0, %v4029_v22, 0.0  ;;  %v4030_v59 = vadd.f32 %v4922_v56, %v4026_v46 }
 0xc84   : > { %4032 = vadd.xlane.f32.xlu0 %v4031_v54 }
 0xc85   : > { %v4034_v3 = vsel %vm520_vm0, %v4030_v59, 0.0 }
 0xc86   : > { %4035 = vadd.xlane.f32.xlu1 %v4034_v3 }
 0xc8a   : > { %3273 = vadd.xlane.f32.xlu1 %v3272_v23 }
 0xd11   : > { %v4033_v19 = vpop.xlane.xlu0 %4032 }
 0xd12   : > { %v4037_v38 = vmul.f32 0.03125, %v4033_v19 }
 0xd13   : > { %v4036_v44 = vpop.xlane.xlu1 %4035 }
 0xd14   : > { %v4039_v36 = vsub.f32 %v4029_v22, %v4037_v38  ;;  %v4038_v61 = vmul.f32 0.03125, %v4036_v44 }
 0xd16   : > { %v4040_v25 = vsub.f32 %v4030_v59, %v4038_v61  ;;  %v4041_v39 = vmul.f32 %v4039_v36, %v4039_v36 }
 0xd17   : > { %v3274_v55 = vpop.xlane.xlu1 %3273 }
 0xd18   : > { %v4043_v0 = vsel %vm520_vm0, %v4041_v39, 0.0  ;;  %v4042_v16 = vmul.f32 %v4040_v25, %v4040_v25  ;;  %v3278_v54 = vmul.f32 0.03125, %v3274_v55 }
 0xd19   : > { %4044 = vadd.xlane.f32.xlu0 %v4043_v0 }
 0xd1a   : > { %v4046_v7 = vsel %vm520_vm0, %v4042_v16, 0.0  ;;  %v3280_v59 = vsub.f32 %v5884_v57, %v3278_v54 }
 0xd1c   : > { %v3282_v32 = vmul.f32 %v3280_v59, %v3280_v59 }
 0xd1d   : > { %4047 = vadd.xlane.f32.xlu0 %v4046_v7 }
 0xd1e   : > { %v3284_v57 = vsel %vm520_vm0, %v3282_v32, 0.0 }
 0xd21   : > { %3276 = vadd.xlane.f32.xlu0 %v3275_v48 }
 0xda6   : > { %v4045_v51 = vpop.xlane.xlu0 %4044 }
 0xda7   : > { %v4049_v8 = vmul.f32 0.03125, %v4045_v51 }
 0xda9   : > { %v4051_v24 = vadd.f32 1e-12, %v4049_v8 }
 0xdaa   : > { %v4048_v29 = vpop.xlane.xlu0 %4047 }
 0xdab   : > { %4902 = vrsqrt.f32 %v4051_v24  ;;  %v4050_v11 = vmul.f32 0.03125, %v4048_v29 }
 0xdad   : > { %v4052_v1 = vadd.f32 1e-12, %v4050_v11 }
 0xdae   : > { %v3277_v22 = vpop.xlane.xlu0 %3276 }
 0xdaf   : > { %4904 = vrsqrt.f32 %v4052_v1  ;;  %v3279_v56 = vmul.f32 0.03125, %v3277_v22 }
 0xdb1   : > { %v3281_v38 = vsub.f32 %v5893_v60, %v3279_v56 }
 0xdb3   : > { %v3283_v16 = vmul.f32 %v3281_v38, %v3281_v38 }
 0xdb5   : > { %v4903_v31 = vpop.eup %4902  ;;  %v3287_v7 = vsel %vm520_vm0, %v3283_v16, 0.0 }
 0xdb6   : > { %v4055_v2 = vmul.f32 %v4903_v31, %v4039_v36 }
 0xdb8   : > { %v4057_v28 = vmul.f32 %v4055_v2, %v5605_v5 }
 0xdb9   : > { %v4905_v4 = vpop.eup %4904 }
 0xdba   : > { %v4056_v63 = vmul.f32 %v4905_v4, %v4040_v25  ;;  %v4059_v6 = vadd.f32 %v4057_v28, %v5623_v53 }
 0xdbc   : > { %v4058_v35 = vmul.f32 %v4056_v63, %v5605_v5  ;;  %v4860_v5 = vld [vmem:[%s6071_s9 + $0x10] sm:$0xff]  }
 0xdbd   : > { %4771 = vmatpush3.bf16.msra.mxu1 %v4860_v5 }
 0xdbe   : > { %v4060_v58 = vadd.f32 %v4058_v35, %v5623_v53  ;;  %4772 = vmatprep.subr.bf16.mxu1 %v5019_v10  ;;  %v4861_v53 = vld [vmem:[%s6071_s9 + $0x18] sm:$0xff]   ;;  %v489_v35 = vld [vmem:[%s6072_s10 + $0x8] sm:$0x3] }
 0xdc0   : > { %v4061_v20 = vpack.c.bf16 %v4060_v58, %v4059_v6 }
 0xdc1   : > { %4773 = vmatpush3.bf16.msra.mxu1 %v4861_v53 }
 0xdc2   : > { %4763 = vmatmul.mubr.msk.bf16.vlgmr.msra.gmra.mrb[48].mxu0 %vm520_vm0, %v4061_v20  ;;  %v3307_v20 = vrot.slane %v489_v35, %v586_v13 }
 0xe95   : > { %v4115_v49 = vpop.f32.mrb[48].mxu0 }
 0xe96   : > { %v4116_v14 = vadd.f32 %v4115_v49, %v5704_v62  ;;  %v4764_v18 = vpop.f32.mrb[49].mxu0 }
 0xe97   : > { %v4118_v21 = vpop.f32.mrb[50].mxu0 }
 0xe98   : > { %v4124_v33 = vmul.f32 0.70710677, %v4116_v14  ;;  %v4119_v43 = vadd.f32 %v4118_v21, %v5704_v62  ;;  %v4765_v41 = vpop.f32.mrb[51].mxu0  ;;  %v4122_v37 = vmul.f32 0.5, %v4116_v14 }
 0xe9a   : > { %4906 = verf.f32 %v4124_v33  ;;  %v4125_v40 = vmul.f32 0.70710677, %v4119_v43  ;;  %v4123_v45 = vmul.f32 0.5, %v4119_v43 }
 0xe9c   : > { %4908 = verf.f32 %v4125_v40 }
 0xea4   : > { %v4907_v50 = vpop.eup %4906 }
 0xea5   : > { %v4128_v52 = vadd.f32 1.0, %v4907_v50 }
 0xea6   : > { %v4909_v10 = vpop.eup %4908 }
 0xea7   : > { %v4129_v26 = vadd.f32 1.0, %v4909_v10  ;;  %v4130_v42 = vmul.f32 %v4128_v52, %v4122_v37 }
 0xea9   : > { %v4131_v46 = vmul.f32 %v4129_v26, %v4123_v45 }
 0xeab   : > { %v4132_v47 = vpack.c.bf16 %v4131_v46, %v4130_v42 }
 0xead   : > { %4775 = vmatmul.mubr.msk.bf16.vlgmr.msra.gmra.mrb[44].mxu1 %vm3225_vm5, %v4132_v47 }
 0xf80   : > { %v4202_v62 = vpop.f32.mrb[44].mxu1 }
 0xf81   : > { %v4203_v3 = vadd.f32 %v4202_v62, %v5873_v30  ;;  %v4776_v23 = vpop.f32.mrb[45].mxu1 }
 0xf82   : > { %v4205_v19 = vpop.f32.mrb[46].mxu1 }
 0xf83   : > { %v4206_v44 = vadd.f32 %v4205_v19, %v5873_v30  ;;  %v4777_v36 = vpop.f32.mrb[47].mxu1  ;;  %v4209_v61 = vadd.f32 %v4203_v3, %v4059_v6  ;;  %v5953_v6 = vrot.slane %v489_v35, %v506_v15 }
 0xf85   : > { %v4211_v25 = vsel %vm520_vm0, %v4209_v61, 0.0  ;;  %v4210_v39 = vadd.f32 %v4206_v44, %v4060_v58 }
 0xf86   : > { %4212 = vadd.xlane.f32.xlu1 %v4211_v25 }
 0xf87   : > { %v4214_v0 = vsel %vm520_vm0, %v4210_v39, 0.0 }
 0xf88   : > { %4215 = vadd.xlane.f32.xlu0 %v4214_v0 }
 0xf8a   : > { %3285 = vadd.xlane.f32.xlu1 %v3284_v57 }
 0xf8c   : > { %3288 = vadd.xlane.f32.xlu0 %v3287_v7 }
0x1013   : > { %v4213_v60 = vpop.xlane.xlu1 %4212 }
0x1014   : > { %v4217_v48 = vmul.f32 0.03125, %v4213_v60 }
0x1015   : > { %v4216_v30 = vpop.xlane.xlu0 %4215 }
0x1016   : > { %v5935_v34 = vsub.f32 %v4209_v61, %v4217_v48  ;;  %v4218_v27 = vmul.f32 0.03125, %v4216_v30 }
0x1017   : > { %v3286_v51 = vpop.xlane.xlu1 %3285 }
0x1018   : > { %v5937_v8 = vsub.f32 %v4210_v39, %v4218_v27  ;;  %v3290_v24 = vmul.f32 0.03125, %v3286_v51  ;;  %v4221_v29 = vmul.f32 %v5935_v34, %v5935_v34 }
0x1019   : > { %v3289_v11 = vpop.xlane.xlu0 %3288 }
0x101a   : > { %v3292_v1 = vadd.f32 1e-12, %v3290_v24  ;;  %v3291_v31 = vmul.f32 0.03125, %v3289_v11  ;;  %v4223_v2 = vsel %vm520_vm0, %v4221_v29, 0.0  ;;  %v4222_v4 = vmul.f32 %v5937_v8, %v5937_v8 }
0x101b   : > { %4224 = vadd.xlane.f32.xlu1 %v4223_v2 }
0x101c   : > { %4910 = vrsqrt.f32 %v3292_v1  ;;  %v3293_v28 = vadd.f32 1e-12, %v3291_v31  ;;  %v4226_v63 = vsel %vm520_vm0, %v4222_v4, 0.0 }
0x101d   : > { %4227 = vadd.xlane.f32.xlu0 %v4226_v63 }
0x101e   : > { %4912 = vrsqrt.f32 %v3293_v28 }
0x1026   : > { %v4911_v58 = vpop.eup %4910 }
0x1027   : > { %v3296_v9 = vmul.f32 %v4911_v58, %v3280_v59 }
0x1028   : > { %v4913_v17 = vpop.eup %4912 }
0x1029   : > { %v3302_v5 = vmul.f32 %v5953_v6, %v3296_v9  ;;  %v3297_v53 = vmul.f32 %v4913_v17, %v3281_v38 }
0x102b   : > { %v3303_v49 = vmul.f32 %v5953_v6, %v3297_v53  ;;  %v3308_v14 = vadd.f32 %v3307_v20, %v3302_v5 }
0x102d   : > { %v3309_v18 = vadd.f32 %v3307_v20, %v3303_v49  ;;  %4241 = vst.msk [vmem:[%s455_s17] sm:$0xff] %vm520_vm0, %v3308_v14 }
0x102f   : > { %4242 = vst.msk [vmem:[%s455_s17 + $0x8] sm:$0xff] %vm520_vm0, %v3309_v18 }
0x1030   : > { %4936 = shalt.err (!%p4933_p3)
}
0x1031   : > { %s4937_s17 = scalar_lea.hbm %s5970_s5, 256  ;;  %s4941_s26 = scalar_lea.hbm %s6073_s11, 512 }
0x1032   : > { %p4938_p4 = scmp.ne.s32.totalorder %s5970_s5, %s4937_s17  ;;  %p4942_p9 = scmp.lt.u32.totalorder %s5970_s5, %s6073_s11 }
0x1033   : > { %p4943_p10 = scmp.lt.u32.totalorder %s4941_s26, %s4937_s17  ;;  %p4945_p12 = scmp.lt.u32.totalorder %s4937_s17, %s5970_s5 }
0x1034   : > { %p4939_p7 = pnand %p4938_p4, %p5132_p5 }
0x1035   : > { %p4944_p11 = por %p4943_p10, %p4942_p9 }
0x1036   : > { %p4940_p8 = pneg %p4939_p7 }
0x1037   : > { %p4946_p13 = por %p4945_p12, %p4944_p11 }
0x1039   : > { %p4947_p0 = pnand %p4946_p13, %p4940_p8 }
0x103b   : > { %4950 = shalt.err (!%p4947_p0)
}
0x103c   : > { %s6077_s1 = smov 128   ;;  %s5027_s18 = smov 8  }
0x103d   : > { %4778 = dma.vmem_to_hbm [thread:$0]  (%p5132_p5), %s5972_s29, 256, %s5970_s5, %s4246_s16, %s6077_s1, %s6077_s1, %s5027_s18  }
0x103e   : > { %s6086_s15 = sshll.u32 %s5949_s20, 4  ;;  %s6087_s16 = sshll.u32 %s5115_s25, 8 }
0x103f   : > { %s462_s5 = scalar_lea.vmem [#allocation4], %s6086_s15  ;;  %s6013_s19 = scalar_lea.hbm %s6074_s12, %s6087_s16 }
0x1040   : > { %s4280_s29 = sshll.u32 %s462_s5, 4  ;;  %s4251_s26 = scalar_lea.sflag [#allocation5], %s5949_s20  ;;  %s6015_s29 = int_to_ptr.vmem [resolvable:$true] %s4280_s29 }
0x1041   : > { %s4951_s0 = scalar_lea.vmem %s6015_s29, 256  ;;  %s5028_s15 = smov [#allocation4]  }
0x1042   : > { %p4952_p1 = scmp.ne.s32.totalorder %s6015_s29, %s4951_s0  ;;  %s4955_s25 = sshll.u32 %s5028_s15, 4  ;;  %s4956_s25 = int_to_ptr.vmem [resolvable:$false] %s4955_s25 }
0x1043   : > { %s4957_s1 = scalar_lea.vmem %s4956_s25, 512  ;;  %p4958_p4 = scmp.lt.s32.totalorder %s6015_s29, %s4956_s25 }
0x1044   : > { %p4953_p2 = pnand %p4952_p1, %p5132_p5  ;;  %p4959_p7 = scmp.lt.s32.totalorder %s4957_s1, %s4951_s0 }
0x1046   : > { %p4954_p3 = pneg %p4953_p2  ;;  %p4960_p8 = por %p4959_p7, %p4958_p4 }
0x1048   : > { %p4961_p9 = pnand %p4960_p8, %p4954_p3 }
0x10a8   : > { %v4225_v12 = vpop.xlane.xlu1 %4224 }
0x10a9   : > { %v4229_v13 = vmul.f32 0.03125, %v4225_v12 }
0x10aa   : > { %v4228_v15 = vpop.xlane.xlu0 %4227 }
0x10ab   : > { %v4231_v21 = vadd.f32 1e-12, %v4229_v13  ;;  %v4230_v33 = vmul.f32 0.03125, %v4228_v15 }
0x10ad   : > { %4914 = vrsqrt.f32 %v4231_v21  ;;  %v4232_v43 = vadd.f32 1e-12, %v4230_v33 }
0x10af   : > { %4916 = vrsqrt.f32 %v4232_v43 }
0x10b7   : > { %v4915_v41 = vpop.eup %4914 }
0x10b8   : > { %v4235_v40 = vmul.f32 %v4915_v41, %v5935_v34 }
0x10b9   : > { %v4917_v50 = vpop.eup %4916 }
0x10ba   : > { %v4237_v52 = vmul.f32 %v4235_v40, %v5953_v6  ;;  %v4236_v10 = vmul.f32 %v4917_v50, %v5937_v8 }
0x10bc   : > { %v4239_v37 = vadd.f32 %v4237_v52, %v3307_v20  ;;  %v4238_v45 = vmul.f32 %v4236_v10, %v5953_v6 }
0x10be   : > { %v4240_v26 = vadd.f32 %v4238_v45, %v3307_v20  ;;  %4243 = vst.msk [vmem:[%s462_s5] sm:$0xff] %vm520_vm0, %v4239_v37 }
0x10c0   : > { %4244 = vst.msk [vmem:[%s462_s5 + $0x8] sm:$0xff] %vm520_vm0, %v4240_v26 }
0x10c1   : > { %4964 = shalt.err (!%p4961_p9)
}
0x10c2   : > { %s4965_s5 = scalar_lea.hbm %s6013_s19, 256  ;;  %s4969_s28 = scalar_lea.hbm %s6074_s12, 512 }
0x10c3   : > { %p4966_p10 = scmp.ne.s32.totalorder %s6013_s19, %s4965_s5  ;;  %p4970_p13 = scmp.lt.u32.totalorder %s6013_s19, %s6074_s12 }
0x10c4   : > { %p4971_p0 = scmp.lt.u32.totalorder %s4969_s28, %s4965_s5  ;;  %p4973_p2 = scmp.lt.u32.totalorder %s4965_s5, %s6013_s19 }
0x10c5   : > { %p4967_p11 = pnand %p4966_p10, %p5132_p5 }
0x10c6   : > { %p4972_p1 = por %p4971_p0, %p4970_p13 }
0x10c7   : > { %p4968_p12 = pneg %p4967_p11 }
0x10c8   : > { %p4974_p3 = por %p4973_p2, %p4972_p1 }
0x10ca   : > { %p4975_p4 = pnand %p4974_p3, %p4968_p12 }
0x10cc   : > { %4978 = shalt.err (!%p4975_p4)
}
0x10cd   : > { %s6088_s1 = smov 128  }
0x10ce   : > { %4779 = dma.vmem_to_hbm [thread:$0]  (%p5132_p5), %s6015_s29, 256, %s6013_s19, %s4251_s26, %s6088_s1, %s6088_s1, %s5027_s18  }
0x10cf PF: > { %p4789_p7 = scmp.ge.s32.totalorder %s5017_s24, 2  ;;  %s4295_s0 = sand.u32 1, %s5005_s21  }
0x10d0   : > { %s4296_s5 = scalar_lea.sflag [#allocation3], %s4295_s0 }
0x10d1   : > { %p4783_p8 = pnand %p4789_p7, %p5136_p6 }
0x10d3   : > { %4996 = dma.done.wait (!%p4783_p8), %s4296_s5, 256  }
0x10d4   : > { %4998 = vsyncadd (!%p4783_p8), %s4296_s5, 4294967040  ;;  %s4305_s13 = scalar_lea.sflag [#allocation5], %s4295_s0 }
0x10d5   : > { %5000 = dma.done.wait (!%p4783_p8), %s4305_s13, 256  }
0x10d6   : > { %5002 = vsyncadd (!%p4783_p8), %s4305_s13, 4294967040  ;;  %p26_p5 = scmp.ge.s32.totalorder %s5119_s27, 4   ;;  %s6089_s21 = smov %s5009_s22 }
0x10d7   : > { %s6090_s22 = smov %s5013_s23  ;;  %s6091_s23 = smov %s5130_s30 }
0x10d8   : > { %s6092_s24 = smov %s5119_s27  ;;  %28 = sbr.rel (!%p26_p5) target bundleno = 9 (0x9), region = 125 }
0x10df   :  { %4310 = vsyncpa [#allocation3], 1 }
0x10e0   :  { %4312 = vsyncpa [#allocation3 + $0x1], 1 }
0x10e1   :  { %4313 = vsyncpa [#allocation5], 1 }
0x10e2   :  { %4315 = vsyncpa [#allocation5 + $0x1], 1 }

// kernel: table_encoder_simple.2
= control target key start
LH: loop header
LB: loop body
LE: loop exit
PB: predicated region body
PF: predicated region fallthrough
CT: control target
= control target key end

     0   :  { %s4924_s21 = smov 0   ;;  %s5756_s0 = inlined_call_operand.vmem [shape: f32[4,8,32], index: 0, kind: input, shape index: {}]   ;;  %s5757_s1 = inlined_call_operand.vmem [shape: f32[4,8,32], index: 1, kind: input, shape index: {}]   ;;  %s5758_s2 = inlined_call_operand.vmem [shape: f32[4,1,8], index: 2, kind: input, shape index: {}]   ;;  %s5759_s3 = inlined_call_operand.vmem [shape: f32[4,1,16], index: 3, kind: input, shape index: {}]   ;;  %s5760_s4 = inlined_call_operand.vmem [shape: bf16[32,32], index: 4, kind: input, shape index: {}]   ;;  %s5761_s5 = inlined_call_operand.vmem [shape: bf16[32,32], index: 5, kind: input, shape index: {}]   ;;  %s5762_s6 = inlined_call_operand.vmem [shape: bf16[32,32], index: 6, kind: input, shape index: {}]   ;;  %s5763_s7 = inlined_call_operand.vmem [shape: bf16[32,32], index: 7, kind: input, shape index: {}]   ;;  %s5764_s8 = inlined_call_operand.vmem [shape: bf16[32,64], index: 8, kind: input, shape index: {}]   ;;  %s5765_s9 = inlined_call_operand.vmem [shape: bf16[64,32], index: 9, kind: input, shape index: {}]   ;;  %s5766_s10 = inlined_call_operand.vmem [shape: f32[10,64], index: 10, kind: input, shape index: {}]   ;;  %s5767_s11 = inlined_call_operand.vmem [shape: f32[4,8,32], index: 11, kind: output, shape index: {0}]   ;;  %s5768_s12 = inlined_call_operand.vmem [shape: f32[4,8,32], index: 12, kind: output, shape index: {1}]  }
   0x1 LB: > { %s4369_s22 = sadd.s32 4294967295, %s4851_s21   ;;  %p4373_p0 = scmp.ge.s32.totalorder %s4851_s21, 1  ;;  %s4851_s21 = sphi %s4924_s21, %s23_s21  }
   0x2   : > { %p397_p1 = scmp.lt.s32.totalorder %s4851_s21, 3 }
   0x4   : > { %p398_p2 = pnand %p4373_p0, %p397_p1 }
   0x5   : > { %v4762_v0 = vld [vmem:[%s5761_s5] sm:$0xff] (!%p398_p2)   ;;  %s4374_s25 = sshll.u32 (!%p398_p2), %s4369_s22, 1  ;;  %v4764_v2 = vld [vmem:[%s5761_s5 + $0x8] sm:$0xff] (!%p398_p2)   ;;  %vm524_vm0 = vcmask (!%p398_p2), 261120   ;;  %v4853_v10 = vmov (!%p398_p2), 0.0   ;;  %v508_v11 = vlaneseq (!%p398_p2)  ;;  %s4854_s24 = smov (!%p398_p2), 112  }
   0x6   : > { %401 = sbr.rel (%p398_p2) target bundleno = 4277 (0x10b5), region = 64  ;;  %v4763_v1 = vld [vmem:[%s5760_s4] sm:$0xff] (!%p398_p2)   ;;  %p458_p3 = scmp.lt.s32.totalorder (!%p398_p2), %s4374_s25, 3  ;;  %4570 = vmatprep.subr.bf16.mxu1 (!%p398_p2), %v4762_v0  ;;  %v4765_v3 = vld [vmem:[%s5760_s4 + $0x8] sm:$0xff] (!%p398_p2)   ;;  %vm4855_vm1 = vmmov (!%p398_p2), 0   ;;  %vm2343_vm2 = vcmask (!%p398_p2), 130048  }
   0x7   : > { %4571 = vmatpush3.bf16.msra.mxu1 (!%p398_p2), %v4762_v0  ;;  %4562 = vmatprep.subr.bf16.mxu0 (!%p398_p2), %v4763_v1  ;;  %v4971_v12 = vshrl.u32 (!%p398_p2), %v508_v11, 7  ;;  %v4977_v14 = vld [vmem:[%s5766_s10] sm:$0xff] (!%p398_p2)  ;;  %v4767_v37 = vld [vmem:[%s5762_s6 + $0x8] sm:$0xff] (!%p398_p2)   ;;  %v4856_v38 = vmov (!%p398_p2), 1983009808   ;;  %vm2540_vm3 = vcmask (!%p398_p2), 64512  }
   0x8   : > { %4563 = vmatpush3.bf16.msra.mxu0 (!%p398_p2), %v4763_v1  ;;  %4572 = vmatprep.subr.bf16.mxu1 (!%p398_p2), %v4764_v2  ;;  %v4766_v33 = vld [vmem:[%s5762_s6] sm:$0xff] (!%p398_p2)   ;;  %v732_v39 = vunpack.c.l.s4 (!%p398_p2), %v4856_v38  ;;  %v4857_v41 = vmov (!%p398_p2), 1934713408   ;;  %vm2310_vm4 = vcmask (!%p398_p2), 1043456   ;;  %s4858_s23 = smov (!%p398_p2), 16   ;;  %vm3229_vm5 = vcmask (!%p398_p2), 523264  }
   0x9   : > { %4564 = vmatprep.subr.bf16.mxu0 (!%p398_p2), %v4765_v3  ;;  %v590_v13 = vsub.s32 (!%p398_p2), 1, %v4971_v12  ;;  %v510_v15 = vsub.s32 (!%p398_p2), 0, %v4971_v12  ;;  %v763_v42 = vunpack.c.l.s4 (!%p398_p2), %v4857_v41 }
   0xa   : > { %v733_v40 = vunpack.c.0.s8 (!%p398_p2), %v732_v39 }
   0xb   : > { %4573 = vmatpush3.bf16.msra.mxu1 (!%p398_p2), %v4764_v2  ;;  %v591_v16 = vrot.slane (!%p398_p2), %v4977_v14, %v590_v13  ;;  %v511_v17 = vrot.slane (!%p398_p2), %v4977_v14, %v510_v15  ;;  %v764_v44 = vunpack.c.0.s8 (!%p398_p2), %v763_v42 }
   0xc   : > { %4565 = vmatpush3.bf16.msra.mxu0 (!%p398_p2), %v4765_v3  ;;  %4586 = vmatprep.subr.bf16.mxu1 (!%p398_p2), %v4853_v10  ;;  %v5011_v43 = vsub.s32 (!%p398_p2), %v733_v40, %v4971_v12 }
   0xd   : > { %s5770_s25 = smov (!%p458_p3, %s4374_s25), 3  ;;  %4578 = vmatprep.subr.bf16.mxu0 %v4766_v33  ;;  %v5018_v50 = vsub.s32 %v764_v44, %v4971_v12 }
   0xe   : > { %s4947_s14 = sshll.u32 %s5770_s25, 3  ;;  %s472_s15 = scalar_lea.vmem %s5758_s2, %s5770_s25 }
   0xf   : > { %s4953_s17 = scalar_lea.vmem %s5756_s0, %s4947_s14  ;;  %s4961_s20 = scalar_lea.vmem %s5757_s1, %s4947_s14 }
  0x10   : > { %v494_v4 = vld [vmem:[%s4953_s17] sm:$0xff]  ;;  %v495_v5 = vld [vmem:[%s4953_s17 + $0x8] sm:$0xff]  ;;  %s5505_s29 = scalar_lea.vmem %s5759_s3, %s5770_s25  ;;  %s483_s26 = scalar_lea.vmem %s5767_s11, %s4947_s14 }
  0x11   : > { %v502_v6 = vpack.c.bf16 %v495_v5, %v494_v4  ;;  %v496_v7 = vld [vmem:[%s4961_s20] sm:$0xff]  ;;  %v497_v8 = vld [vmem:[%s4961_s20 + $0x8] sm:$0xff]  ;;  %s489_s16 = scalar_lea.vmem %s5768_s12, %s4947_s14 }
  0x12   : > { %v503_v9 = vpack.c.bf16 %v497_v8, %v496_v7 }
  0x13   : > { %4574 = vmatprep.mubr.msk.bf16.mxu1 %vm524_vm0, %v502_v6  ;;  %4566 = vmatprep.mubr.msk.bf16.mxu0 %vm524_vm0, %v502_v6 }
  0x14   : > { %4575 = vmatmul.mubr.msk.bf16.vlgmr.msra.gmra.mrb[0].mxu1 %vm524_vm0, %v503_v9  ;;  %4567 = vmatmul.mubr.msk.bf16.vlgmr.msra.gmra.mrb[0].mxu0 %vm524_vm0, %v503_v9 }
  0x15   : > { %4582 = vmatprep.mubr.msk.bf16.mxu0 %vm524_vm0, %v502_v6  ;;  %4579 = vmatpush3.bf16.msra.mxu0 %v4766_v33 }
  0x16   : > { %4580 = vmatprep.subr.bf16.mxu0 %v4767_v37  ;;  %4588 = vmatprep.mubr.msk.bf16.mxu1 %vm4855_vm1, %v4853_v10 }
  0x19   : > { %4581 = vmatpush3.bf16.msra.mxu0 %v4767_v37 }
  0x1a   : > { %4592 = vmatprep.subr.bf16.mxu0 %v4853_v10 }
  0x1c   : > { %4583 = vmatmul.mubr.msk.bf16.vlgmr.msra.gmra.mrb[4].mxu0 %vm524_vm0, %v503_v9 }
  0x1d   : > { %4594 = vmatprep.mubr.msk.bf16.mxu0 %vm4855_vm1, %v4853_v10 }
  0xe7   : > { %v4576_v18 = vpop.f32.mrb[0].mxu1  ;;  %v4568_v19 = vpop.f32.mrb[0].mxu0 }
  0xe8   : > { %v4986_v20 = vadd.f32 %v4576_v18, %v591_v16  ;;  %v638_v21 = vpop.f32.mrb[1].mxu1  ;;  %v4988_v22 = vadd.f32 %v4568_v19, %v511_v17  ;;  %v565_v23 = vpop.f32.mrb[1].mxu0 }
  0xe9   : > { %v639_v24 = vadd.f32 %v638_v21, %v591_v16  ;;  %v4577_v25 = vpop.f32.mrb[2].mxu1  ;;  %v566_v26 = vadd.f32 %v565_v23, %v511_v17  ;;  %v4569_v27 = vpop.f32.mrb[2].mxu0 }
  0xea   : > { %v4990_v28 = vadd.f32 %v4577_v25, %v591_v16  ;;  %v641_v29 = vpop.f32.mrb[3].mxu1  ;;  %v568_v30 = vpop.f32.mrb[3].mxu0  ;;  %v4997_v34 = vadd.f32 %v4569_v27, %v511_v17 }
  0xeb   : > { %v580_v31 = vmul.f32 0.25, %v566_v26  ;;  %v642_v32 = vadd.f32 %v641_v29, %v591_v16  ;;  %1252 = vrot.lane.b32.xlu0 %v639_v24, %s4854_s24  ;;  %v569_v35 = vadd.f32 %v568_v30, %v511_v17  ;;  %v1258_v45 = vcombine.high %v639_v24, %v4853_v10 }
  0xec   : > { %v1265_v47 = vrot.slane %v639_v24, %v5011_v43 }
  0xed   : > { %1254 = vrot.lane.b32.xlu1 %v642_v32, %s4854_s24  ;;  %v581_v36 = vmul.f32 0.25, %v569_v35  ;;  %v1272_v51 = vrot.slane %v1258_v45, %v5011_v43  ;;  %v1324_v57 = vcombine.high %v642_v32, %v4853_v10  ;;  %v730_v61 = vcombine.high %v580_v31, %v4853_v10 }
  0xee   : > { %v1331_v62 = vrot.slane %v642_v32, %v5011_v43  ;;  %v737_v11 = vrot.slane %v580_v31, %v5011_v43 }
  0xef   : > { %724 = vrot.lane.b32.xlu0 %v580_v31, %s4854_s24  ;;  %v796_v1 = vcombine.high %v581_v36, %v4853_v10  ;;  %v1338_v4 = vrot.slane %v1324_v57, %v5011_v43  ;;  %v744_v16 = vrot.slane %v730_v61, %v5011_v43  ;;  %v803_v19 = vrot.slane %v581_v36, %v5011_v43 }
  0xf1   : > { %726 = vrot.lane.b32.xlu1 %v581_v36, %s4854_s24  ;;  %v810_v21 = vrot.slane %v796_v1, %v5011_v43 }
 0x15d   : > { %v1253_v46 = vpop.permute.xlu0 %1252 }
 0x15e   : > { %v1273_v48 = vcombine.high %v1253_v46, %v4853_v10  ;;  %v1280_v49 = vrot.slane %v1253_v46, %v5011_v43 }
 0x15f   : > { %v1255_v52 = vpop.permute.xlu1 %1254 }
 0x160   : > { %v1287_v53 = vrot.slane %v1273_v48, %v5011_v43  ;;  %v1288_v54 = vcombine.low %v1265_v47, %v1280_v49  ;;  %v1289_v55 = vcombine.high %v1265_v47, %v1280_v49  ;;  %v1339_v56 = vcombine.high %v1255_v52, %v4853_v10 }
 0x161   : > { %v1346_v58 = vrot.slane %v1255_v52, %v5011_v43  ;;  %v725_v0 = vpop.permute.xlu0 %724 }
 0x162   : > { %v1304_v59 = vcombine.low %v1272_v51, %v1287_v53  ;;  %v1305_v60 = vcombine.high %v1272_v51, %v1287_v53  ;;  %v1353_v63 = vrot.slane %v1339_v56, %v5011_v43  ;;  %v1296_v2 = vrot.slane %v1288_v54, %v5018_v50 }
 0x163   : > { %v1303_v3 = vrot.slane %v1289_v55, %v5018_v50  ;;  %v1354_v6 = vcombine.low %v1331_v62, %v1346_v58  ;;  %v1355_v7 = vcombine.high %v1331_v62, %v1346_v58  ;;  %v745_v9 = vcombine.high %v725_v0, %v4853_v10  ;;  %v727_v18 = vpop.permute.xlu1 %726 }
 0x164   : > { %v1312_v5 = vrot.slane %v1304_v59, %v5018_v50  ;;  %v1319_v8 = vrot.slane %v1305_v60, %v5018_v50  ;;  %v1370_v17 = vcombine.low %v1338_v4, %v1353_v63  ;;  %v1320_v23 = vcombine.high %v1296_v2, %v4853_v10 }
 0x165   : > { %v1321_v24 = vcombine.high %v1303_v3, %v4853_v10  ;;  %v1362_v26 = vrot.slane %v1354_v6, %v5018_v50  ;;  %v1369_v27 = vrot.slane %v1355_v7, %v5018_v50  ;;  %v1371_v29 = vcombine.high %v1338_v4, %v1353_v63 }
 0x166   : > { %v1322_v25 = vcombine.high %v1312_v5, %v4853_v10  ;;  %v1323_v30 = vcombine.high %v1319_v8, %v4853_v10  ;;  %v752_v31 = vrot.slane %v725_v0, %v5011_v43  ;;  %v759_v32 = vrot.slane %v745_v9, %v5011_v43 }
 0x167   : > { %v811_v33 = vcombine.high %v727_v18, %v4853_v10  ;;  %v4412_v35 = vpack.c.bf16 %v1312_v5, %v1296_v2  ;;  %v4413_v36 = vpack.c.bf16 %v1319_v8, %v1303_v3  ;;  %v1378_v37 = vrot.slane %v1370_v17, %v5018_v50 }
 0x168   : > { %v818_v38 = vrot.slane %v727_v18, %v5011_v43  ;;  %v760_v39 = vcombine.low %v737_v11, %v752_v31  ;;  %v761_v40 = vcombine.high %v737_v11, %v752_v31  ;;  %v776_v41 = vcombine.low %v744_v16, %v759_v32 }
 0x169   : > { %v777_v42 = vcombine.high %v744_v16, %v759_v32  ;;  %v1385_v44 = vrot.slane %v1371_v29, %v5018_v50  ;;  %v1386_v45 = vcombine.high %v1362_v26, %v4853_v10  ;;  %v1387_v46 = vcombine.high %v1369_v27, %v4853_v10 }
 0x16a   : > { %v825_v47 = vrot.slane %v811_v33, %v5011_v43  ;;  %v768_v48 = vrot.slane %v760_v39, %v5018_v50  ;;  %v775_v49 = vrot.slane %v761_v40, %v5018_v50  ;;  %v784_v51 = vrot.slane %v776_v41, %v5018_v50 }
 0x16b   : > { %v791_v52 = vrot.slane %v777_v42, %v5018_v50  ;;  %v1413_v53 = vrot.slane %v4412_v35, %v5011_v43  ;;  %v1421_v54 = vrot.slane %v4413_v36, %v5011_v43  ;;  %v826_v59 = vcombine.low %v803_v19, %v818_v38 }
 0x16c   : > { %v842_v55 = vcombine.low %v810_v21, %v825_v47  ;;  %v843_v56 = vcombine.high %v810_v21, %v825_v47  ;;  %v794_v57 = vcombine.high %v784_v51, %v4853_v10  ;;  %v827_v60 = vcombine.high %v803_v19, %v818_v38 }
 0x16d   : > { %v795_v58 = vcombine.high %v791_v52, %v4853_v10  ;;  %v1388_v61 = vcombine.high %v1378_v37, %v4853_v10  ;;  %v1389_v62 = vcombine.high %v1385_v44, %v4853_v10  ;;  %v792_v63 = vcombine.high %v768_v48, %v4853_v10 }
 0x16e   : > { %v793_v0 = vcombine.high %v775_v49, %v4853_v10  ;;  %v4414_v1 = vpack.c.bf16 %v1322_v25, %v1320_v23  ;;  %v4416_v2 = vpack.c.bf16 %v1378_v37, %v1362_v26  ;;  %v850_v3 = vrot.slane %v842_v55, %v5018_v50 }
 0x16f   : > { %v857_v4 = vrot.slane %v843_v56, %v5018_v50  ;;  %v4415_v5 = vpack.c.bf16 %v1323_v30, %v1321_v24  ;;  %v4417_v6 = vpack.c.bf16 %v1385_v44, %v1369_v27  ;;  %v4398_v7 = vpack.c.bf16 %v794_v57, %v792_v63 }
 0x170   : > { %v4399_v8 = vpack.c.bf16 %v795_v58, %v793_v0  ;;  %v4396_v9 = vpack.c.bf16 %v784_v51, %v768_v48  ;;  %v4397_v11 = vpack.c.bf16 %v791_v52, %v775_v49  ;;  %v834_v16 = vrot.slane %v826_v59, %v5018_v50 }
 0x171   : > { %v841_v17 = vrot.slane %v827_v60, %v5018_v50  ;;  %v4418_v18 = vpack.c.bf16 %v1388_v61, %v1386_v45  ;;  %v4419_v19 = vpack.c.bf16 %v1389_v62, %v1387_v46  ;;  %v1422_v21 = vcombine.low %v1413_v53, %v1421_v54 }
 0x172   : > { %v1461_v23 = vrot.slane %v4416_v2, %v5011_v43  ;;  %v860_v25 = vcombine.high %v850_v3, %v4853_v10  ;;  %v861_v26 = vcombine.high %v857_v4, %v4853_v10  ;;  %v1437_v24 = vrot.slane %v4414_v1, %v5011_v43 }
 0x173   : > { %v1469_v27 = vrot.slane %v4417_v6, %v5011_v43  ;;  %v909_v29 = vrot.slane %v4398_v7, %v5011_v43  ;;  %v917_v30 = vrot.slane %v4399_v8, %v5011_v43  ;;  %v1445_v31 = vrot.slane %v4415_v5, %v5011_v43 }
 0x174   : > { %v885_v32 = vrot.slane %v4396_v9, %v5011_v43  ;;  %v893_v33 = vrot.slane %v4397_v11, %v5011_v43  ;;  %v858_v35 = vcombine.high %v834_v16, %v4853_v10  ;;  %v859_v36 = vcombine.high %v841_v17, %v4853_v10 }
 0x175   : > { %v1429_v37 = vrot.slane %v1422_v21, %v5018_v50  ;;  %v1446_v38 = vcombine.low %v1437_v24, %v1445_v31  ;;  %v1485_v39 = vrot.slane %v4418_v18, %v5011_v43  ;;  %v1493_v40 = vrot.slane %v4419_v19, %v5011_v43 }
 0x176   : > { %v4402_v41 = vpack.c.bf16 %v860_v25, %v858_v35  ;;  %v4403_v42 = vpack.c.bf16 %v861_v26, %v859_v36  ;;  %v918_v44 = vcombine.low %v909_v29, %v917_v30  ;;  %v1470_v46 = vcombine.low %v1461_v23, %v1469_v27  ;;  %v4584_v30 = vpop.f32.mrb[4].mxu0 }
 0x177   : > { %v1453_v45 = vrot.slane %v1446_v38, %v5018_v50  ;;  %v1494_v47 = vcombine.low %v1485_v39, %v1493_v40  ;;  %v894_v48 = vcombine.low %v885_v32, %v893_v33  ;;  %v4400_v49 = vpack.c.bf16 %v850_v3, %v834_v16  ;;  %v5135_v32 = vpop.f32.mrb[5].mxu0 }
 0x178   : > { %v4401_v51 = vpack.c.bf16 %v857_v4, %v841_v17  ;;  %v1505_v53 = vshrl.u32 %v1429_v37, 16  ;;  %v957_v56 = vrot.slane %v4402_v41, %v5011_v43  ;;  %v965_v57 = vrot.slane %v4403_v42, %v5011_v43  ;;  %v4585_v33 = vpop.f32.mrb[6].mxu0 }
 0x179   : > { %v5086_v52 = vpack.i.b16 %v1453_v45, %v1429_v37  ;;  %v1506_v54 = vshrl.u32 %v1453_v45, 16  ;;  %v1501_v55 = vrot.slane %v1494_v47, %v5018_v50  ;;  %v925_v60 = vrot.slane %v918_v44, %v5018_v50  ;;  %v5140_v36 = vpop.f32.mrb[7].mxu0  ;;  %v4448_v37 = vld [vmem:[%s472_s15] ss:$0 sm:$0xff] }
 0x17a   : > { %v1477_v61 = vrot.slane %v1470_v46, %v5018_v50  ;;  %v933_v62 = vrot.slane %v4400_v49, %v5011_v43  ;;  %v901_v63 = vrot.slane %v894_v48, %v5018_v50  ;;  %v941_v0 = vrot.slane %v4401_v51, %v5011_v43 }
 0x17b   : > { %v2347_v58 = vsel %vm2343_vm2, %v5086_v52, 0  ;;  %v5093_v59 = vpack.i.b16 %v1506_v54, %v1505_v53  ;;  %v1512_v2 = vshrl.u32 %v1501_v55, 16  ;;  %v966_v3 = vcombine.low %v957_v56, %v965_v57  ;;  %v4449_v53 = vld [vmem:[%s472_s15 + $0x1] ss:$0 sm:$0xff] }
 0x17c   : > { %4587 = vmatpush3.bf16.xpose.msra.mxu1 %v2347_v58  ;;  %v5103_v4 = vpack.i.b16 %v1501_v55, %v1477_v61  ;;  %v978_v5 = vshrl.u32 %v925_v60, 16  ;;  %v1511_v6 = vshrl.u32 %v1477_v61, 16  ;;  %v942_v7 = vcombine.low %v933_v62, %v941_v0 }
 0x17d   : > { %v2392_v1 = vsel %vm2343_vm2, %v5093_v59, 0  ;;  %4598 = vmatprep.subr.bf16.mxu1 %v4853_v10  ;;  %v976_v8 = vpack.i.b16 %v925_v60, %v901_v63  ;;  %v977_v9 = vshrl.u32 %v901_v63, 16  ;;  %v973_v18 = vrot.slane %v966_v3, %v5018_v50 }
 0x17e   : > { %4593 = vmatpush3.bf16.xpose.msra.mxu0 %v2392_v1  ;;  %v5106_v11 = vpack.i.b16 %v1512_v2, %v1511_v6  ;;  %v2437_v16 = vsel %vm2343_vm2, %v5103_v4, 0  ;;  %v949_v19 = vrot.slane %v942_v7, %v5018_v50  ;;  %v659_v27 = vsub.s32 2, %v4971_v12 }
 0x17f   : > { %4604 = vmatprep.subr.bf16.mxu0 %v4853_v10  ;;  %v979_v17 = vpack.i.b16 %v978_v5, %v977_v9  ;;  %v984_v23 = vshrl.u32 %v973_v18, 16 }
 0x180   : > { %v2482_v21 = vsel %vm2343_vm2, %v5106_v11, 0  ;;  %v982_v25 = vpack.i.b16 %v973_v18, %v949_v19  ;;  %v983_v26 = vshrl.u32 %v949_v19, 16  ;;  %v5130_v29 = vrot.slane %v4977_v14, %v659_v27 }
 0x182   : > { %v985_v24 = vpack.i.b16 %v984_v23, %v983_v26  ;;  %v5133_v31 = vadd.f32 %v4584_v30, %v5130_v29  ;;  %v5138_v35 = vadd.f32 %v4585_v33, %v5130_v29 }
 0x183   : > { %4589 = vmatmul.mubr.msk.bf16.vlgmr.msra.gmra.mrb[4].mxu1 %vm2343_vm2, %v976_v8 }
 0x184   : > { %4599 = vmatpush3.bf16.xpose.msra.mxu1 %v2437_v16  ;;  %4600 = vmatprep.mubr.msk.bf16.mxu1 %vm4855_vm1, %v4853_v10 }
 0x185   : > { %4595 = vmatmul.mubr.msk.bf16.vlgmr.msra.gmra.mrb[8].mxu0 %vm2343_vm2, %v979_v17  ;;  %4610 = vmatprep.subr.bf16.mxu1 %v4853_v10 }
 0x186   : > { %4605 = vmatpush3.bf16.xpose.msra.mxu0 %v2482_v21  ;;  %4606 = vmatprep.mubr.msk.bf16.mxu0 %vm4855_vm1, %v4853_v10 }
 0x187   : > { %4616 = vmatprep.subr.bf16.mxu0 %v4853_v10 }
 0x18b   : > { %4601 = vmatmul.mubr.msk.bf16.vlgmr.msra.gmra.mrb[8].mxu1 %vm2343_vm2, %v982_v25 }
 0x18c   : > { %4612 = vmatprep.mubr.msk.bf16.mxu1 %vm4855_vm1, %v4853_v10 }
 0x18d   : > { %4607 = vmatmul.mubr.msk.bf16.vlgmr.msra.gmra.mrb[12].mxu0 %vm2343_vm2, %v985_v24 }
 0x18e   : > { %4618 = vmatprep.mubr.msk.bf16.mxu0 %vm4855_vm1, %v4853_v10 }
 0x256   : > { %v2383_v38 = vpop.f32.mrb[4].mxu1 }
 0x257   : > { %v2536_v39 = vadd.f32 %v4448_v37, %v2383_v38  ;;  %v4590_v40 = vpop.f32.mrb[5].mxu1 }
 0x258   : > { %v2386_v41 = vpop.f32.mrb[6].mxu1  ;;  %v2428_v42 = vpop.f32.mrb[8].mxu0  ;;  %v711_v40 = vadd.f32 %v5140_v36, %v5130_v29 }
 0x259   : > { %v2537_v44 = vadd.f32 %v4448_v37, %v2428_v42  ;;  %v4591_v45 = vpop.f32.mrb[7].mxu1  ;;  %v4596_v46 = vpop.f32.mrb[9].mxu0  ;;  %v2541_v47 = vsel %vm2540_vm3, %v2536_v39, -inf }
 0x25a   : > { %v2431_v48 = vpop.f32.mrb[10].mxu0  ;;  %2542 = vmax.xlane.f32.xlu0 %v2541_v47 }
 0x25b   : > { %v4597_v49 = vpop.f32.mrb[11].mxu0  ;;  %v2544_v51 = vsel %vm2540_vm3, %v2537_v44, -inf }
 0x25c   : > { %2545 = vmax.xlane.f32.xlu1 %v2544_v51 }
 0x25e   : > { %v2473_v54 = vpop.f32.mrb[8].mxu1 }
 0x25f   : > { %v2538_v55 = vadd.f32 %v4449_v53, %v2473_v54  ;;  %v4602_v56 = vpop.f32.mrb[9].mxu1 }
 0x260   : > { %v2476_v57 = vpop.f32.mrb[10].mxu1  ;;  %v2518_v58 = vpop.f32.mrb[12].mxu0 }
 0x261   : > { %v2539_v60 = vadd.f32 %v4449_v53, %v2518_v58  ;;  %v4603_v61 = vpop.f32.mrb[11].mxu1  ;;  %v4608_v62 = vpop.f32.mrb[13].mxu0  ;;  %v2547_v63 = vsel %vm2540_vm3, %v2538_v55, -inf }
 0x262   : > { %v2521_v0 = vpop.f32.mrb[14].mxu0  ;;  %2548 = vmax.xlane.f32.xlu0 %v2547_v63 }
 0x263   : > { %v4609_v1 = vpop.f32.mrb[15].mxu0  ;;  %v2550_v2 = vsel %vm2540_vm3, %v2539_v60, -inf }
 0x266   : > { %2551 = vmax.xlane.f32.xlu0 %v2550_v2 }
 0x2e7   : > { %v2543_v3 = vpop.xlane.xlu0 %2542 }
 0x2e8   : > { %v2553_v5 = vsub.f32 %v2536_v39, %v2543_v3  ;;  %v708_v39 = vadd.f32 %v5135_v32, %v5130_v29  ;;  %v1852_v3 = vcombine.high %v711_v40, %v4853_v10 }
 0x2e9   : > { %v2546_v6 = vpop.xlane.xlu1 %2545 }
 0x2ea   : > { %v2557_v7 = vmul.f32 1.442695, %v2553_v5  ;;  %v2554_v8 = vsub.f32 %v2537_v44, %v2546_v6  ;;  %v1786_v42 = vcombine.high %v708_v39, %v4853_v10  ;;  %v1793_v46 = vrot.slane %v708_v39, %v5011_v43 }
 0x2ec   : > { %4784 = vpow2.f32 %v2557_v7  ;;  %v2559_v9 = vmul.f32 1.442695, %v2554_v8  ;;  %v1800_v32 = vrot.slane %v1786_v42, %v5011_v43 }
 0x2ee   : > { %4786 = vpow2.f32 %v2559_v9  ;;  %v1859_v9 = vrot.slane %v711_v40, %v5011_v43 }
 0x2ef   : > { %v2549_v16 = vpop.xlane.xlu0 %2548 }
 0x2f0   : > { %v2555_v17 = vsub.f32 %v2538_v55, %v2549_v16 }
 0x2f2   : > { %v2561_v18 = vmul.f32 1.442695, %v2555_v17 }
 0x2f3   : > { %v2552_v19 = vpop.xlane.xlu0 %2551 }
 0x2f4   : > { %4788 = vpow2.f32 %v2561_v18  ;;  %v2556_v21 = vsub.f32 %v2539_v60, %v2552_v19 }
 0x2f6   : > { %v5150_v23 = vpop.eup %4784  ;;  %v2563_v25 = vmul.f32 1.442695, %v2556_v21 }
 0x2f7   : > { %v2565_v26 = vsel %vm2540_vm3, %v5150_v23, 0.0 }
 0x2f8   : > { %v5154_v24 = vpop.eup %4786  ;;  %4790 = vpow2.f32 %v2563_v25  ;;  %2566 = vadd.xlane.f32.xlu1 %v2565_v26 }
 0x2f9   : > { %v2568_v27 = vsel %vm2540_vm3, %v5154_v24, 0.0 }
 0x2fa   : > { %2569 = vadd.xlane.f32.xlu0 %v2568_v27  ;;  %v1866_v27 = vrot.slane %v1852_v3, %v5011_v43 }
 0x2fe   : > { %v5158_v30 = vpop.eup %4788 }
 0x2ff   : > { %v2571_v33 = vsel %vm2540_vm3, %v5158_v30, 0.0 }
 0x300   : > { %2572 = vadd.xlane.f32.xlu0 %v2571_v33 }
 0x302   : > { %v5162_v37 = vpop.eup %4790 }
 0x303   : > { %v2574_v38 = vsel %vm2540_vm3, %v5162_v37, 0.0 }
 0x304   : > { %2575 = vadd.xlane.f32.xlu0 %v2574_v38 }
 0x309   : > { %1780 = vrot.lane.b32.xlu1 %v708_v39, %s4854_s24 }
 0x31a   : > { %1782 = vrot.lane.b32.xlu0 %v711_v40, %s4854_s24 }
 0x385   : > { %v2567_v41 = vpop.xlane.xlu1 %2566 }
 0x386   : > { %4792 = vrcp.f32 %v2567_v41 }
 0x387   : > { %v2570_v44 = vpop.xlane.xlu0 %2569 }
 0x388   : > { %4794 = vrcp.f32 %v2570_v44 }
 0x389   : > { %v1781_v45 = vpop.permute.xlu1 %1780 }
 0x38a   : > { %v1801_v47 = vcombine.high %v1781_v45, %v4853_v10  ;;  %v1808_v48 = vrot.slane %v1781_v45, %v5011_v43 }
 0x38c   : > { %v1815_v49 = vrot.slane %v1801_v47, %v5011_v43  ;;  %v1816_v51 = vcombine.low %v1793_v46, %v1808_v48  ;;  %v1817_v53 = vcombine.high %v1793_v46, %v1808_v48 }
 0x38d   : > { %v2573_v29 = vpop.xlane.xlu0 %2572 }
 0x38e   : > { %v1824_v36 = vrot.slane %v1816_v51, %v5018_v50  ;;  %v1831_v54 = vrot.slane %v1817_v53, %v5018_v50  ;;  %v1832_v55 = vcombine.low %v1800_v32, %v1815_v49  ;;  %v1833_v56 = vcombine.high %v1800_v32, %v1815_v49 }
 0x38f   : > { %4796 = vrcp.f32 %v2573_v29 }
 0x390   : > { %v1840_v57 = vrot.slane %v1832_v55, %v5018_v50  ;;  %v1847_v58 = vrot.slane %v1833_v56, %v5018_v50  ;;  %v1848_v60 = vcombine.high %v1824_v36, %v4853_v10  ;;  %v1849_v61 = vcombine.high %v1831_v54, %v4853_v10  ;;  %v4793_v25 = vpop.eup %4792 }
 0x391   : > { %v2576_v62 = vpop.xlane.xlu0 %2575  ;;  %v2581_v32 = vmul.f32 %v4793_v25, %v5150_v23 }
 0x392   : > { %v1850_v63 = vcombine.high %v1840_v57, %v4853_v10  ;;  %v1851_v0 = vcombine.high %v1847_v58, %v4853_v10  ;;  %v4428_v1 = vpack.c.bf16 %v1840_v57, %v1824_v36  ;;  %v4429_v2 = vpack.c.bf16 %v1847_v58, %v1831_v54  ;;  %v4795_v41 = vpop.eup %4794 }
 0x393   : > { %v2582_v49 = vmul.f32 %v4795_v41, %v5154_v24  ;;  %4798 = vrcp.f32 %v2576_v62  ;;  %v2585_v3 = vpack.c.bf16 %v2581_v32, %v2581_v32 }
 0x394   : > { %v1941_v5 = vrot.slane %v4428_v1, %v5011_v43  ;;  %v1949_v6 = vrot.slane %v4429_v2, %v5011_v43  ;;  %v4430_v7 = vpack.c.bf16 %v1850_v63, %v1848_v60  ;;  %v4431_v8 = vpack.c.bf16 %v1851_v0, %v1849_v61 }
 0x395   : > { %v1783_v16 = vpop.permute.xlu0 %1782 }
 0x396   : > { %v1867_v17 = vcombine.high %v1783_v16, %v4853_v10  ;;  %v1874_v18 = vrot.slane %v1783_v16, %v5011_v43  ;;  %v1950_v19 = vcombine.low %v1941_v5, %v1949_v6  ;;  %v1965_v21 = vrot.slane %v4430_v7, %v5011_v43 }
 0x397   : > { %v1973_v26 = vrot.slane %v4431_v8, %v5011_v43  ;;  %v2586_v6 = vpack.c.bf16 %v2582_v49, %v2582_v49 }
 0x398   : > { %v1881_v33 = vrot.slane %v1867_v17, %v5011_v43  ;;  %v1882_v38 = vcombine.low %v1859_v9, %v1874_v18  ;;  %v1883_v39 = vcombine.high %v1859_v9, %v1874_v18  ;;  %v1957_v40 = vrot.slane %v1950_v19, %v5018_v50 }
 0x399   : > { %v1974_v42 = vcombine.low %v1965_v21, %v1973_v26  ;;  %v4797_v9 = vpop.eup %4796 }
 0x39a   : > { %v1890_v44 = vrot.slane %v1882_v38, %v5018_v50  ;;  %v1897_v45 = vrot.slane %v1883_v39, %v5018_v50  ;;  %v1898_v46 = vcombine.low %v1866_v27, %v1881_v33  ;;  %v1899_v47 = vcombine.high %v1866_v27, %v1881_v33 }
 0x39b   : > { %v1981_v48 = vrot.slane %v1974_v42, %v5018_v50  ;;  %v2033_v54 = vshrl.u32 %v1957_v40, 16  ;;  %v2583_v21 = vmul.f32 %v4797_v9, %v5158_v30 }
 0x39c   : > { %v1906_v51 = vrot.slane %v1898_v46, %v5018_v50  ;;  %v1913_v53 = vrot.slane %v1899_v47, %v5018_v50  ;;  %v1914_v56 = vcombine.high %v1890_v44, %v4853_v10  ;;  %v1915_v29 = vcombine.high %v1897_v45, %v4853_v10 }
 0x39d   : > { %v5204_v36 = vpack.i.b16 %v1981_v48, %v1957_v40  ;;  %v2034_v55 = vshrl.u32 %v1981_v48, 16  ;;  %v4799_v18 = vpop.eup %4798  ;;  %v2587_v40 = vpack.c.bf16 %v2583_v21, %v2583_v21 }
 0x39e   : > { %v1916_v57 = vcombine.high %v1906_v51, %v4853_v10  ;;  %v4432_v58 = vpack.c.bf16 %v1906_v51, %v1890_v44  ;;  %v1917_v23 = vcombine.high %v1913_v53, %v4853_v10  ;;  %v4433_v60 = vpack.c.bf16 %v1913_v53, %v1897_v45 }
 0x39f   : > { %v2592_v24 = vsel %vm2310_vm4, %v5204_v36, 0  ;;  %v5212_v61 = vpack.i.b16 %v2034_v55, %v2033_v54  ;;  %v2584_v33 = vmul.f32 %v4799_v18, %v5162_v37  ;;  %v4768_v37 = vld [vmem:[%s5763_s7] sm:$0xff]  }
 0x3a0   : > { %v1989_v62 = vrot.slane %v4432_v58, %v5011_v43  ;;  %v4434_v63 = vpack.c.bf16 %v1916_v57, %v1914_v56  ;;  %4611 = vmatpush3.bf16.msra.mxu1 %v2592_v24  ;;  %v1997_v0 = vrot.slane %v4433_v60, %v5011_v43  ;;  %v4435_v1 = vpack.c.bf16 %v1917_v23, %v1915_v29 }
 0x3a1   : > { %v2637_v2 = vsel %vm2310_vm4, %v5212_v61, 0  ;;  %4622 = vmatprep.subr.bf16.mxu1 %v4853_v10  ;;  %v2588_v30 = vpack.c.bf16 %v2584_v33, %v2584_v33 }
 0x3a2   : > { %4617 = vmatpush3.bf16.msra.mxu0 %v2637_v2  ;;  %v2013_v5 = vrot.slane %v4434_v63, %v5011_v43  ;;  %v1998_v7 = vcombine.low %v1989_v62, %v1997_v0  ;;  %v2021_v8 = vrot.slane %v4435_v1, %v5011_v43 }
 0x3a3   : > { %4613 = vmatmul.mubr.msk.bf16.vlgmr.msra.gmra.mrb[12].mxu1 %vm2540_vm3, %v2585_v3  ;;  %4628 = vmatprep.subr.bf16.mxu0 %v4853_v10 }
 0x3a4   : > { %4624 = vmatprep.mubr.msk.bf16.mxu1 %vm4855_vm1, %v4853_v10  ;;  %v2005_v16 = vrot.slane %v1998_v7, %v5018_v50  ;;  %v2022_v17 = vcombine.low %v2013_v5, %v2021_v8 }
 0x3a5   : > { %4619 = vmatmul.mubr.msk.bf16.vlgmr.msra.gmra.mrb[16].mxu0 %vm2540_vm3, %v2586_v6 }
 0x3a6   : > { %4630 = vmatprep.mubr.msk.bf16.mxu0 %vm4855_vm1, %v4853_v10  ;;  %v2029_v19 = vrot.slane %v2022_v17, %v5018_v50  ;;  %v2039_v26 = vshrl.u32 %v2005_v16, 16 }
 0x3a8   : > { %v5231_v25 = vpack.i.b16 %v2029_v19, %v2005_v16  ;;  %v2040_v27 = vshrl.u32 %v2029_v19, 16 }
 0x3aa   : > { %v2682_v38 = vsel %vm2310_vm4, %v5231_v25, 0  ;;  %v5236_v39 = vpack.i.b16 %v2040_v27, %v2039_v26 }
 0x3ab   : > { %4623 = vmatpush3.bf16.msra.mxu1 %v2682_v38 }
 0x3ac   : > { %v2727_v41 = vsel %vm2310_vm4, %v5236_v39, 0  ;;  %4634 = vmatprep.subr.bf16.mxu1 %v4853_v10 }
 0x3ad   : > { %4629 = vmatpush3.bf16.msra.mxu0 %v2727_v41 }
 0x3ae   : > { %4625 = vmatmul.mubr.msk.bf16.vlgmr.msra.gmra.mrb[16].mxu1 %vm2540_vm3, %v2587_v40  ;;  %4642 = vmatprep.subr.bf16.mxu0 %v4853_v10 }
 0x3af   : > { %4638 = vmatprep.mubr.msk.bf16.mxu1 %vm4855_vm1, %v4853_v10  ;;  %4635 = vmatpush3.bf16.msra.mxu1 %v4768_v37 }
 0x3b0   : > { %4631 = vmatmul.mubr.msk.bf16.vlgmr.msra.gmra.mrb[20].mxu0 %vm2540_vm3, %v2588_v30  ;;  %4636 = vmatprep.subr.bf16.mxu1 %v4853_v10 }
 0x3b1   : > { %4646 = vmatprep.mubr.msk.bf16.mxu0 %vm4855_vm1, %v4853_v10 }
 0x476   : > { %v2628_v42 = vpop.f32.mrb[12].mxu1 }
 0x477   : > { %v2769_v44 = vcombine.high %v2628_v42, %v4853_v10  ;;  %v4614_v45 = vpop.f32.mrb[13].mxu1  ;;  %v2776_v48 = vrot.slane %v2628_v42, %v5011_v43 }
 0x478   : > { %v2631_v46 = vpop.f32.mrb[14].mxu1  ;;  %v2673_v47 = vpop.f32.mrb[16].mxu0 }
 0x479   : > { %v2784_v32 = vcombine.high %v2673_v47, %v4853_v10  ;;  %v2791_v49 = vrot.slane %v2673_v47, %v5011_v43  ;;  %v4615_v51 = vpop.f32.mrb[15].mxu1  ;;  %v4620_v53 = vpop.f32.mrb[17].mxu0  ;;  %v2783_v55 = vrot.slane %v2769_v44, %v5011_v43 }
 0x47a   : > { %v2676_v54 = vpop.f32.mrb[18].mxu0 }
 0x47b   : > { %v2798_v56 = vrot.slane %v2784_v32, %v5011_v43  ;;  %v2799_v29 = vcombine.low %v2776_v48, %v2791_v49  ;;  %v2800_v57 = vcombine.high %v2776_v48, %v2791_v49  ;;  %v4621_v58 = vpop.f32.mrb[19].mxu0 }
 0x47d   : > { %v2807_v23 = vrot.slane %v2799_v29, %v5018_v50  ;;  %v2814_v60 = vrot.slane %v2800_v57, %v5018_v50  ;;  %v2815_v24 = vcombine.low %v2783_v55, %v2798_v56  ;;  %v2816_v62 = vcombine.high %v2783_v55, %v2798_v56 }
 0x47f   : > { %v2823_v63 = vrot.slane %v2815_v24, %v5018_v50  ;;  %v2830_v0 = vrot.slane %v2816_v62, %v5018_v50  ;;  %v2901_v1 = vcombine.low %v2807_v23, %v2814_v60  ;;  %v4454_v2 = vcombine.high %v2807_v23, %v2814_v60 }
 0x481   : > { %v2908_v3 = vrot.slane %v2901_v1, %v5011_v43  ;;  %v2916_v5 = vrot.slane %v4454_v2, %v5011_v43  ;;  %v2917_v6 = vcombine.low %v2823_v63, %v2830_v0  ;;  %v4455_v7 = vcombine.high %v2823_v63, %v2830_v0  ;;  %v2718_v8 = vpop.f32.mrb[16].mxu1  ;;  %v4769_v0 = vld [vmem:[%s5763_s7 + $0x8] sm:$0xff]  }
 0x482   : > { %v2835_v17 = vcombine.high %v2718_v8, %v4853_v10  ;;  %v4626_v18 = vpop.f32.mrb[17].mxu1  ;;  %v2842_v27 = vrot.slane %v2718_v8, %v5011_v43  ;;  %4637 = vmatpush3.bf16.msra.mxu1 %v4769_v0 }
 0x483   : > { %v2924_v9 = vrot.slane %v2917_v6, %v5011_v43  ;;  %v2932_v16 = vrot.slane %v4455_v7, %v5011_v43  ;;  %v2721_v19 = vpop.f32.mrb[18].mxu1  ;;  %v2763_v21 = vpop.f32.mrb[20].mxu0  ;;  %v2933_v26 = vcombine.low %v2908_v3, %v2916_v5  ;;  %4650 = vmatprep.subr.bf16.mxu1 %v4853_v10 }
 0x484   : > { %v2850_v33 = vcombine.high %v2763_v21, %v4853_v10  ;;  %v2857_v38 = vrot.slane %v2763_v21, %v5011_v43  ;;  %v4627_v41 = vpop.f32.mrb[19].mxu1  ;;  %v4632_v40 = vpop.f32.mrb[21].mxu0  ;;  %v2849_v37 = vrot.slane %v2835_v17, %v5011_v43 }
 0x485   : > { %v2941_v30 = vcombine.low %v2924_v9, %v2932_v16  ;;  %v2766_v42 = vpop.f32.mrb[22].mxu0  ;;  %v2940_v32 = vrot.slane %v2933_v26, %v5018_v50 }
 0x486   : > { %v2864_v44 = vrot.slane %v2850_v33, %v5011_v43  ;;  %v2865_v45 = vcombine.low %v2842_v27, %v2857_v38  ;;  %v2866_v46 = vcombine.high %v2842_v27, %v2857_v38  ;;  %v4633_v47 = vpop.f32.mrb[23].mxu0  ;;  %v3018_v33 = vsub.s32 3, %v4971_v12 }
 0x487   : > { %v2948_v48 = vrot.slane %v2941_v30, %v5018_v50 }
 0x488   : > { %v2873_v49 = vrot.slane %v2865_v45, %v5018_v50  ;;  %v2880_v51 = vrot.slane %v2866_v46, %v5018_v50  ;;  %v2881_v53 = vcombine.low %v2849_v37, %v2864_v44  ;;  %v2882_v54 = vcombine.high %v2849_v37, %v2864_v44  ;;  %v4840_v45 = vld [vmem:[%s4953_s17] sm:$0xff] }
 0x489   : > { %v2949_v55 = vcombine.low %v2940_v32, %v2948_v48  ;;  %v2950_v56 = vcombine.high %v2940_v32, %v2948_v48  ;;  %v5296_v38 = vrot.slane %v4977_v14, %v3018_v33  ;;  %v4841_v48 = vld [vmem:[%s4953_s17 + $0x8] sm:$0xff]  ;;  %v583_v14 = vmul.f32 0.25, %v4997_v34 }
 0x48a   : > { %v2889_v29 = vrot.slane %v2881_v53, %v5018_v50  ;;  %v2896_v57 = vrot.slane %v2882_v54, %v5018_v50  ;;  %v2951_v58 = vcombine.low %v2873_v49, %v2880_v51  ;;  %v4456_v23 = vcombine.high %v2873_v49, %v2880_v51 }
 0x48b   : > { %v1060_v34 = vcombine.high %v583_v14, %v4853_v10 }
 0x48c   : > { %v2958_v60 = vrot.slane %v2951_v58, %v5011_v43  ;;  %v2966_v24 = vrot.slane %v4456_v23, %v5011_v43  ;;  %v2967_v62 = vcombine.low %v2889_v29, %v2896_v57  ;;  %v4457_v63 = vcombine.high %v2889_v29, %v2896_v57 }
 0x48e   : > { %v2974_v1 = vrot.slane %v2967_v62, %v5011_v43  ;;  %v2982_v2 = vrot.slane %v4457_v63, %v5011_v43  ;;  %v2983_v3 = vcombine.low %v2958_v60, %v2966_v24  ;;  %v1067_v63 = vrot.slane %v583_v14, %v5011_v43 }
 0x490   : > { %v2991_v5 = vcombine.low %v2974_v1, %v2982_v2  ;;  %v2990_v6 = vrot.slane %v2983_v3, %v5018_v50  ;;  %v1074_v2 = vrot.slane %v1060_v34, %v5011_v43 }
 0x492   : > { %v2998_v7 = vrot.slane %v2991_v5, %v5018_v50 }
 0x494   : > { %v3000_v8 = vcombine.high %v2990_v6, %v2998_v7  ;;  %v2999_v9 = vcombine.low %v2990_v6, %v2998_v7 }
 0x496   : > { %v4752_v16 = vpack.i.bf16 %v3000_v8, %v2950_v56 }
 0x498   : > { %4753 = vrot.lane.b32.xlu1 %v4752_v16, %s4858_s23 }
 0x50a   : > { %v4754_v17 = vpop.permute.xlu1 %4753 }
 0x50b   : > { %v4756_v18 = vunpack.i.h.bf16 %v4754_v17  ;;  %v4755_v19 = vunpack.i.l.bf16 %v4754_v17 }
 0x50d   : > { %v3009_v21 = vsel %vm2343_vm2, %v2949_v55, %v4755_v19  ;;  %v3010_v26 = vsel %vm2343_vm2, %v2999_v9, %v4756_v18 }
 0x50e   : > { %v3011_v27 = vpack.c.bf16 %v3010_v26, %v3009_v21 }
 0x510   : > { %4639 = vmatmul.mubr.msk.bf16.vlgmr.msra.gmra.mrb[20].mxu1 %vm524_vm0, %v3011_v27 }
 0x511   : > { %4658 = vmatprep.mubr.msk.bf16.mxu1 %vm4855_vm1, %v4853_v10 }
 0x5e3   : > { %v3069_v41 = vpop.f32.mrb[20].mxu1 }
 0x5e4   : > { %v3070_v40 = vadd.f32 %v3069_v41, %v5296_v38  ;;  %v4640_v30 = vpop.f32.mrb[21].mxu1 }
 0x5e5   : > { %v3072_v37 = vpop.f32.mrb[22].mxu1 }
 0x5e6   : > { %v3073_v42 = vadd.f32 %v3072_v37, %v5296_v38  ;;  %v4641_v44 = vpop.f32.mrb[23].mxu1  ;;  %v3076_v46 = vadd.f32 %v4840_v45, %v3070_v40 }
 0x5e8   : > { %v3078_v47 = vsel %vm524_vm0, %v3076_v46, 0.0  ;;  %v3077_v32 = vadd.f32 %v4841_v48, %v3073_v42  ;;  %v582_v48 = vmul.f32 0.25, %v4988_v22  ;;  %v4771_v22 = vld [vmem:[%s5764_s8 + $0x8] sm:$0xff]  }
 0x5e9   : > { %3079 = vadd.xlane.f32.xlu1 %v3078_v47 }
 0x5ea   : > { %v3081_v49 = vsel %vm524_vm0, %v3077_v32, 0.0 }
 0x5eb   : > { %3082 = vadd.xlane.f32.xlu0 %v3081_v49 }
 0x601   : > { %1516 = vrot.lane.b32.xlu0 %v4986_v20, %s4854_s24 }
 0x605   : > { %990 = vrot.lane.b32.xlu0 %v583_v14, %s4854_s24 }
 0x676   : > { %v3080_v51 = vpop.xlane.xlu1 %3079 }
 0x677   : > { %v3085_v53 = vmul.f32 0.03125, %v3080_v51  ;;  %v4770_v51 = vld [vmem:[%s5764_s8] sm:$0xff]  }
 0x678   : > { %v3083_v54 = vpop.xlane.xlu0 %3082  ;;  %4643 = vmatpush3.bf16.msra.mxu0 %v4770_v51 }
 0x679   : > { %v5308_v55 = vsub.f32 %v3076_v46, %v3085_v53  ;;  %v3086_v56 = vmul.f32 0.03125, %v3083_v54  ;;  %4644 = vmatprep.subr.bf16.mxu0 %v4853_v10  ;;  %v1522_v54 = vcombine.high %v4986_v20, %v4853_v10 }
 0x67b   : > { %v5310_v29 = vsub.f32 %v3077_v32, %v3086_v56  ;;  %v3089_v57 = vmul.f32 %v5308_v55, %v5308_v55 }
 0x67c   : > { %v1517_v58 = vpop.permute.xlu0 %1516  ;;  %4645 = vmatpush3.bf16.msra.mxu0 %v4771_v22 }
 0x67d   : > { %v3091_v23 = vsel %vm524_vm0, %v3089_v57, 0.0  ;;  %v3090_v60 = vmul.f32 %v5310_v29, %v5310_v29  ;;  %4662 = vmatprep.subr.bf16.mxu0 %v4853_v10  ;;  %v1537_v53 = vcombine.high %v1517_v58, %v4853_v10  ;;  %v1536_v57 = vrot.slane %v1522_v54, %v5011_v43 }
 0x67e   : > { %3092 = vadd.xlane.f32.xlu1 %v3091_v23  ;;  %v1544_v23 = vrot.slane %v1517_v58, %v5011_v43  ;;  %v3107_v54 = vsub.s32 4, %v4971_v12 }
 0x67f   : > { %v3094_v62 = vsel %vm524_vm0, %v3090_v60, 0.0  ;;  %v1551_v56 = vrot.slane %v1537_v53, %v5011_v43  ;;  %v1529_v60 = vrot.slane %v4986_v20, %v5011_v43  ;;  %v1588_v53 = vcombine.high %v4990_v28, %v4853_v10 }
 0x680   : > { %v991_v24 = vpop.permute.xlu0 %990 }
 0x681   : > { %v1075_v0 = vcombine.high %v991_v24, %v4853_v10  ;;  %v1082_v1 = vrot.slane %v991_v24, %v5011_v43  ;;  %v1568_v34 = vcombine.low %v1536_v57, %v1551_v56  ;;  %v1569_v24 = vcombine.high %v1536_v57, %v1551_v56 }
 0x682   : > { %3095 = vadd.xlane.f32.xlu1 %v3094_v62  ;;  %v1552_v62 = vcombine.low %v1529_v60, %v1544_v23 }
 0x683   : > { %v1089_v3 = vrot.slane %v1075_v0, %v5011_v43  ;;  %v1090_v5 = vcombine.low %v1067_v63, %v1082_v1  ;;  %v1091_v6 = vcombine.high %v1067_v63, %v1082_v1  ;;  %v1553_v63 = vcombine.high %v1529_v60, %v1544_v23 }
 0x684   : > { %v1576_v0 = vrot.slane %v1568_v34, %v5018_v50  ;;  %v1583_v1 = vrot.slane %v1569_v24, %v5018_v50 }
 0x685   : > { %v1098_v7 = vrot.slane %v1090_v5, %v5018_v50  ;;  %v1105_v8 = vrot.slane %v1091_v6, %v5018_v50  ;;  %v1106_v9 = vcombine.low %v1074_v2, %v1089_v3  ;;  %v1107_v16 = vcombine.high %v1074_v2, %v1089_v3 }
 0x686   : > { %v1560_v2 = vrot.slane %v1552_v62, %v5018_v50  ;;  %v1567_v3 = vrot.slane %v1553_v63, %v5018_v50  ;;  %v1586_v5 = vcombine.high %v1576_v0, %v4853_v10  ;;  %v1587_v6 = vcombine.high %v1583_v1, %v4853_v10 }
 0x687   : > { %v1114_v17 = vrot.slane %v1106_v9, %v5018_v50  ;;  %v1121_v18 = vrot.slane %v1107_v16, %v5018_v50  ;;  %v1122_v19 = vcombine.high %v1098_v7, %v4853_v10  ;;  %v1123_v21 = vcombine.high %v1105_v8, %v4853_v10 }
 0x688   : > { %v1584_v58 = vcombine.high %v1560_v2, %v4853_v10  ;;  %v1585_v20 = vcombine.high %v1567_v3, %v4853_v10  ;;  %v4420_v9 = vpack.c.bf16 %v1576_v0, %v1560_v2  ;;  %v4421_v16 = vpack.c.bf16 %v1583_v1, %v1567_v3  ;;  %v5395_v3 = vld [vmem:[%s5766_s10] sm:$0xff] }
 0x689   : > { %v1124_v26 = vcombine.high %v1114_v17, %v4853_v10  ;;  %v1125_v27 = vcombine.high %v1121_v18, %v4853_v10  ;;  %v4408_v33 = vpack.c.bf16 %v1114_v17, %v1098_v7  ;;  %v4409_v41 = vpack.c.bf16 %v1121_v18, %v1105_v8 }
 0x68a   : > { %v4422_v7 = vpack.c.bf16 %v1586_v5, %v1584_v58  ;;  %v4423_v8 = vpack.c.bf16 %v1587_v6, %v1585_v20  ;;  %v1602_v2 = vrot.slane %v1588_v53, %v5011_v43  ;;  %v5398_v5 = vrot.slane %v5395_v3, %v3107_v54 }
 0x68b   : > { %v1197_v40 = vrot.slane %v4408_v33, %v5011_v43  ;;  %v1205_v30 = vrot.slane %v4409_v41, %v5011_v43  ;;  %v4410_v37 = vpack.c.bf16 %v1124_v26, %v1122_v19  ;;  %v4411_v42 = vpack.c.bf16 %v1125_v27, %v1123_v21 }
 0x68c   : > { %v1701_v19 = vrot.slane %v4422_v7, %v5011_v43  ;;  %v1709_v21 = vrot.slane %v4423_v8, %v5011_v43  ;;  %v1677_v27 = vrot.slane %v4420_v9, %v5011_v43  ;;  %v1685_v33 = vrot.slane %v4421_v16, %v5011_v43 }
 0x68d   : > { %v1206_v44 = vcombine.low %v1197_v40, %v1205_v30  ;;  %v1221_v45 = vrot.slane %v4410_v37, %v5011_v43  ;;  %v1229_v46 = vrot.slane %v4411_v42, %v5011_v43  ;;  %v994_v30 = vcombine.high %v582_v48, %v4853_v10 }
 0x68e   : > { %v1710_v42 = vcombine.low %v1701_v19, %v1709_v21  ;;  %v3113_v8 = vsub.s32 5, %v4971_v12 }
 0x68f   : > { %v1230_v47 = vcombine.low %v1221_v45, %v1229_v46  ;;  %v5338_v32 = vrot.slane %v1206_v44, %v5018_v50  ;;  %v1686_v44 = vcombine.low %v1677_v27, %v1685_v33  ;;  %v1001_v46 = vrot.slane %v582_v48, %v5011_v43 }
 0x690   : > { %v1008_v22 = vrot.slane %v994_v30, %v5011_v43  ;;  %v1717_v60 = vrot.slane %v1710_v42, %v5018_v50  ;;  %v5416_v53 = vrot.slane %v5395_v3, %v3113_v8 }
 0x691   : > { %v5341_v49 = vrot.slane %v1230_v47, %v5018_v50  ;;  %v1693_v24 = vrot.slane %v1686_v44, %v5018_v50 }
 0x693   : > { %988 = vrot.lane.b32.xlu1 %v582_v48, %s4854_s24  ;;  %v1246_v14 = vpack.i.b16 %v5341_v49, %v5338_v32  ;;  %v1595_v48 = vrot.slane %v4990_v28, %v5011_v43  ;;  %v1768_v9 = vpack.i.b16 %v1717_v60, %v1693_v24  ;;  %v1769_v30 = vshrl.u32 %v1693_v24, 16 }
 0x697   : > { %1518 = vrot.lane.b32.xlu1 %v4990_v28, %s4854_s24 }
 0x70b   : > { %v3093_v17 = vpop.xlane.xlu1 %3092 }
 0x70c   : > { %v3097_v18 = vmul.f32 0.03125, %v3093_v17 }
 0x70e   : > { %v3099_v26 = vadd.f32 1e-12, %v3097_v18 }
 0x70f   : > { %v3096_v41 = vpop.xlane.xlu1 %3095 }
 0x710   : > { %4800 = vrsqrt.f32 %v3099_v26  ;;  %v3098_v40 = vmul.f32 0.03125, %v3096_v41 }
 0x712   : > { %v3100_v37 = vadd.f32 1e-12, %v3098_v40 }
 0x713   : > { %v989_v45 = vpop.permute.xlu1 %988 }
 0x714   : > { %4802 = vrsqrt.f32 %v3100_v37  ;;  %v1009_v47 = vcombine.high %v989_v45, %v4853_v10  ;;  %v1016_v51 = vrot.slane %v989_v45, %v5011_v43  ;;  %v1770_v37 = vshrl.u32 %v1717_v60, 16 }
 0x716   : > { %v1023_v56 = vrot.slane %v1009_v47, %v5011_v43  ;;  %v1024_v57 = vcombine.low %v1001_v46, %v1016_v51  ;;  %v1025_v23 = vcombine.high %v1001_v46, %v1016_v51  ;;  %v2306_v47 = vrot.slane %v1768_v9, 4 }
 0x717   : > { %v1519_v34 = vpop.permute.xlu1 %1518 }
 0x718   : > { %v1032_v62 = vrot.slane %v1024_v57, %v5018_v50  ;;  %v1039_v63 = vrot.slane %v1025_v23, %v5018_v50  ;;  %v1040_v0 = vcombine.low %v1008_v22, %v1023_v56  ;;  %v1041_v1 = vcombine.high %v1008_v22, %v1023_v56 }
 0x719   : > { %v1603_v28 = vcombine.high %v1519_v34, %v4853_v10  ;;  %v1610_v6 = vrot.slane %v1519_v34, %v5011_v43 }
 0x71a   : > { %v4801_v58 = vpop.eup %4800  ;;  %v1048_v20 = vrot.slane %v1040_v0, %v5018_v50  ;;  %v1055_v7 = vrot.slane %v1041_v1, %v5018_v50  ;;  %v1056_v16 = vcombine.high %v1032_v62, %v4853_v10  ;;  %v1057_v26 = vcombine.high %v1039_v63, %v4853_v10 }
 0x71b   : > { %v1617_v17 = vrot.slane %v1603_v28, %v5011_v43  ;;  %v1618_v18 = vcombine.low %v1595_v48, %v1610_v6  ;;  %v1619_v19 = vcombine.high %v1595_v48, %v1610_v6  ;;  %v3103_v21 = vmul.f32 %v4801_v58, %v5308_v55 }
 0x71c   : > { %v1058_v27 = vcombine.high %v1048_v20, %v4853_v10  ;;  %v1059_v33 = vcombine.high %v1055_v7, %v4853_v10  ;;  %v4404_v56 = vpack.c.bf16 %v1048_v20, %v1032_v62  ;;  %v4405_v57 = vpack.c.bf16 %v1055_v7, %v1039_v63 }
 0x71d   : > { %v1626_v41 = vrot.slane %v1618_v18, %v5018_v50  ;;  %v1634_v40 = vcombine.low %v1602_v2, %v1617_v17  ;;  %v1633_v46 = vrot.slane %v1619_v19, %v5018_v50  ;;  %v1635_v55 = vcombine.high %v1602_v2, %v1617_v17 }
 0x71e   : > { %v4803_v42 = vpop.eup %4802  ;;  %v4406_v44 = vpack.c.bf16 %v1058_v27, %v1056_v16  ;;  %v4407_v45 = vpack.c.bf16 %v1059_v33, %v1057_v26  ;;  %v3109_v54 = vmul.f32 %v5398_v5, %v3103_v21  ;;  %v1771_v2 = vpack.i.b16 %v1770_v37, %v1769_v30 }
 0x71f   : > { %v3104_v51 = vmul.f32 %v4803_v42, %v5310_v29  ;;  %v1642_v22 = vrot.slane %v1634_v40, %v5018_v50  ;;  %v1650_v23 = vcombine.high %v1626_v41, %v4853_v10  ;;  %v1649_v48 = vrot.slane %v1635_v55, %v5018_v50 }
 0x720   : > { %v1173_v29 = vrot.slane %v4406_v44, %v5011_v43  ;;  %v1181_v0 = vrot.slane %v4407_v45, %v5011_v43  ;;  %v1651_v1 = vcombine.high %v1633_v46, %v4853_v10  ;;  %v1149_v58 = vrot.slane %v4404_v56, %v5011_v43 }
 0x721   : > { %v3110_v60 = vmul.f32 %v5398_v5, %v3104_v51  ;;  %v1652_v34 = vcombine.high %v1642_v22, %v4853_v10  ;;  %v4424_v24 = vpack.c.bf16 %v1642_v22, %v1626_v41  ;;  %v1653_v28 = vcombine.high %v1649_v48, %v4853_v10 }
 0x722   : > { %v4425_v63 = vpack.c.bf16 %v1649_v48, %v1633_v46  ;;  %v1157_v20 = vrot.slane %v4405_v57, %v5011_v43  ;;  %v5431_v7 = vadd.f32 %v5416_v53, %v3109_v54  ;;  %v2313_v18 = vsel %vm2310_vm4, %v5086_v52, %v2306_v47 }
 0x723   : > { %v1725_v62 = vrot.slane %v4424_v24, %v5011_v43  ;;  %v4426_v6 = vpack.c.bf16 %v1652_v34, %v1650_v23  ;;  %v5434_v8 = vadd.f32 %v5416_v53, %v3110_v60  ;;  %v4427_v17 = vpack.c.bf16 %v1653_v28, %v1651_v1  ;;  %v4774_v1 = vld [vmem:[%s5765_s9 + $0x10] sm:$0xff]  }
 0x724   : > { %v1733_v9 = vrot.slane %v4425_v63, %v5011_v43  ;;  %v1182_v19 = vcombine.low %v1173_v29, %v1181_v0  ;;  %v1158_v33 = vcombine.low %v1149_v58, %v1157_v20  ;;  %v3317_v41 = vsel %vm2343_vm2, %v2313_v18, 0  ;;  %v4773_v0 = vld [vmem:[%s5765_s9 + $0x8] sm:$0xff]  }
 0x725   : > { %v1749_v16 = vrot.slane %v4426_v6, %v5011_v43  ;;  %v3117_v21 = vpack.c.bf16 %v5434_v8, %v5431_v7  ;;  %v1757_v27 = vrot.slane %v4427_v17, %v5011_v43  ;;  %v2307_v30 = vrot.slane %v1771_v2, 4  ;;  %v4775_v2 = vld [vmem:[%s5765_s9 + $0x18] sm:$0xff]  }
 0x726   : > { %v1734_v26 = vcombine.low %v1725_v62, %v1733_v9  ;;  %v1189_v37 = vrot.slane %v1182_v19, %v5018_v50  ;;  %v1165_v44 = vrot.slane %v1158_v33, %v5018_v50  ;;  %v1248_v34 = vshrl.u32 %v5341_v49, 16  ;;  %v4473_v19 = vld [vmem:[%s5505_s29] ss:$0 sm:$0xff] }
 0x727   : > { %4647 = vmatmul.mubr.msk.bf16.vlgmr.msra.gmra.mrb[24].mxu0 %vm524_vm0, %v3117_v21  ;;  %v1758_v40 = vcombine.low %v1749_v16, %v1757_v27  ;;  %v2316_v45 = vsel %vm2310_vm4, %v5093_v59, %v2307_v30  ;;  %v1247_v24 = vshrl.u32 %v5338_v32, 16  ;;  %v3124_v28 = vsub.s32 6, %v4971_v12 }
 0x728   : > { %4663 = vmatpush3.bf16.xpose.msra.mxu0 %v3317_v41  ;;  %4664 = vmatprep.mubr.msk.bf16.mxu0 %vm4855_vm1, %v4853_v10  ;;  %v5448_v52 = vrot.slane %v1734_v26, %v5018_v50  ;;  %v1240_v55 = vpack.i.b16 %v1189_v37, %v1165_v44  ;;  %v3362_v54 = vsel %vm2343_vm2, %v2316_v45, 0  ;;  %v1242_v59 = vshrl.u32 %v1189_v37, 16 }
 0x729   : > { %4668 = vmatprep.subr.bf16.mxu0 %v4853_v10  ;;  %v5453_v42 = vrot.slane %v1758_v40, %v5018_v50  ;;  %v1241_v57 = vshrl.u32 %v1165_v44, 16  ;;  %v1249_v29 = vpack.i.b16 %v1248_v34, %v1247_v24  ;;  %v5497_v62 = vrot.slane %v5395_v3, %v3124_v28  ;;  %v4474_v34 = vld [vmem:[%s5505_s29 + $0x1] ss:$0 sm:$0xff] }
 0x72a   : > { %v1775_v46 = vshrl.u32 %v5448_v52, 16 }
 0x72b   : > { %v1776_v47 = vshrl.u32 %v5453_v42, 16  ;;  %v1774_v51 = vpack.i.b16 %v5453_v42, %v5448_v52  ;;  %v1243_v60 = vpack.i.b16 %v1242_v59, %v1241_v57 }
 0x72d   : > { %v1777_v22 = vpack.i.b16 %v1776_v47, %v1775_v46  ;;  %v2308_v46 = vrot.slane %v1774_v51, 4 }
 0x72f   : > { %4665 = vmatmul.mubr.msk.bf16.vlgmr.msra.gmra.mrb[28].mxu0 %vm2343_vm2, %v1240_v55  ;;  %v2309_v56 = vrot.slane %v1777_v22, 4 }
 0x730   : > { %4669 = vmatpush3.bf16.xpose.msra.mxu0 %v3362_v54  ;;  %4670 = vmatprep.mubr.msk.bf16.mxu0 %vm4855_vm1, %v4853_v10 }
 0x731   : > { %4680 = vmatprep.subr.bf16.mxu0 %v4853_v10  ;;  %v2322_v23 = vsel %vm2310_vm4, %v5106_v11, %v2309_v56  ;;  %v4772_v11 = vld [vmem:[%s5765_s9] sm:$0xff]  }
 0x732   : > { %v3452_v48 = vsel %vm2343_vm2, %v2322_v23, 0  ;;  %4651 = vmatpush3.bf16.msra.mxu1 %v4772_v11 }
 0x733   : > { %4652 = vmatprep.subr.bf16.mxu1 %v4853_v10 }
 0x736   : > { %4653 = vmatpush3.bf16.msra.mxu1 %v4773_v0 }
 0x737   : > { %4671 = vmatmul.mubr.msk.bf16.vlgmr.msra.gmra.mrb[32].mxu0 %vm2343_vm2, %v1243_v60  ;;  %4654 = vmatprep.subr.bf16.mxu1 %v4853_v10  ;;  %v2319_v60 = vsel %vm2310_vm4, %v5103_v4, %v2308_v46 }
 0x738   : > { %4681 = vmatpush3.bf16.xpose.msra.mxu0 %v3452_v48  ;;  %4682 = vmatprep.mubr.msk.bf16.mxu0 %vm4855_vm1, %v4853_v10  ;;  %v3407_v51 = vsel %vm2343_vm2, %v2319_v60, 0 }
 0x739   : > { %4692 = vmatprep.subr.bf16.mxu0 %v4853_v10 }
 0x73a   : > { %4655 = vmatpush3.bf16.msra.mxu1 %v4774_v1 }
 0x73b   : > { %4656 = vmatprep.subr.bf16.mxu1 %v4853_v10 }
 0x73e   : > { %4657 = vmatpush3.bf16.msra.mxu1 %v4775_v2 }
 0x73f   : > { %4683 = vmatmul.mubr.msk.bf16.vlgmr.msra.gmra.mrb[36].mxu0 %vm2343_vm2, %v1249_v29  ;;  %4674 = vmatprep.subr.bf16.mxu1 %v4853_v10 }
 0x740   : > { %4694 = vmatprep.mubr.msk.bf16.mxu0 %vm4855_vm1, %v4853_v10 }
 0x7fa   : > { %v3175_v63 = vpop.f32.mrb[24].mxu0 }
 0x7fb   : > { %v3176_v6 = vadd.f32 %v3175_v63, %v5497_v62  ;;  %v4648_v58 = vpop.f32.mrb[25].mxu0 }
 0x7fc   : > { %v3178_v20 = vpop.f32.mrb[26].mxu0 }
 0x7fd   : > { %v3184_v9 = vmul.f32 0.70710677, %v3176_v6  ;;  %v3179_v16 = vadd.f32 %v3178_v20, %v5497_v62  ;;  %v4649_v17 = vpop.f32.mrb[27].mxu0  ;;  %v3182_v47 = vmul.f32 0.5, %v3176_v6 }
 0x7ff   : > { %4804 = verf.f32 %v3184_v9  ;;  %v3185_v18 = vmul.f32 0.70710677, %v3179_v16  ;;  %v3183_v55 = vmul.f32 0.5, %v3179_v16 }
 0x801   : > { %4806 = verf.f32 %v3185_v18 }
 0x802   : > { %v3353_v21 = vpop.f32.mrb[28].mxu0 }
 0x803   : > { %v3506_v26 = vadd.f32 %v4473_v19, %v3353_v21  ;;  %v4666_v27 = vpop.f32.mrb[29].mxu0 }
 0x804   : > { %v3356_v33 = vpop.f32.mrb[30].mxu0 }
 0x805   : > { %v4667_v41 = vpop.f32.mrb[31].mxu0  ;;  %v3510_v40 = vsel %vm2343_vm2, %v3506_v26, -inf }
 0x806   : > { %3511 = vmax.xlane.f32.xlu1 %v3510_v40 }
 0x809   : > { %v4805_v30 = vpop.eup %4804 }
 0x80a   : > { %v3188_v52 = vadd.f32 1.0, %v4805_v30  ;;  %v3398_v37 = vpop.f32.mrb[32].mxu0 }
 0x80b   : > { %v4807_v42 = vpop.eup %4806  ;;  %v3507_v44 = vadd.f32 %v4473_v19, %v3398_v37  ;;  %v4672_v45 = vpop.f32.mrb[33].mxu0 }
 0x80c   : > { %v3189_v22 = vadd.f32 1.0, %v4807_v42  ;;  %v3401_v54 = vpop.f32.mrb[34].mxu0  ;;  %v3190_v57 = vmul.f32 %v3188_v52, %v3182_v47 }
 0x80d   : > { %v4673_v56 = vpop.f32.mrb[35].mxu0  ;;  %v3513_v59 = vsel %vm2343_vm2, %v3507_v44, -inf }
 0x80e   : > { %v3191_v23 = vmul.f32 %v3189_v22, %v3183_v55  ;;  %3514 = vmax.xlane.f32.xlu0 %v3513_v59  ;;  %v2050_v22 = vcombine.high %v5133_v31, %v4853_v10  ;;  %v2057_v56 = vrot.slane %v5133_v31, %v5011_v43 }
 0x810   : > { %v3192_v48 = vpack.c.bf16 %v3191_v23, %v3190_v57  ;;  %v2064_v23 = vrot.slane %v2050_v22, %v5011_v43 }
 0x812   : > { %4659 = vmatmul.mubr.msk.bf16.vlgmr.msra.gmra.mrb[24].mxu1 %vm3229_vm5, %v3192_v48  ;;  %v3488_v24 = vpop.f32.mrb[36].mxu0 }
 0x813   : > { %4675 = vmatpush3.bf16.xpose.msra.mxu1 %v3407_v51  ;;  %v3509_v29 = vadd.f32 %v4474_v34, %v3488_v24  ;;  %v4684_v11 = vpop.f32.mrb[37].mxu0  ;;  %4676 = vmatprep.mubr.msk.bf16.mxu1 %vm4855_vm1, %v4853_v10 }
 0x814   : > { %v3491_v0 = vpop.f32.mrb[38].mxu0  ;;  %4686 = vmatprep.subr.bf16.mxu1 %v4853_v10 }
 0x815   : > { %v4685_v1 = vpop.f32.mrb[39].mxu0  ;;  %v3519_v2 = vsel %vm2343_vm2, %v3509_v29, -inf }
 0x816   : > { %3520 = vmax.xlane.f32.xlu1 %v3519_v2 }
 0x81a   : > { %4677 = vmatmul.mubr.msk.bf16.vlgmr.msra.gmra.mrb[28].mxu1 %vm2343_vm2, %v1246_v14 }
 0x81b   : > { %4688 = vmatprep.mubr.msk.bf16.mxu1 %vm4855_vm1, %v4853_v10 }
 0x893   : > { %v3512_v6 = vpop.xlane.xlu1 %3511 }
 0x894   : > { %v3522_v14 = vsub.f32 %v3506_v26, %v3512_v6 }
 0x896   : > { %v3526_v18 = vmul.f32 1.442695, %v3522_v14 }
 0x89b   : > { %v3515_v4 = vpop.xlane.xlu0 %3514 }
 0x89c   : > { %v3523_v28 = vsub.f32 %v3507_v44, %v3515_v4 }
 0x89e   : > { %v3528_v63 = vmul.f32 1.442695, %v3523_v28 }
 0x8a0   : > { %4808 = vpow2.f32 %v3528_v63 }
 0x8a3   : > { %v3521_v58 = vpop.xlane.xlu1 %3520 }
 0x8a4   : > { %v3525_v20 = vsub.f32 %v3509_v29, %v3521_v58 }
 0x8a6   : > { %v3532_v9 = vmul.f32 1.442695, %v3525_v20 }
 0x8a8   : > { %4810 = vpow2.f32 %v3532_v9 }
 0x8a9   : > { %4812 = vpow2.f32 %v3526_v18 }
 0x8aa   : > { %v5525_v16 = vpop.eup %4808 }
 0x8ab   : > { %v3537_v17 = vsel %vm2343_vm2, %v5525_v16, 0.0 }
 0x8ac   : > { %3538 = vadd.xlane.f32.xlu1 %v3537_v17 }
 0x8b2   : > { %v5529_v32 = vpop.eup %4810 }
 0x8b3   : > { %v3543_v49 = vsel %vm2343_vm2, %v5529_v32, 0.0  ;;  %v4813_v44 = vpop.eup %4812 }
 0x8b4   : > { %3544 = vadd.xlane.f32.xlu1 %v3543_v49  ;;  %v3534_v45 = vsel %vm2343_vm2, %v4813_v44, 0.0 }
 0x8e5   : > { %v5533_v19 = vpop.f32.mrb[24].mxu1 }
 0x8e6   : > { %v4660_v21 = vpop.f32.mrb[25].mxu1 }
 0x8e7   : > { %v5535_v27 = vpop.f32.mrb[26].mxu1 }
 0x8e8   : > { %v4661_v33 = vpop.f32.mrb[27].mxu1 }
 0x8ed   : > { %v3443_v41 = vpop.f32.mrb[28].mxu1 }
 0x8ee   : > { %v3508_v40 = vadd.f32 %v4474_v34, %v3443_v41  ;;  %v4678_v30 = vpop.f32.mrb[29].mxu1 }
 0x8ef   : > { %v3446_v52 = vpop.f32.mrb[30].mxu1 }
 0x8f0   : > { %v4679_v37 = vpop.f32.mrb[31].mxu1  ;;  %v3516_v42 = vsel %vm2343_vm2, %v3508_v40, -inf }
 0x8f1   : > { %3517 = vmax.xlane.f32.xlu0 %v3516_v42 }
 0x8f5   : > { %3535 = vadd.xlane.f32.xlu0 %v3534_v45 }
 0x90b   : > { %2044 = vrot.lane.b32.xlu0 %v5133_v31, %s4854_s24 }
 0x939   : > { %v3539_v1 = vpop.xlane.xlu1 %3538 }
 0x97e   : > { %v3518_v26 = vpop.xlane.xlu0 %3517 }
 0x97f   : > { %v3524_v46 = vsub.f32 %v3508_v40, %v3518_v26 }
 0x981   : > { %v3530_v47 = vmul.f32 1.442695, %v3524_v46 }
 0x982   : > { %v3536_v55 = vpop.xlane.xlu0 %3535 }
 0x983   : > { %4814 = vpow2.f32 %v3530_v47 }
 0x984   : > { %4816 = vrcp.f32 %v3536_v55 }
 0x985   : > { %4818 = vrcp.f32 %v3539_v1 }
 0x986   : > { %v2045_v54 = vpop.permute.xlu0 %2044 }
 0x987   : > { %v2065_v59 = vcombine.high %v2045_v54, %v4853_v10  ;;  %v2072_v57 = vrot.slane %v2045_v54, %v5011_v43 }
 0x989   : > { %v2079_v60 = vrot.slane %v2065_v59, %v5011_v43  ;;  %v2080_v48 = vcombine.low %v2057_v56, %v2072_v57  ;;  %v2081_v34 = vcombine.high %v2057_v56, %v2072_v57 }
 0x98b   : > { %v2088_v51 = vrot.slane %v2080_v48, %v5018_v50  ;;  %v2095_v24 = vrot.slane %v2081_v34, %v5018_v50  ;;  %v2096_v29 = vcombine.low %v2064_v23, %v2079_v60  ;;  %v2097_v11 = vcombine.high %v2064_v23, %v2079_v60 }
 0x98c   : > { %v2123_v48 = vrot.slane %v5138_v35, %v5011_v43 }
 0x98d   : > { %v5551_v0 = vpop.eup %4814  ;;  %v2104_v31 = vrot.slane %v2096_v29, %v5018_v50  ;;  %v2111_v2 = vrot.slane %v2097_v11, %v5018_v50  ;;  %v2112_v4 = vcombine.high %v2088_v51, %v4853_v10  ;;  %v2113_v63 = vcombine.high %v2095_v24, %v4853_v10 }
 0x98e   : > { %v3540_v28 = vsel %vm2343_vm2, %v5551_v0, 0.0  ;;  %v4817_v37 = vpop.eup %4816 }
 0x98f   : > { %v2114_v6 = vcombine.high %v2104_v31, %v4853_v10  ;;  %v2115_v58 = vcombine.high %v2111_v2, %v4853_v10  ;;  %v4436_v20 = vpack.c.bf16 %v2104_v31, %v2088_v51  ;;  %3541 = vadd.xlane.f32.xlu1 %v3540_v28  ;;  %v4437_v9 = vpack.c.bf16 %v2111_v2, %v2095_v24  ;;  %v4819_v46 = vpop.eup %4818 }
 0x990   : > { %v3550_v47 = vmul.f32 %v4817_v37, %v4813_v44  ;;  %v3551_v54 = vmul.f32 %v4819_v46, %v5525_v16  ;;  %v2116_v16 = vcombine.high %v5138_v35, %v4853_v10 }
 0x991   : > { %v2205_v17 = vrot.slane %v4436_v20, %v5011_v43  ;;  %v4438_v49 = vpack.c.bf16 %v2114_v6, %v2112_v4  ;;  %v4439_v14 = vpack.c.bf16 %v2115_v58, %v2113_v63  ;;  %v2213_v18 = vrot.slane %v4437_v9, %v5011_v43 }
 0x992   : > { %v3554_v23 = vpack.c.bf16 %v3550_v47, %v3550_v47  ;;  %v3555_v44 = vpack.c.bf16 %v3551_v54, %v3551_v54  ;;  %v2130_v24 = vrot.slane %v2116_v16, %v5011_v43 }
 0x993   : > { %v2229_v21 = vrot.slane %v4438_v49, %v5011_v43  ;;  %v2237_v33 = vrot.slane %v4439_v14, %v5011_v43  ;;  %v2214_v41 = vcombine.low %v2205_v17, %v2213_v18 }
 0x995   : > { %v2238_v40 = vcombine.low %v2229_v21, %v2237_v33  ;;  %v2221_v30 = vrot.slane %v2214_v41, %v5018_v50 }
 0x997   : > { %v2245_v52 = vrot.slane %v2238_v40, %v5018_v50  ;;  %v2297_v45 = vshrl.u32 %v2221_v30, 16 }
 0x999   : > { %v2296_v42 = vpack.i.b16 %v2245_v52, %v2221_v30  ;;  %v2298_v26 = vshrl.u32 %v2245_v52, 16 }
 0x99b   : > { %v2323_v55 = vrot.slane %v2296_v42, 4  ;;  %v2299_v22 = vpack.i.b16 %v2298_v26, %v2297_v45 }
 0x99d   : > { %v2329_v56 = vsel %vm2310_vm4, %v5204_v36, %v2323_v55  ;;  %v2324_v59 = vrot.slane %v2299_v22, 4  ;;  %v3545_v36 = vpop.xlane.xlu1 %3544 }
 0x99e   : > { %4687 = vmatpush3.bf16.msra.mxu1 %v2329_v56 }
 0x99f   : > { %v2333_v57 = vsel %vm2310_vm4, %v5212_v61, %v2324_v59  ;;  %4698 = vmatprep.subr.bf16.mxu1 %v4853_v10 }
 0x9a0   : > { %2046 = vrot.lane.b32.xlu1 %v5138_v35, %s4854_s24  ;;  %4693 = vmatpush3.bf16.msra.mxu0 %v2333_v57 }
 0x9a1   : > { %4689 = vmatmul.mubr.msk.bf16.vlgmr.msra.gmra.mrb[32].mxu1 %vm2343_vm2, %v3554_v23  ;;  %4704 = vmatprep.subr.bf16.mxu0 %v4853_v10 }
 0x9a2   : > { %4700 = vmatprep.mubr.msk.bf16.mxu1 %vm4855_vm1, %v4853_v10 }
 0x9a3   : > { %4695 = vmatmul.mubr.msk.bf16.vlgmr.msra.gmra.mrb[40].mxu0 %vm2343_vm2, %v3555_v44 }
 0x9a4   : > { %4706 = vmatprep.mubr.msk.bf16.mxu0 %vm4855_vm1, %v4853_v10 }
 0xa1c   : > { %v3542_v61 = vpop.xlane.xlu1 %3541 }
 0xa1d   : > { %4820 = vrcp.f32 %v3542_v61 }
 0xa1e   : > { %4822 = vrcp.f32 %v3545_v36 }
 0xa20   : > { %v2047_v60 = vpop.permute.xlu1 %2046 }
 0xa21   : > { %v2131_v34 = vcombine.high %v2047_v60, %v4853_v10  ;;  %v2138_v51 = vrot.slane %v2047_v60, %v5011_v43 }
 0xa23   : > { %v2145_v29 = vrot.slane %v2131_v34, %v5011_v43  ;;  %v2146_v11 = vcombine.low %v2123_v48, %v2138_v51  ;;  %v2147_v1 = vcombine.high %v2123_v48, %v2138_v51 }
 0xa25   : > { %v2154_v31 = vrot.slane %v2146_v11, %v5018_v50  ;;  %v2161_v2 = vrot.slane %v2147_v1, %v5018_v50  ;;  %v2162_v4 = vcombine.low %v2130_v24, %v2145_v29  ;;  %v2163_v28 = vcombine.high %v2130_v24, %v2145_v29 }
 0xa27   : > { %v2170_v63 = vrot.slane %v2162_v4, %v5018_v50  ;;  %v2177_v35 = vrot.slane %v2163_v28, %v5018_v50  ;;  %v2178_v6 = vcombine.high %v2154_v31, %v4853_v10  ;;  %v2179_v58 = vcombine.high %v2161_v2, %v4853_v10  ;;  %v4821_v45 = vpop.eup %4820 }
 0xa28   : > { %v4823_v55 = vpop.eup %4822  ;;  %v3552_v22 = vmul.f32 %v4821_v45, %v5551_v0 }
 0xa29   : > { %v2180_v20 = vcombine.high %v2170_v63, %v4853_v10  ;;  %v2181_v9 = vcombine.high %v2177_v35, %v4853_v10  ;;  %v4440_v17 = vpack.c.bf16 %v2170_v63, %v2154_v31  ;;  %v4441_v49 = vpack.c.bf16 %v2177_v35, %v2161_v2 }
 0xa2a   : > { %v3553_v59 = vmul.f32 %v4823_v55, %v5529_v32  ;;  %v3556_v36 = vpack.c.bf16 %v3552_v22, %v3552_v22 }
 0xa2b   : > { %v2253_v14 = vrot.slane %v4440_v17, %v5011_v43  ;;  %v2261_v18 = vrot.slane %v4441_v49, %v5011_v43  ;;  %v4442_v21 = vpack.c.bf16 %v2180_v20, %v2178_v6  ;;  %v4443_v33 = vpack.c.bf16 %v2181_v9, %v2179_v58 }
 0xa2c   : > { %v3557_v61 = vpack.c.bf16 %v3553_v59, %v3553_v59 }
 0xa2d   : > { %v2262_v41 = vcombine.low %v2253_v14, %v2261_v18  ;;  %v2277_v40 = vrot.slane %v4442_v21, %v5011_v43  ;;  %v2285_v30 = vrot.slane %v4443_v33, %v5011_v43 }
 0xa2f   : > { %v2269_v52 = vrot.slane %v2262_v41, %v5018_v50  ;;  %v2286_v37 = vcombine.low %v2277_v40, %v2285_v30 }
 0xa31   : > { %v2293_v42 = vrot.slane %v2286_v37, %v5018_v50  ;;  %v2303_v46 = vshrl.u32 %v2269_v52, 16 }
 0xa33   : > { %v2302_v26 = vpack.i.b16 %v2293_v42, %v2269_v52  ;;  %v2304_v47 = vshrl.u32 %v2293_v42, 16 }
 0xa35   : > { %v2325_v54 = vrot.slane %v2302_v26, 4  ;;  %v2305_v56 = vpack.i.b16 %v2304_v47, %v2303_v46  ;;  %v4776_v26 = vld [vmem:[%s5763_s7] sm:$0xff]  }
 0xa37   : > { %v2337_v57 = vsel %vm2310_vm4, %v5231_v25, %v2325_v54  ;;  %v2326_v23 = vrot.slane %v2305_v56, 4 }
 0xa38   : > { %4699 = vmatpush3.bf16.msra.mxu1 %v2337_v57 }
 0xa39   : > { %v2341_v44 = vsel %vm2310_vm4, %v5236_v39, %v2326_v23  ;;  %4710 = vmatprep.subr.bf16.mxu1 %v4853_v10 }
 0xa3a   : > { %4705 = vmatpush3.bf16.msra.mxu0 %v2341_v44 }
 0xa3b   : > { %4701 = vmatmul.mubr.msk.bf16.vlgmr.msra.gmra.mrb[36].mxu1 %vm2343_vm2, %v3556_v36  ;;  %4718 = vmatprep.subr.bf16.mxu0 %v4853_v10 }
 0xa3c   : > { %4714 = vmatprep.mubr.msk.bf16.mxu1 %vm4855_vm1, %v4853_v10  ;;  %4711 = vmatpush3.bf16.msra.mxu1 %v4776_v26 }
 0xa3d   : > { %4707 = vmatmul.mubr.msk.bf16.vlgmr.msra.gmra.mrb[44].mxu0 %vm2343_vm2, %v3557_v61  ;;  %4712 = vmatprep.subr.bf16.mxu1 %v4853_v10 }
 0xa3e   : > { %4722 = vmatprep.mubr.msk.bf16.mxu0 %vm4855_vm1, %v4853_v10 }
 0xa74   : > { %v3595_v25 = vpop.f32.mrb[32].mxu1 }
 0xa75   : > { %v3730_v39 = vcombine.high %v3595_v25, %v4853_v10  ;;  %v4690_v32 = vpop.f32.mrb[33].mxu1  ;;  %v3737_v60 = vrot.slane %v3595_v25, %v5011_v43 }
 0xa76   : > { %v3598_v0 = vpop.f32.mrb[34].mxu1  ;;  %v3638_v16 = vpop.f32.mrb[40].mxu0 }
 0xa77   : > { %v3745_v48 = vcombine.high %v3638_v16, %v4853_v10  ;;  %v3752_v34 = vrot.slane %v3638_v16, %v5011_v43  ;;  %v4691_v51 = vpop.f32.mrb[35].mxu1  ;;  %v4696_v24 = vpop.f32.mrb[41].mxu0  ;;  %v3744_v11 = vrot.slane %v3730_v39, %v5011_v43 }
 0xa78   : > { %v3641_v29 = vpop.f32.mrb[42].mxu0 }
 0xa79   : > { %v3759_v1 = vrot.slane %v3745_v48, %v5011_v43  ;;  %v3760_v31 = vcombine.low %v3737_v60, %v3752_v34  ;;  %v3761_v2 = vcombine.high %v3737_v60, %v3752_v34  ;;  %v4697_v4 = vpop.f32.mrb[43].mxu0 }
 0xa7b   : > { %v3768_v28 = vrot.slane %v3760_v31, %v5018_v50  ;;  %v3775_v63 = vrot.slane %v3761_v2, %v5018_v50  ;;  %v3776_v35 = vcombine.low %v3744_v11, %v3759_v1  ;;  %v3777_v6 = vcombine.high %v3744_v11, %v3759_v1 }
 0xa7d   : > { %v3784_v58 = vrot.slane %v3776_v35, %v5018_v50  ;;  %v3791_v20 = vrot.slane %v3777_v6, %v5018_v50  ;;  %v3862_v9 = vcombine.low %v3768_v28, %v3775_v63  ;;  %v4479_v17 = vcombine.high %v3768_v28, %v3775_v63  ;;  %v4777_v28 = vld [vmem:[%s5763_s7 + $0x8] sm:$0xff]  }
 0xa7e   : > { %4713 = vmatpush3.bf16.msra.mxu1 %v4777_v28  ;;  %v4779_v28 = vld [vmem:[%s5764_s8 + $0x8] sm:$0xff]  }
 0xa7f   : > { %v3869_v49 = vrot.slane %v3862_v9, %v5011_v43  ;;  %v3877_v14 = vrot.slane %v4479_v17, %v5011_v43  ;;  %v3878_v18 = vcombine.low %v3784_v58, %v3791_v20  ;;  %v4480_v21 = vcombine.high %v3784_v58, %v3791_v20  ;;  %4726 = vmatprep.subr.bf16.mxu1 %v4853_v10 }
 0xa81   : > { %v3885_v33 = vrot.slane %v3878_v18, %v5011_v43  ;;  %v3893_v41 = vrot.slane %v4480_v21, %v5011_v43  ;;  %v3894_v40 = vcombine.low %v3869_v49, %v3877_v14 }
 0xa83   : > { %v3902_v30 = vcombine.low %v3885_v33, %v3893_v41  ;;  %v3901_v52 = vrot.slane %v3894_v40, %v5018_v50 }
 0xa85   : > { %v3909_v37 = vrot.slane %v3902_v30, %v5018_v50 }
 0xa87   : > { %v3910_v42 = vcombine.low %v3901_v52, %v3909_v37  ;;  %v3911_v45 = vcombine.high %v3901_v52, %v3909_v37 }
 0xb0e   : > { %v3681_v46 = vpop.f32.mrb[36].mxu1 }
 0xb0f   : > { %v3796_v47 = vcombine.high %v3681_v46, %v4853_v10  ;;  %v4702_v55 = vpop.f32.mrb[37].mxu1  ;;  %v3803_v56 = vrot.slane %v3681_v46, %v5011_v43 }
 0xb10   : > { %v3684_v22 = vpop.f32.mrb[38].mxu1  ;;  %v3724_v54 = vpop.f32.mrb[44].mxu0  ;;  %v4843_v55 = vld [vmem:[%s4961_s20] sm:$0xff] }
 0xb11   : > { %v3811_v59 = vcombine.high %v3724_v54, %v4853_v10  ;;  %v3818_v57 = vrot.slane %v3724_v54, %v5011_v43  ;;  %v4703_v23 = vpop.f32.mrb[39].mxu1  ;;  %v4708_v44 = vpop.f32.mrb[45].mxu0  ;;  %v3810_v61 = vrot.slane %v3796_v47, %v5011_v43 }
 0xb12   : > { %v3727_v36 = vpop.f32.mrb[46].mxu0 }
 0xb13   : > { %v3825_v25 = vrot.slane %v3811_v59, %v5011_v43  ;;  %v3826_v39 = vcombine.low %v3803_v56, %v3818_v57  ;;  %v3827_v32 = vcombine.high %v3803_v56, %v3818_v57  ;;  %v4709_v0 = vpop.f32.mrb[47].mxu0  ;;  %v4844_v56 = vld [vmem:[%s4961_s20 + $0x8] sm:$0xff] }
 0xb15   : > { %v3834_v16 = vrot.slane %v3826_v39, %v5018_v50  ;;  %v3841_v60 = vrot.slane %v3827_v32, %v5018_v50  ;;  %v3842_v48 = vcombine.low %v3810_v61, %v3825_v25  ;;  %v3843_v34 = vcombine.high %v3810_v61, %v3825_v25 }
 0xb17   : > { %v3850_v51 = vrot.slane %v3842_v48, %v5018_v50  ;;  %v3857_v24 = vrot.slane %v3843_v34, %v5018_v50  ;;  %v3912_v29 = vcombine.low %v3834_v16, %v3841_v60  ;;  %v4481_v11 = vcombine.high %v3834_v16, %v3841_v60 }
 0xb19   : > { %v3919_v1 = vrot.slane %v3912_v29, %v5011_v43  ;;  %v3927_v31 = vrot.slane %v4481_v11, %v5011_v43  ;;  %v3928_v2 = vcombine.low %v3850_v51, %v3857_v24  ;;  %v4482_v4 = vcombine.high %v3850_v51, %v3857_v24 }
 0xb1b   : > { %v3935_v63 = vrot.slane %v3928_v2, %v5011_v43  ;;  %v3943_v35 = vrot.slane %v4482_v4, %v5011_v43  ;;  %v3944_v6 = vcombine.low %v3919_v1, %v3927_v31  ;;  %v4778_v4 = vld [vmem:[%s5764_s8] sm:$0xff]  }
 0xb1c   : > { %4719 = vmatpush3.bf16.msra.mxu0 %v4778_v4 }
 0xb1d   : > { %v3952_v58 = vcombine.low %v3935_v63, %v3943_v35  ;;  %v3951_v20 = vrot.slane %v3944_v6, %v5018_v50  ;;  %4720 = vmatprep.subr.bf16.mxu0 %v4853_v10 }
 0xb1f   : > { %v3959_v9 = vrot.slane %v3952_v58, %v5018_v50  ;;  %v3203_v50 = vsub.s32 7, %v4971_v12 }
 0xb20   : > { %4721 = vmatpush3.bf16.msra.mxu0 %v4779_v28 }
 0xb21   : > { %v3961_v17 = vcombine.high %v3951_v20, %v3959_v9  ;;  %v3960_v49 = vcombine.low %v3951_v20, %v3959_v9  ;;  %v5666_v30 = vrot.slane %v5395_v3, %v3203_v50 }
 0xb23   : > { %v4757_v14 = vpack.i.bf16 %v3961_v17, %v3911_v45  ;;  %v3271_v3 = vadd.f32 %v5535_v27, %v5666_v30 }
 0xb25   : > { %4758 = vrot.lane.b32.xlu0 %v4757_v14, %s4858_s23 }
 0xb97   : > { %v4759_v18 = vpop.permute.xlu0 %4758 }
 0xb98   : > { %v4761_v21 = vunpack.i.h.bf16 %v4759_v18  ;;  %v4760_v33 = vunpack.i.l.bf16 %v4759_v18 }
 0xb9a   : > { %v3970_v43 = vsel %vm2343_vm2, %v3910_v42, %v4760_v33  ;;  %v3971_v41 = vsel %vm2343_vm2, %v3960_v49, %v4761_v21  ;;  %v3268_v42 = vadd.f32 %v5533_v19, %v5666_v30 }
 0xb9b   : > { %v3972_v40 = vpack.c.bf16 %v3971_v41, %v3970_v43 }
 0xb9c   : > { %v3274_v23 = vadd.f32 %v3268_v42, %v5431_v7 }
 0xb9d   : > { %4715 = vmatmul.mubr.msk.bf16.vlgmr.msra.gmra.mrb[40].mxu1 %vm524_vm0, %v3972_v40  ;;  %v493_v40 = vld [vmem:[%s5766_s10 + $0x8] sm:$0x3] }
 0xb9e   : > { %4734 = vmatprep.mubr.msk.bf16.mxu1 %vm4855_vm1, %v4853_v10  ;;  %v3276_v19 = vsel %vm524_vm0, %v3274_v23, 0.0  ;;  %v5703_v42 = vrot.slane %v493_v40, %v590_v13 }
 0xc70   : > { %v4026_v52 = vpop.f32.mrb[40].mxu1 }
 0xc71   : > { %v4027_v37 = vadd.f32 %v4026_v52, %v5296_v38  ;;  %v4716_v45 = vpop.f32.mrb[41].mxu1  ;;  %v5698_v52 = vrot.slane %v493_v40, %v510_v15 }
 0xc72   : > { %v4029_v26 = vpop.f32.mrb[42].mxu1 }
 0xc73   : > { %v4030_v46 = vadd.f32 %v4029_v26, %v5296_v38  ;;  %v4717_v47 = vpop.f32.mrb[43].mxu1  ;;  %v4033_v22 = vadd.f32 %v4843_v55, %v4027_v37  ;;  %v3275_v38 = vadd.f32 %v3271_v3, %v5434_v8  ;;  %v4781_v3 = vld [vmem:[%s5765_s9 + $0x8] sm:$0xff]  }
 0xc75   : > { %v4035_v54 = vsel %vm524_vm0, %v4033_v22, 0.0  ;;  %v4034_v59 = vadd.f32 %v4844_v56, %v4030_v46  ;;  %v3279_v44 = vsel %vm524_vm0, %v3275_v38, 0.0 }
 0xc76   : > { %4036 = vadd.xlane.f32.xlu0 %v4035_v54 }
 0xc77   : > { %v4038_v57 = vsel %vm524_vm0, %v4034_v59, 0.0 }
 0xc78   : > { %4039 = vadd.xlane.f32.xlu1 %v4038_v57  ;;  %v4782_v57 = vld [vmem:[%s5765_s9 + $0x10] sm:$0xff]  }
 0xc7c   : > { %3277 = vadd.xlane.f32.xlu1 %v3276_v19 }
 0xc80   : > { %3280 = vadd.xlane.f32.xlu1 %v3279_v44 }
 0xd03   : > { %v4037_v36 = vpop.xlane.xlu0 %4036 }
 0xd04   : > { %v4041_v61 = vmul.f32 0.03125, %v4037_v36 }
 0xd05   : > { %v4040_v25 = vpop.xlane.xlu1 %4039 }
 0xd06   : > { %v4043_v39 = vsub.f32 %v4033_v22, %v4041_v61  ;;  %v4042_v32 = vmul.f32 0.03125, %v4040_v25 }
 0xd08   : > { %v4044_v0 = vsub.f32 %v4034_v59, %v4042_v32  ;;  %v4045_v27 = vmul.f32 %v4043_v39, %v4043_v39 }
 0xd09   : > { %v3278_v16 = vpop.xlane.xlu1 %3277 }
 0xd0a   : > { %v3282_v60 = vmul.f32 0.03125, %v3278_v16  ;;  %v4047_v7 = vsel %vm524_vm0, %v4045_v27, 0.0  ;;  %v4046_v48 = vmul.f32 %v4044_v0, %v4044_v0 }
 0xd0b   : > { %4048 = vadd.xlane.f32.xlu0 %v4047_v7 }
 0xd0c   : > { %v3284_v34 = vsub.f32 %v3274_v23, %v3282_v60  ;;  %v4050_v24 = vsel %vm524_vm0, %v4046_v48, 0.0  ;;  %v4783_v23 = vld [vmem:[%s5765_s9 + $0x18] sm:$0xff]  }
 0xd0d   : > { %v3281_v51 = vpop.xlane.xlu1 %3280 }
 0xd0e   : > { %v3283_v8 = vmul.f32 0.03125, %v3281_v51  ;;  %v3286_v29 = vmul.f32 %v3284_v34, %v3284_v34 }
 0xd0f   : > { %4051 = vadd.xlane.f32.xlu0 %v4050_v24 }
 0xd10   : > { %v3285_v11 = vsub.f32 %v3275_v38, %v3283_v8  ;;  %v3288_v1 = vsel %vm524_vm0, %v3286_v29, 0.0 }
 0xd11   : > { %3289 = vadd.xlane.f32.xlu1 %v3288_v1 }
 0xd12   : > { %v3287_v31 = vmul.f32 %v3285_v11, %v3285_v11 }
 0xd14   : > { %v3291_v2 = vsel %vm524_vm0, %v3287_v31, 0.0 }
 0xd15   : > { %3292 = vadd.xlane.f32.xlu1 %v3291_v2 }
 0xd98   : > { %v4049_v63 = vpop.xlane.xlu0 %4048 }
 0xd99   : > { %v4053_v35 = vmul.f32 0.03125, %v4049_v63 }
 0xd9b   : > { %v4055_v6 = vadd.f32 1e-12, %v4053_v35 }
 0xd9c   : > { %v4052_v58 = vpop.xlane.xlu0 %4051 }
 0xd9d   : > { %4824 = vrsqrt.f32 %v4055_v6  ;;  %v4054_v20 = vmul.f32 0.03125, %v4052_v58 }
 0xd9e   : > { %v3290_v9 = vpop.xlane.xlu1 %3289 }
 0xd9f   : > { %v4056_v17 = vadd.f32 1e-12, %v4054_v20  ;;  %v3294_v49 = vmul.f32 0.03125, %v3290_v9 }
 0xda1   : > { %4826 = vrsqrt.f32 %v4056_v17  ;;  %v3296_v14 = vadd.f32 1e-12, %v3294_v49 }
 0xda2   : > { %v3293_v18 = vpop.xlane.xlu1 %3292 }
 0xda3   : > { %4828 = vrsqrt.f32 %v3296_v14  ;;  %v3295_v21 = vmul.f32 0.03125, %v3293_v18 }
 0xda5   : > { %v3297_v33 = vadd.f32 1e-12, %v3295_v21 }
 0xda7   : > { %v4825_v43 = vpop.eup %4824  ;;  %4830 = vrsqrt.f32 %v3297_v33 }
 0xda8   : > { %v4059_v41 = vmul.f32 %v4825_v43, %v4043_v39 }
 0xdaa   : > { %v4061_v37 = vmul.f32 %v4059_v41, %v5398_v5 }
 0xdab   : > { %v4827_v50 = vpop.eup %4826 }
 0xdac   : > { %v4060_v45 = vmul.f32 %v4827_v50, %v4044_v0  ;;  %v4063_v22 = vadd.f32 %v4061_v37, %v5416_v53 }
 0xdad   : > { %v4829_v26 = vpop.eup %4828 }
 0xdae   : > { %v4062_v46 = vmul.f32 %v4060_v45, %v5398_v5  ;;  %v3300_v47 = vmul.f32 %v4829_v26, %v3284_v34 }
 0xdb0   : > { %v3306_v55 = vmul.f32 %v5698_v52, %v3300_v47  ;;  %v4064_v54 = vadd.f32 %v4062_v46, %v5416_v53  ;;  %v4780_v53 = vld [vmem:[%s5765_s9] sm:$0xff]  }
 0xdb1   : > { %v4831_v56 = vpop.eup %4830  ;;  %4727 = vmatpush3.bf16.msra.mxu1 %v4780_v53 }
 0xdb2   : > { %v3312_v15 = vadd.f32 %v5703_v42, %v3306_v55  ;;  %v3301_v59 = vmul.f32 %v4831_v56, %v3285_v11  ;;  %v4065_v12 = vpack.c.bf16 %v4064_v54, %v4063_v22  ;;  %4728 = vmatprep.subr.bf16.mxu1 %v4853_v10 }
 0xdb4   : > { %4245 = vst.msk [vmem:[%s483_s26] sm:$0xff] %vm524_vm0, %v3312_v15  ;;  %v3307_v13 = vmul.f32 %v5698_v52, %v3301_v59  ;;  %4723 = vmatmul.mubr.msk.bf16.vlgmr.msra.gmra.mrb[48].mxu0 %vm524_vm0, %v4065_v12 }
 0xdb5   : > { %4729 = vmatpush3.bf16.msra.mxu1 %v4781_v3 }
 0xdb6   : > { %v3313_v5 = vadd.f32 %v5703_v42, %v3307_v13  ;;  %4730 = vmatprep.subr.bf16.mxu1 %v4853_v10 }
 0xdb8   : > { %4246 = vst.msk [vmem:[%s483_s26 + $0x8] sm:$0xff] %vm524_vm0, %v3313_v5 }
 0xdb9   : > { %4731 = vmatpush3.bf16.msra.mxu1 %v4782_v57 }
 0xdba   : > { %4732 = vmatprep.subr.bf16.mxu1 %v4853_v10 }
 0xdbd   : > { %4733 = vmatpush3.bf16.msra.mxu1 %v4783_v23 }
 0xe87   : > { %v4119_v19 = vpop.f32.mrb[48].mxu0 }
 0xe88   : > { %v4120_v38 = vadd.f32 %v4119_v19, %v5497_v62  ;;  %v4724_v44 = vpop.f32.mrb[49].mxu0 }
 0xe89   : > { %v4122_v36 = vpop.f32.mrb[50].mxu0 }
 0xe8a   : > { %v4128_v61 = vmul.f32 0.70710677, %v4120_v38  ;;  %v4123_v25 = vadd.f32 %v4122_v36, %v5497_v62  ;;  %v4725_v39 = vpop.f32.mrb[51].mxu0  ;;  %v4126_v16 = vmul.f32 0.5, %v4120_v38 }
 0xe8c   : > { %4832 = verf.f32 %v4128_v61  ;;  %v4129_v32 = vmul.f32 0.70710677, %v4123_v25  ;;  %v4127_v60 = vmul.f32 0.5, %v4123_v25 }
 0xe8e   : > { %4834 = verf.f32 %v4129_v32 }
 0xe96   : > { %v4833_v0 = vpop.eup %4832 }
 0xe97   : > { %v4132_v27 = vadd.f32 1.0, %v4833_v0 }
 0xe98   : > { %v4835_v10 = vpop.eup %4834 }
 0xe99   : > { %v4133_v7 = vadd.f32 1.0, %v4835_v10  ;;  %v4134_v48 = vmul.f32 %v4132_v27, %v4126_v16 }
 0xe9b   : > { %v4135_v34 = vmul.f32 %v4133_v7, %v4127_v60 }
 0xe9d   : > { %v4136_v51 = vpack.c.bf16 %v4135_v34, %v4134_v48 }
 0xe9f   : > { %4735 = vmatmul.mubr.msk.bf16.vlgmr.msra.gmra.mrb[44].mxu1 %vm3229_vm5, %v4136_v51 }
 0xf72   : > { %v4206_v8 = vpop.f32.mrb[44].mxu1 }
 0xf73   : > { %v4207_v24 = vadd.f32 %v4206_v8, %v5666_v30  ;;  %v4736_v29 = vpop.f32.mrb[45].mxu1 }
 0xf74   : > { %v4209_v62 = vpop.f32.mrb[46].mxu1 }
 0xf75   : > { %v4210_v11 = vadd.f32 %v4209_v62, %v5666_v30  ;;  %v4737_v1 = vpop.f32.mrb[47].mxu1  ;;  %v4213_v31 = vadd.f32 %v4207_v24, %v4063_v22 }
 0xf77   : > { %v4215_v2 = vsel %vm524_vm0, %v4213_v31, 0.0  ;;  %v4214_v4 = vadd.f32 %v4210_v11, %v4064_v54 }
 0xf78   : > { %4216 = vadd.xlane.f32.xlu0 %v4215_v2 }
 0xf79   : > { %v4218_v28 = vsel %vm524_vm0, %v4214_v4, 0.0 }
 0xf7c   : > { %4219 = vadd.xlane.f32.xlu0 %v4218_v28 }
0x1005   : > { %v4217_v63 = vpop.xlane.xlu0 %4216 }
0x1006   : > { %v4221_v35 = vmul.f32 0.03125, %v4217_v63 }
0x1008   : > { %v4223_v6 = vsub.f32 %v4213_v31, %v4221_v35 }
0x1009   : > { %v4220_v58 = vpop.xlane.xlu0 %4219 }
0x100a   : > { %v4222_v20 = vmul.f32 0.03125, %v4220_v58  ;;  %v4225_v9 = vmul.f32 %v4223_v6, %v4223_v6 }
0x100c   : > { %v4224_v17 = vsub.f32 %v4214_v4, %v4222_v20  ;;  %v4227_v49 = vsel %vm524_vm0, %v4225_v9, 0.0 }
0x100d   : > { %4228 = vadd.xlane.f32.xlu0 %v4227_v49 }
0x100e   : > { %v4226_v30 = vmul.f32 %v4224_v17, %v4224_v17 }
0x1010   : > { %v4230_v14 = vsel %vm524_vm0, %v4226_v30, 0.0 }
0x1011   : > { %4231 = vadd.xlane.f32.xlu0 %v4230_v14 }
0x109a   : > { %v4229_v18 = vpop.xlane.xlu0 %4228 }
0x109b   : > { %v4233_v21 = vmul.f32 0.03125, %v4229_v18 }
0x109d   : > { %v4235_v33 = vadd.f32 1e-12, %v4233_v21 }
0x109e   : > { %v4232_v43 = vpop.xlane.xlu0 %4231 }
0x109f   : > { %4836 = vrsqrt.f32 %v4235_v33  ;;  %v4234_v41 = vmul.f32 0.03125, %v4232_v43 }
0x10a1   : > { %v4236_v40 = vadd.f32 1e-12, %v4234_v41 }
0x10a3   : > { %4838 = vrsqrt.f32 %v4236_v40 }
0x10a9   : > { %v4837_v50 = vpop.eup %4836 }
0x10aa   : > { %v4239_v37 = vmul.f32 %v4837_v50, %v4223_v6 }
0x10ac   : > { %v4241_v45 = vmul.f32 %v4239_v37, %v5698_v52 }
0x10ad   : > { %v4839_v26 = vpop.eup %4838 }
0x10ae   : > { %v4243_v46 = vadd.f32 %v4241_v45, %v5703_v42  ;;  %v4240_v47 = vmul.f32 %v4839_v26, %v4224_v17 }
0x10b0   : > { %4247 = vst.msk [vmem:[%s489_s16] sm:$0xff] %vm524_vm0, %v4243_v46  ;;  %v4242_v55 = vmul.f32 %v4240_v47, %v5698_v52 }
0x10b2   : > { %v4244_v22 = vadd.f32 %v4242_v55, %v5703_v42 }
0x10b4   : > { %4248 = vst.msk [vmem:[%s489_s16 + $0x8] sm:$0xff] %vm524_vm0, %v4244_v22 }
0x10b5 PF: > { %s23_s21 = sadd.s32 1, %s4851_s21  }
0x10b6   : > { %p20_p4 = scmp.ge.s32.totalorder %s23_s21, 4  }
0x10b8   :  { %22 = sbr.rel (!%p20_p4) target bundleno = 1 (0x1), region = 115 }

</bundles_post_ra>
